<compile_context>
chip_gen: v5e
topology: v5e:2x2
jax: 0.10.0
libtpu: 0.0.40
codegen_flags: <defaults>
</compile_context>

<pallas_src>
import functools

import jax
import jax.numpy as jnp
from jax.experimental import pallas as pl
from jax.experimental.pallas import tpu as pltpu

BN_EPS = 1e-5
EXPANSION = 4


def _round_up(x, m):
    return (x + m - 1) // m * m


# ----------------------------------------------------------------------------
# Pallas kernel: fused (A @ B) + bias (+ residual) (+ ReLU) -> bf16
#   A: (TM, TK) bf16, B: (TK, TN) bf16, f32 accumulation in a VMEM scratch
#   across the innermost K grid axis, epilogue on the last K step only.
# ----------------------------------------------------------------------------
def _fused_matmul_kernel(*refs, n_k, has_residual, relu):
    if has_residual:
        a_ref, b_ref, bias_ref, res_ref, o_ref, acc_ref = refs
    else:
        a_ref, b_ref, bias_ref, o_ref, acc_ref = refs
        res_ref = None

    k = pl.program_id(2)
    part = jnp.dot(a_ref[...], b_ref[...], preferred_element_type=jnp.float32)

    def _epilogue(total):
        y = total + bias_ref[...]
        if has_residual:
            y = y + res_ref[...].astype(jnp.float32)
        if relu:
            y = jnp.maximum(y, 0.0)
        o_ref[...] = y.astype(o_ref.dtype)

    if n_k == 1:
        # Single K step: no scratch traffic at all.
        _epilogue(part)
    else:
        last = n_k - 1

        @pl.when(k == 0)
        def _():
            acc_ref[...] = part

        @pl.when(jnp.logical_and(k > 0, k < last))
        def _():
            acc_ref[...] += part

        @pl.when(k == last)
        def _():
            _epilogue(acc_ref[...] + part)


def _pad2d(x, rows, cols):
    r, c = x.shape
    if r == rows and c == cols:
        return x
    return jnp.pad(x, ((0, rows - r), (0, cols - c)))


def _choose_tile(dim, candidates):
    """Pick a tile from `candidates` (descending) minimizing padded size."""
    best_t, best_pad = None, None
    for t in candidates:
        pad = _round_up(dim, t)
        if best_pad is None or pad < best_pad:
            best_t, best_pad = t, pad
    return best_t, best_pad


def _choose_tk(K, max_tk=2048):
    """K tile: a 128-multiple that exactly divides round_up(K,128) whenever
    possible (no over-padding of the im2col tensor), as large as possible."""
    K_al = _round_up(K, 128)
    n128 = K_al // 128
    best = 1
    for d in range(1, n128 + 1):
        if n128 % d == 0 and d * 128 <= max_tk:
            best = d
    TK = best * 128
    if K_al // TK > 16:
        # Pathological (e.g. prime) K: accept over-padding to bound step count.
        TK = min(max_tk, _round_up(-(-K_al // 16), 128))
        return TK, _round_up(K_al, TK)
    return TK, K_al


def fused_matmul(a, b, bias, *, relu, residual=None):
    """out = act(a @ b + bias [+ residual]); a:(M,K), b:(K,N) -> (M,N) bf16."""
    M, K = a.shape
    _, N = b.shape

    # Tiny problems: launch + padding overhead dwarfs the math -> plain XLA.
    if M < 8:
        out = jnp.dot(a.astype(jnp.bfloat16), b.astype(jnp.bfloat16),
                      preferred_element_type=jnp.float32) + bias
        if residual is not None:
            out = out + residual.astype(jnp.float32)
        if relu:
            out = jnp.maximum(out, 0.0)
        return out.astype(jnp.bfloat16)

    # Tile selection: lane/sublane aligned, minimal padding, VMEM bounded.
    TM, M_pad = _choose_tile(M, (256, 128, 64, 32, 16))
    TN, N_pad = _choose_tile(N, (256, 128))
    # v7x has 2 TensorCores sharing the parallel grid axes: ensure >= 2
    # parallel blocks when the problem allows it (no effect on v5e/v6e).
    if (M_pad // TM) * (N_pad // TN) < 2:
        if N > 128 and TN > 128:
            TN = 128
            N_pad = _round_up(N, TN)
        elif TM >= 32 and M > TM // 2:
            TM //= 2
            M_pad = _round_up(M, TM)
    TK, K_pad = _choose_tk(K)
    n_k = K_pad // TK

    a_p = _pad2d(a.astype(jnp.bfloat16), M_pad, K_pad)
    b_p = _pad2d(b.astype(jnp.bfloat16), K_pad, N_pad)
    bias_p = _pad2d(bias.reshape(1, N).astype(jnp.float32), 1, N_pad)

    inputs = [a_p, b_p, bias_p]
    in_specs = [
        pl.BlockSpec((TM, TK), lambda i, j, k: (i, k)),
        pl.BlockSpec((TK, TN), lambda i, j, k: (k, j)),
        pl.BlockSpec((1, TN), lambda i, j, k: (0, j)),
    ]
    has_residual = residual is not None
    if has_residual:
        inputs.append(_pad2d(residual.astype(jnp.bfloat16), M_pad, N_pad))
        in_specs.append(pl.BlockSpec((TM, TN), lambda i, j, k: (i, j)))

    kernel = functools.partial(_fused_matmul_kernel, n_k=n_k,
                               has_residual=has_residual, relu=relu)

    out = pl.pallas_call(
        kernel,
        out_shape=jax.ShapeDtypeStruct((M_pad, N_pad), jnp.bfloat16),
        grid_spec=pltpu.PrefetchScalarGridSpec(
            num_scalar_prefetch=0,
            grid=(M_pad // TM, N_pad // TN, n_k),
            in_specs=in_specs,
            out_specs=pl.BlockSpec((TM, TN), lambda i, j, k: (i, j)),
            scratch_shapes=[pltpu.VMEM((TM, TN), jnp.float32)],
        ),
        compiler_params=pltpu.CompilerParams(
            dimension_semantics=("parallel", "parallel", "arbitrary"),
            vmem_limit_bytes=32 * 1024 * 1024),
    )(*inputs)

    if M_pad == M and N_pad == N:
        return out
    return out[:M, :N]


# ----------------------------------------------------------------------------
# Conv3D = im2col (glue, bf16) + fused Pallas matmul  (bf16 activations)
# ----------------------------------------------------------------------------
def _extract_patches_3d(x, ksize, stride, pad):
    # x: (N, D, H, W, C)
    kd, kh, kw = ksize
    sd, sh, sw = stride
    pd, ph, pw = pad
    N, D, H, W, C = x.shape
    xp = jnp.pad(x, ((0, 0), (pd, pd), (ph, ph), (pw, pw), (0, 0)))
    Do = (D + 2 * pd - kd) // sd + 1
    Ho = (H + 2 * ph - kh) // sh + 1
    Wo = (W + 2 * pw - kw) // sw + 1
    if (kd, kh, kw) == (1, 1, 1):
        sl = xp[:, 0:Do * sd:sd, 0:Ho * sh:sh, 0:Wo * sw:sw, :]
        return sl, (Do, Ho, Wo)
    patches = []
    for i in range(kd):
        for j in range(kh):
            for l in range(kw):
                patches.append(
                    xp[:, i:i + Do * sd:sd, j:j + Ho * sh:sh,
                       l:l + Wo * sw:sw, :])
    return jnp.concatenate(patches, axis=-1), (Do, Ho, Wo)


def conv3d_bn_act(x, w, bias, ksize, stride, pad, *, relu=True,
                  residual=None):
    # x: (N, D, H, W, Cin); w: (kd*kh*kw*Cin, Cout) with BN scale pre-folded
    # K ordering is tap-major, channel-minor (kd,kh,kw outer, Cin innermost).
    x = x.astype(jnp.bfloat16)
    patches, (Do, Ho, Wo) = _extract_patches_3d(x, ksize, stride, pad)
    N = x.shape[0]
    Cout = w.shape[1]
    A = patches.reshape(N * Do * Ho * Wo, -1)
    res2d = None if residual is None else residual.reshape(
        N * Do * Ho * Wo, Cout)
    out = fused_matmul(A, w, bias, relu=relu, residual=res2d)
    return out.reshape(N, Do, Ho, Wo, Cout)


def maxpool3d(x, ksize=3, stride=2, pad=1):
    N, D, H, W, C = x.shape
    xp = jnp.pad(x, ((0, 0), (pad, pad), (pad, pad), (pad, pad), (0, 0)),
                 constant_values=-jnp.inf)
    Do = (D + 2 * pad - ksize) // stride + 1
    Ho = (H + 2 * pad - ksize) // stride + 1
    Wo = (W + 2 * pad - ksize) // stride + 1
    out = None
    for i in range(ksize):
        for j in range(ksize):
            for l in range(ksize):
                sl = xp[:, i:i + Do * stride:stride, j:j + Ho * stride:stride,
                        l:l + Wo * stride:stride, :]
                out = sl if out is None else jnp.maximum(out, sl)
    return out


# ----------------------------------------------------------------------------
# Deterministic parameter construction (3D ResNet-50, 1 input channel, 2 cls)
# ----------------------------------------------------------------------------
class _ParamGen:
    def __init__(self, key):
        self.key = key
        self.n = 0

    def normal(self, shape, scale):
        self.n += 1
        k = jax.random.fold_in(self.key, self.n)
        return scale * jax.random.normal(k, shape, jnp.float32)


def _make_conv_bn(pg, cin, cout, ksize):
    kd, kh, kw = ksize
    fan_in = cin * kd * kh * kw
    w = pg.normal((kd * kh * kw * cin, cout), (2.0 / fan_in) ** 0.5)
    # BN (inference) folded into the weight columns + bias:
    #   scale = gamma / sqrt(var + eps), bias = beta - mean * scale
    # with untrained stats gamma=1, beta=0, mean=0, var=1.
    scale = jnp.full((cout,), 1.0 / (1.0 + BN_EPS) ** 0.5, jnp.float32)
    return dict(w=w * scale[None, :], bias=jnp.zeros((cout,), jnp.float32))


def _make_bottleneck(pg, in_planes, planes, stride):
    blk = dict(
        conv1=_make_conv_bn(pg, in_planes, planes, (1, 1, 1)),
        conv2=_make_conv_bn(pg, planes, planes, (3, 3, 3)),
        conv3=_make_conv_bn(pg, planes, planes * EXPANSION, (1, 1, 1)),
        downsample=None,
    )
    if stride != 1 or in_planes != planes * EXPANSION:
        blk['downsample'] = _make_conv_bn(pg, in_planes,
                                          planes * EXPANSION, (1, 1, 1))
    return blk


LAYER_PLANES = [64, 128, 256, 512]
LAYER_BLOCKS = [3, 4, 6, 3]          # ResNet-50
LAYER_STRIDES = [1, 2, 2, 2]


def init_params(key):
    pg = _ParamGen(key)
    params = {'conv1': _make_conv_bn(pg, 1, 64, (7, 7, 7))}
    in_planes = 64
    layers = []
    for planes, nblocks, stride in zip(LAYER_PLANES, LAYER_BLOCKS,
                                       LAYER_STRIDES):
        blocks = []
        for b in range(nblocks):
            s = stride if b == 0 else 1
            blocks.append(_make_bottleneck(pg, in_planes, planes, s))
            in_planes = planes * EXPANSION
        layers.append(blocks)
    params['layers'] = layers
    params['fc_w'] = pg.normal((512 * EXPANSION, 2),
                               (1.0 / (512 * EXPANSION)) ** 0.5)
    params['fc_b'] = jnp.zeros((2,), jnp.float32)
    return params


# ----------------------------------------------------------------------------
# Forward pass
# ----------------------------------------------------------------------------
def _bottleneck_forward(x, blk, stride):
    identity = x
    out = conv3d_bn_act(x, blk['conv1']['w'], blk['conv1']['bias'],
                        (1, 1, 1), (1, 1, 1), (0, 0, 0), relu=True)
    out = conv3d_bn_act(out, blk['conv2']['w'], blk['conv2']['bias'],
                        (3, 3, 3), (stride, stride, stride), (1, 1, 1),
                        relu=True)
    if blk['downsample'] is not None:
        ds = blk['downsample']
        identity = conv3d_bn_act(x, ds['w'], ds['bias'], (1, 1, 1),
                                 (stride, stride, stride), (0, 0, 0),
                                 relu=False)
    # conv3 + bn3 + residual add + relu, fused in one Pallas kernel
    out = conv3d_bn_act(out, blk['conv3']['w'], blk['conv3']['bias'],
                        (1, 1, 1), (1, 1, 1), (0, 0, 0),
                        relu=True, residual=identity)
    return out


def resnet3d50_logits(params, x_ncdhw):
    # NCDHW -> NDHWC
    x = jnp.transpose(x_ncdhw, (0, 2, 3, 4, 1)).astype(jnp.float32)
    c1 = params['conv1']
    x = conv3d_bn_act(x, c1['w'], c1['bias'],
                      (7, 7, 7), (1, 2, 2), (3, 3, 3), relu=True)
    x = maxpool3d(x, 3, 2, 1)
    for layer_idx, blocks in enumerate(params['layers']):
        for b, blk in enumerate(blocks):
            stride = LAYER_STRIDES[layer_idx] if b == 0 else 1
            x = _bottleneck_forward(x, blk, stride)
    feat = jnp.mean(x.astype(jnp.float32), axis=(1, 2, 3))   # AdaptiveAvgPool3d
    # Final FC: 1x2048 @ 2048x2 -- pure launch overhead in Pallas, use XLA.
    logits = jnp.dot(feat, params['fc_w'],
                     preferred_element_type=jnp.float32) + params['fc_b']
    return logits                               # (N, 2), f32


def mil_forward(params, x_ncdhw):
    logits = resnet3d50_logits(params, x_ncdhw)
    probs = jax.nn.softmax(logits, axis=1)      # torch.nn.Softmax(dim=1)
    Y_prob = probs[0, 1].reshape(1)             # sm(...)[0][1].view(1)
    A = 1
    Y_hat = jnp.argmax(Y_prob, axis=0)
    return Y_prob, Y_hat, A


# ----------------------------------------------------------------------------
if __name__ == "__main__":
    root = jax.random.PRNGKey(0)
    pkey, xkey = jax.random.split(root)

    params = init_params(pkey)
    # small 3D volume: (N, C, D, H, W) = (1, 1, 8, 16, 16)
    x = jax.random.normal(xkey, (1, 1, 8, 16, 16), jnp.float32)

    fwd = jax.jit(mil_forward)
    Y_prob, Y_hat, A = fwd(params, x)
    Y_prob = jax.block_until_ready(Y_prob)
    Y_hat = jax.block_until_ready(Y_hat)

    assert Y_prob.shape == (1,)
    assert bool(jnp.isfinite(Y_prob).all())
    assert int(Y_hat) == 0  # argmax of a length-1 vector
    assert A == 1
    print("KERNEL_OK")
</pallas_src>

<mosaic_0001>
module attributes {stable_mosaic.version = 11 : i64} {
  func.func @_fused_matmul_kernel(%arg0: i32, %arg1: i32, %arg2: i32, %arg3: memref<256x384xbf16, #tpu.memory_space<vmem>>, %arg4: memref<384x128xbf16, #tpu.memory_space<vmem>>, %arg5: memref<1x128xf32, #tpu.memory_space<vmem>>, %arg6: memref<256x128xbf16, #tpu.memory_space<vmem>>, %arg7: memref<256x128xf32, #tpu.memory_space<vmem>>) attributes {dimension_semantics = [#tpu.dimension_semantics<parallel>, #tpu.dimension_semantics<parallel>, #tpu.dimension_semantics<arbitrary>], iteration_bounds = array<i64: 2, 1, 1>, scalar_prefetch = 0 : i64, scratch_operands = 1 : i64, tpu.core_type = #tpu.core_type<tc>, window_params = [{transform_indices = @transform_0, window_bounds = array<i64: 256, 384>}, {transform_indices = @transform_1, window_bounds = array<i64: 384, 128>}, {transform_indices = @transform_2, window_bounds = array<i64: 1, 128>}, {transform_indices = @transform_3, window_bounds = array<i64: 256, 128>}]} {
    %c0 = arith.constant 0 : index
    %c0_0 = arith.constant 0 : index
    %0 = vector.load %arg3[%c0, %c0_0] : memref<256x384xbf16, #tpu.memory_space<vmem>>, vector<256x384xbf16>
    %c0_1 = arith.constant 0 : index
    %c0_2 = arith.constant 0 : index
    %1 = vector.load %arg4[%c0_1, %c0_2] : memref<384x128xbf16, #tpu.memory_space<vmem>>, vector<384x128xbf16>
    %cst = arith.constant dense<0.000000e+00> : vector<256x128xf32>
    %2 = tpu.matmul %0, %1, %cst {dimension_numbers = #tpu.dot_dimension_numbers<[1], [0], [0], [1], [0, 0, 1, 1], [], []>} : vector<256x384xbf16>, vector<384x128xbf16>, vector<256x128xf32> -> vector<256x128xf32>
    %c0_3 = arith.constant 0 : index
    %c0_4 = arith.constant 0 : index
    %3 = vector.load %arg5[%c0_3, %c0_4] : memref<1x128xf32, #tpu.memory_space<vmem>>, vector<1x128xf32>
    %4 = vector.broadcast %3 : vector<1x128xf32> to vector<256x128xf32>
    %5 = arith.addf %2, %4 : vector<256x128xf32>
    %cst_5 = arith.constant 0.000000e+00 : f32
    %6 = vector.broadcast %cst_5 : f32 to vector<256x128xf32>
    %7 = arith.maximumf %5, %6 : vector<256x128xf32>
    %8 = arith.truncf %7 : vector<256x128xf32> to vector<256x128xbf16>
    %c0_6 = arith.constant 0 : index
    %c0_7 = arith.constant 0 : index
    %9 = vector.load %arg6[%c0_6, %c0_7] : memref<256x128xbf16, #tpu.memory_space<vmem>>, vector<256x128xbf16>
    tpu.vector_store %arg6[%c0_6, %c0_7], %8 {strides = array<i32>} : memref<256x128xbf16, #tpu.memory_space<vmem>>, vector<256x128xbf16>,
    return
  }
  func.func @transform_0(%arg0: i32, %arg1: i32, %arg2: i32) -> (i32, i32) {
    %c0_i32 = arith.constant 0 : i32
    return %arg0, %arg2 : i32, i32
  }
  func.func @transform_1(%arg0: i32, %arg1: i32, %arg2: i32) -> (i32, i32) {
    %c0_i32 = arith.constant 0 : i32
    return %arg2, %arg1 : i32, i32
  }
  func.func @transform_2(%arg0: i32, %arg1: i32, %arg2: i32) -> (i32, i32) {
    %c0_i32 = arith.constant 0 : i32
    %c0_i32_0 = arith.constant 0 : i32
    return %c0_i32, %arg1 : i32, i32
  }
  func.func @transform_3(%arg0: i32, %arg1: i32, %arg2: i32) -> (i32, i32) {
    %c0_i32 = arith.constant 0 : i32
    return %arg0, %arg1 : i32, i32
  }
}

module attributes {stable_mosaic.version = 11 : i64} {
  func.func @_fused_matmul_kernel(%arg0: i32, %arg1: i32, %arg2: i32, %arg3: memref<32x128xbf16, #tpu.memory_space<vmem>>, %arg4: memref<128x128xbf16, #tpu.memory_space<vmem>>, %arg5: memref<1x128xf32, #tpu.memory_space<vmem>>, %arg6: memref<32x128xbf16, #tpu.memory_space<vmem>>, %arg7: memref<32x128xf32, #tpu.memory_space<vmem>>) attributes {dimension_semantics = [#tpu.dimension_semantics<parallel>, #tpu.dimension_semantics<parallel>, #tpu.dimension_semantics<arbitrary>], iteration_bounds = array<i64: 2, 1, 1>, scalar_prefetch = 0 : i64, scratch_operands = 1 : i64, tpu.core_type = #tpu.core_type<tc>, window_params = [{transform_indices = @transform_0, window_bounds = array<i64: 32, 128>}, {transform_indices = @transform_1, window_bounds = array<i64: 128, 128>}, {transform_indices = @transform_2, window_bounds = array<i64: 1, 128>}, {transform_indices = @transform_3, window_bounds = array<i64: 32, 128>}]} {
    %c0 = arith.constant 0 : index
    %c0_0 = arith.constant 0 : index
    %0 = vector.load %arg3[%c0, %c0_0] : memref<32x128xbf16, #tpu.memory_space<vmem>>, vector<32x128xbf16>
    %c0_1 = arith.constant 0 : index
    %c0_2 = arith.constant 0 : index
    %1 = vector.load %arg4[%c0_1, %c0_2] : memref<128x128xbf16, #tpu.memory_space<vmem>>, vector<128x128xbf16>
    %cst = arith.constant dense<0.000000e+00> : vector<32x128xf32>
    %2 = tpu.matmul %0, %1, %cst {dimension_numbers = #tpu.dot_dimension_numbers<[1], [0], [0], [1], [0, 0, 1, 1], [], []>} : vector<32x128xbf16>, vector<128x128xbf16>, vector<32x128xf32> -> vector<32x128xf32>
    %c0_3 = arith.constant 0 : index
    %c0_4 = arith.constant 0 : index
    %3 = vector.load %arg5[%c0_3, %c0_4] : memref<1x128xf32, #tpu.memory_space<vmem>>, vector<1x128xf32>
    %4 = vector.broadcast %3 : vector<1x128xf32> to vector<32x128xf32>
    %5 = arith.addf %2, %4 : vector<32x128xf32>
    %cst_5 = arith.constant 0.000000e+00 : f32
    %6 = vector.broadcast %cst_5 : f32 to vector<32x128xf32>
    %7 = arith.maximumf %5, %6 : vector<32x128xf32>
    %8 = arith.truncf %7 : vector<32x128xf32> to vector<32x128xbf16>
    %c0_6 = arith.constant 0 : index
    %c0_7 = arith.constant 0 : index
    %9 = vector.load %arg6[%c0_6, %c0_7] : memref<32x128xbf16, #tpu.memory_space<vmem>>, vector<32x128xbf16>
    tpu.vector_store %arg6[%c0_6, %c0_7], %8 {strides = array<i32>} : memref<32x128xbf16, #tpu.memory_space<vmem>>, vector<32x128xbf16>,
    return
  }
  func.func @transform_0(%arg0: i32, %arg1: i32, %arg2: i32) -> (i32, i32) {
    %c0_i32 = arith.constant 0 : i32
    return %arg0, %arg2 : i32, i32
  }
  func.func @transform_1(%arg0: i32, %arg1: i32, %arg2: i32) -> (i32, i32) {
    %c0_i32 = arith.constant 0 : i32
    return %arg2, %arg1 : i32, i32
  }
  func.func @transform_2(%arg0: i32, %arg1: i32, %arg2: i32) -> (i32, i32) {
    %c0_i32 = arith.constant 0 : i32
    %c0_i32_0 = arith.constant 0 : i32
    return %c0_i32, %arg1 : i32, i32
  }
  func.func @transform_3(%arg0: i32, %arg1: i32, %arg2: i32) -> (i32, i32) {
    %c0_i32 = arith.constant 0 : i32
    return %arg0, %arg1 : i32, i32
  }
}

module attributes {stable_mosaic.version = 11 : i64} {
  func.func @_fused_matmul_kernel(%arg0: i32, %arg1: i32, %arg2: i32, %arg3: memref<32x1792xbf16, #tpu.memory_space<vmem>>, %arg4: memref<1792x128xbf16, #tpu.memory_space<vmem>>, %arg5: memref<1x128xf32, #tpu.memory_space<vmem>>, %arg6: memref<32x128xbf16, #tpu.memory_space<vmem>>, %arg7: memref<32x128xf32, #tpu.memory_space<vmem>>) attributes {dimension_semantics = [#tpu.dimension_semantics<parallel>, #tpu.dimension_semantics<parallel>, #tpu.dimension_semantics<arbitrary>], iteration_bounds = array<i64: 2, 1, 1>, scalar_prefetch = 0 : i64, scratch_operands = 1 : i64, tpu.core_type = #tpu.core_type<tc>, window_params = [{transform_indices = @transform_0, window_bounds = array<i64: 32, 1792>}, {transform_indices = @transform_1, window_bounds = array<i64: 1792, 128>}, {transform_indices = @transform_2, window_bounds = array<i64: 1, 128>}, {transform_indices = @transform_3, window_bounds = array<i64: 32, 128>}]} {
    %c0 = arith.constant 0 : index
    %c0_0 = arith.constant 0 : index
    %0 = vector.load %arg3[%c0, %c0_0] : memref<32x1792xbf16, #tpu.memory_space<vmem>>, vector<32x1792xbf16>
    %c0_1 = arith.constant 0 : index
    %c0_2 = arith.constant 0 : index
    %1 = vector.load %arg4[%c0_1, %c0_2] : memref<1792x128xbf16, #tpu.memory_space<vmem>>, vector<1792x128xbf16>
    %cst = arith.constant dense<0.000000e+00> : vector<32x128xf32>
    %2 = tpu.matmul %0, %1, %cst {dimension_numbers = #tpu.dot_dimension_numbers<[1], [0], [0], [1], [0, 0, 1, 1], [], []>} : vector<32x1792xbf16>, vector<1792x128xbf16>, vector<32x128xf32> -> vector<32x128xf32>
    %c0_3 = arith.constant 0 : index
    %c0_4 = arith.constant 0 : index
    %3 = vector.load %arg5[%c0_3, %c0_4] : memref<1x128xf32, #tpu.memory_space<vmem>>, vector<1x128xf32>
    %4 = vector.broadcast %3 : vector<1x128xf32> to vector<32x128xf32>
    %5 = arith.addf %2, %4 : vector<32x128xf32>
    %cst_5 = arith.constant 0.000000e+00 : f32
    %6 = vector.broadcast %cst_5 : f32 to vector<32x128xf32>
    %7 = arith.maximumf %5, %6 : vector<32x128xf32>
    %8 = arith.truncf %7 : vector<32x128xf32> to vector<32x128xbf16>
    %c0_6 = arith.constant 0 : index
    %c0_7 = arith.constant 0 : index
    %9 = vector.load %arg6[%c0_6, %c0_7] : memref<32x128xbf16, #tpu.memory_space<vmem>>, vector<32x128xbf16>
    tpu.vector_store %arg6[%c0_6, %c0_7], %8 {strides = array<i32>} : memref<32x128xbf16, #tpu.memory_space<vmem>>, vector<32x128xbf16>,
    return
  }
  func.func @transform_0(%arg0: i32, %arg1: i32, %arg2: i32) -> (i32, i32) {
    %c0_i32 = arith.constant 0 : i32
    return %arg0, %arg2 : i32, i32
  }
  func.func @transform_1(%arg0: i32, %arg1: i32, %arg2: i32) -> (i32, i32) {
    %c0_i32 = arith.constant 0 : i32
    return %arg2, %arg1 : i32, i32
  }
  func.func @transform_2(%arg0: i32, %arg1: i32, %arg2: i32) -> (i32, i32) {
    %c0_i32 = arith.constant 0 : i32
    %c0_i32_0 = arith.constant 0 : i32
    return %c0_i32, %arg1 : i32, i32
  }
  func.func @transform_3(%arg0: i32, %arg1: i32, %arg2: i32) -> (i32, i32) {
    %c0_i32 = arith.constant 0 : i32
    return %arg0, %arg1 : i32, i32
  }
}

module attributes {stable_mosaic.version = 11 : i64} {
  func.func @_fused_matmul_kernel(%arg0: i32, %arg1: i32, %arg2: i32, %arg3: memref<64x128xbf16, #tpu.memory_space<vmem>>, %arg4: memref<128x128xbf16, #tpu.memory_space<vmem>>, %arg5: memref<1x128xf32, #tpu.memory_space<vmem>>, %arg6: memref<64x128xbf16, #tpu.memory_space<vmem>>, %arg7: memref<64x128xf32, #tpu.memory_space<vmem>>) attributes {dimension_semantics = [#tpu.dimension_semantics<parallel>, #tpu.dimension_semantics<parallel>, #tpu.dimension_semantics<arbitrary>], iteration_bounds = array<i64: 1, 2, 1>, scalar_prefetch = 0 : i64, scratch_operands = 1 : i64, tpu.core_type = #tpu.core_type<tc>, window_params = [{transform_indices = @transform_0, window_bounds = array<i64: 64, 128>}, {transform_indices = @transform_1, window_bounds = array<i64: 128, 128>}, {transform_indices = @transform_2, window_bounds = array<i64: 1, 128>}, {transform_indices = @transform_3, window_bounds = array<i64: 64, 128>}]} {
    %c0 = arith.constant 0 : index
    %c0_0 = arith.constant 0 : index
    %0 = vector.load %arg3[%c0, %c0_0] : memref<64x128xbf16, #tpu.memory_space<vmem>>, vector<64x128xbf16>
    %c0_1 = arith.constant 0 : index
    %c0_2 = arith.constant 0 : index
    %1 = vector.load %arg4[%c0_1, %c0_2] : memref<128x128xbf16, #tpu.memory_space<vmem>>, vector<128x128xbf16>
    %cst = arith.constant dense<0.000000e+00> : vector<64x128xf32>
    %2 = tpu.matmul %0, %1, %cst {dimension_numbers = #tpu.dot_dimension_numbers<[1], [0], [0], [1], [0, 0, 1, 1], [], []>} : vector<64x128xbf16>, vector<128x128xbf16>, vector<64x128xf32> -> vector<64x128xf32>
    %c0_3 = arith.constant 0 : index
    %c0_4 = arith.constant 0 : index
    %3 = vector.load %arg5[%c0_3, %c0_4] : memref<1x128xf32, #tpu.memory_space<vmem>>, vector<1x128xf32>
    %4 = vector.broadcast %3 : vector<1x128xf32> to vector<64x128xf32>
    %5 = arith.addf %2, %4 : vector<64x128xf32>
    %6 = arith.truncf %5 : vector<64x128xf32> to vector<64x128xbf16>
    %c0_5 = arith.constant 0 : index
    %c0_6 = arith.constant 0 : index
    %7 = vector.load %arg6[%c0_5, %c0_6] : memref<64x128xbf16, #tpu.memory_space<vmem>>, vector<64x128xbf16>
    tpu.vector_store %arg6[%c0_5, %c0_6], %6 {strides = array<i32>} : memref<64x128xbf16, #tpu.memory_space<vmem>>, vector<64x128xbf16>,
    return
  }
  func.func @transform_0(%arg0: i32, %arg1: i32, %arg2: i32) -> (i32, i32) {
    %c0_i32 = arith.constant 0 : i32
    return %arg0, %arg2 : i32, i32
  }
  func.func @transform_1(%arg0: i32, %arg1: i32, %arg2: i32) -> (i32, i32) {
    %c0_i32 = arith.constant 0 : i32
    return %arg2, %arg1 : i32, i32
  }
  func.func @transform_2(%arg0: i32, %arg1: i32, %arg2: i32) -> (i32, i32) {
    %c0_i32 = arith.constant 0 : i32
    %c0_i32_0 = arith.constant 0 : i32
    return %c0_i32, %arg1 : i32, i32
  }
  func.func @transform_3(%arg0: i32, %arg1: i32, %arg2: i32) -> (i32, i32) {
    %c0_i32 = arith.constant 0 : i32
    return %arg0, %arg1 : i32, i32
  }
}

module attributes {stable_mosaic.version = 11 : i64} {
  func.func @_fused_matmul_kernel(%arg0: i32, %arg1: i32, %arg2: i32, %arg3: memref<64x128xbf16, #tpu.memory_space<vmem>>, %arg4: memref<128x128xbf16, #tpu.memory_space<vmem>>, %arg5: memref<1x128xf32, #tpu.memory_space<vmem>>, %arg6: memref<64x128xbf16, #tpu.memory_space<vmem>>, %arg7: memref<64x128xbf16, #tpu.memory_space<vmem>>, %arg8: memref<64x128xf32, #tpu.memory_space<vmem>>) attributes {dimension_semantics = [#tpu.dimension_semantics<parallel>, #tpu.dimension_semantics<parallel>, #tpu.dimension_semantics<arbitrary>], iteration_bounds = array<i64: 1, 2, 1>, scalar_prefetch = 0 : i64, scratch_operands = 1 : i64, tpu.core_type = #tpu.core_type<tc>, window_params = [{transform_indices = @transform_0, window_bounds = array<i64: 64, 128>}, {transform_indices = @transform_1, window_bounds = array<i64: 128, 128>}, {transform_indices = @transform_2, window_bounds = array<i64: 1, 128>}, {transform_indices = @transform_3, window_bounds = array<i64: 64, 128>}, {transform_indices = @transform_4, window_bounds = array<i64: 64, 128>}]} {
    %c0 = arith.constant 0 : index
    %c0_0 = arith.constant 0 : index
    %0 = vector.load %arg3[%c0, %c0_0] : memref<64x128xbf16, #tpu.memory_space<vmem>>, vector<64x128xbf16>
    %c0_1 = arith.constant 0 : index
    %c0_2 = arith.constant 0 : index
    %1 = vector.load %arg4[%c0_1, %c0_2] : memref<128x128xbf16, #tpu.memory_space<vmem>>, vector<128x128xbf16>
    %cst = arith.constant dense<0.000000e+00> : vector<64x128xf32>
    %2 = tpu.matmul %0, %1, %cst {dimension_numbers = #tpu.dot_dimension_numbers<[1], [0], [0], [1], [0, 0, 1, 1], [], []>} : vector<64x128xbf16>, vector<128x128xbf16>, vector<64x128xf32> -> vector<64x128xf32>
    %c0_3 = arith.constant 0 : index
    %c0_4 = arith.constant 0 : index
    %3 = vector.load %arg5[%c0_3, %c0_4] : memref<1x128xf32, #tpu.memory_space<vmem>>, vector<1x128xf32>
    %4 = vector.broadcast %3 : vector<1x128xf32> to vector<64x128xf32>
    %5 = arith.addf %2, %4 : vector<64x128xf32>
    %c0_5 = arith.constant 0 : index
    %c0_6 = arith.constant 0 : index
    %6 = vector.load %arg6[%c0_5, %c0_6] : memref<64x128xbf16, #tpu.memory_space<vmem>>, vector<64x128xbf16>
    %7 = arith.extf %6 : vector<64x128xbf16> to vector<64x128xf32>
    %8 = arith.addf %5, %7 : vector<64x128xf32>
    %cst_7 = arith.constant 0.000000e+00 : f32
    %9 = vector.broadcast %cst_7 : f32 to vector<64x128xf32>
    %10 = arith.maximumf %8, %9 : vector<64x128xf32>
    %11 = arith.truncf %10 : vector<64x128xf32> to vector<64x128xbf16>
    %c0_8 = arith.constant 0 : index
    %c0_9 = arith.constant 0 : index
    %12 = vector.load %arg7[%c0_8, %c0_9] : memref<64x128xbf16, #tpu.memory_space<vmem>>, vector<64x128xbf16>
    tpu.vector_store %arg7[%c0_8, %c0_9], %11 {strides = array<i32>} : memref<64x128xbf16, #tpu.memory_space<vmem>>, vector<64x128xbf16>,
    return
  }
  func.func @transform_0(%arg0: i32, %arg1: i32, %arg2: i32) -> (i32, i32) {
    %c0_i32 = arith.constant 0 : i32
    return %arg0, %arg2 : i32, i32
  }
  func.func @transform_1(%arg0: i32, %arg1: i32, %arg2: i32) -> (i32, i32) {
    %c0_i32 = arith.constant 0 : i32
    return %arg2, %arg1 : i32, i32
  }
  func.func @transform_2(%arg0: i32, %arg1: i32, %arg2: i32) -> (i32, i32) {
    %c0_i32 = arith.constant 0 : i32
    %c0_i32_0 = arith.constant 0 : i32
    return %c0_i32, %arg1 : i32, i32
  }
  func.func @transform_3(%arg0: i32, %arg1: i32, %arg2: i32) -> (i32, i32) {
    %c0_i32 = arith.constant 0 : i32
    return %arg0, %arg1 : i32, i32
  }
  func.func @transform_4(%arg0: i32, %arg1: i32, %arg2: i32) -> (i32, i32) {
    %c0_i32 = arith.constant 0 : i32
    return %arg0, %arg1 : i32, i32
  }
}

module attributes {stable_mosaic.version = 11 : i64} {
  func.func @_fused_matmul_kernel(%arg0: i32, %arg1: i32, %arg2: i32, %arg3: memref<32x256xbf16, #tpu.memory_space<vmem>>, %arg4: memref<256x128xbf16, #tpu.memory_space<vmem>>, %arg5: memref<1x128xf32, #tpu.memory_space<vmem>>, %arg6: memref<32x128xbf16, #tpu.memory_space<vmem>>, %arg7: memref<32x128xf32, #tpu.memory_space<vmem>>) attributes {dimension_semantics = [#tpu.dimension_semantics<parallel>, #tpu.dimension_semantics<parallel>, #tpu.dimension_semantics<arbitrary>], iteration_bounds = array<i64: 2, 1, 1>, scalar_prefetch = 0 : i64, scratch_operands = 1 : i64, tpu.core_type = #tpu.core_type<tc>, window_params = [{transform_indices = @transform_0, window_bounds = array<i64: 32, 256>}, {transform_indices = @transform_1, window_bounds = array<i64: 256, 128>}, {transform_indices = @transform_2, window_bounds = array<i64: 1, 128>}, {transform_indices = @transform_3, window_bounds = array<i64: 32, 128>}]} {
    %c0 = arith.constant 0 : index
    %c0_0 = arith.constant 0 : index
    %0 = vector.load %arg3[%c0, %c0_0] : memref<32x256xbf16, #tpu.memory_space<vmem>>, vector<32x256xbf16>
    %c0_1 = arith.constant 0 : index
    %c0_2 = arith.constant 0 : index
    %1 = vector.load %arg4[%c0_1, %c0_2] : memref<256x128xbf16, #tpu.memory_space<vmem>>, vector<256x128xbf16>
    %cst = arith.constant dense<0.000000e+00> : vector<32x128xf32>
    %2 = tpu.matmul %0, %1, %cst {dimension_numbers = #tpu.dot_dimension_numbers<[1], [0], [0], [1], [0, 0, 1, 1], [], []>} : vector<32x256xbf16>, vector<256x128xbf16>, vector<32x128xf32> -> vector<32x128xf32>
    %c0_3 = arith.constant 0 : index
    %c0_4 = arith.constant 0 : index
    %3 = vector.load %arg5[%c0_3, %c0_4] : memref<1x128xf32, #tpu.memory_space<vmem>>, vector<1x128xf32>
    %4 = vector.broadcast %3 : vector<1x128xf32> to vector<32x128xf32>
    %5 = arith.addf %2, %4 : vector<32x128xf32>
    %cst_5 = arith.constant 0.000000e+00 : f32
    %6 = vector.broadcast %cst_5 : f32 to vector<32x128xf32>
    %7 = arith.maximumf %5, %6 : vector<32x128xf32>
    %8 = arith.truncf %7 : vector<32x128xf32> to vector<32x128xbf16>
    %c0_6 = arith.constant 0 : index
    %c0_7 = arith.constant 0 : index
    %9 = vector.load %arg6[%c0_6, %c0_7] : memref<32x128xbf16, #tpu.memory_space<vmem>>, vector<32x128xbf16>
    tpu.vector_store %arg6[%c0_6, %c0_7], %8 {strides = array<i32>} : memref<32x128xbf16, #tpu.memory_space<vmem>>, vector<32x128xbf16>,
    return
  }
  func.func @transform_0(%arg0: i32, %arg1: i32, %arg2: i32) -> (i32, i32) {
    %c0_i32 = arith.constant 0 : i32
    return %arg0, %arg2 : i32, i32
  }
  func.func @transform_1(%arg0: i32, %arg1: i32, %arg2: i32) -> (i32, i32) {
    %c0_i32 = arith.constant 0 : i32
    return %arg2, %arg1 : i32, i32
  }
  func.func @transform_2(%arg0: i32, %arg1: i32, %arg2: i32) -> (i32, i32) {
    %c0_i32 = arith.constant 0 : i32
    %c0_i32_0 = arith.constant 0 : i32
    return %c0_i32, %arg1 : i32, i32
  }
  func.func @transform_3(%arg0: i32, %arg1: i32, %arg2: i32) -> (i32, i32) {
    %c0_i32 = arith.constant 0 : i32
    return %arg0, %arg1 : i32, i32
  }
}

module attributes {stable_mosaic.version = 11 : i64} {
  func.func @_fused_matmul_kernel(%arg0: i32, %arg1: i32, %arg2: i32, %arg3: memref<32x256xbf16, #tpu.memory_space<vmem>>, %arg4: memref<256x128xbf16, #tpu.memory_space<vmem>>, %arg5: memref<1x128xf32, #tpu.memory_space<vmem>>, %arg6: memref<32x128xbf16, #tpu.memory_space<vmem>>, %arg7: memref<32x128xf32, #tpu.memory_space<vmem>>) attributes {dimension_semantics = [#tpu.dimension_semantics<parallel>, #tpu.dimension_semantics<parallel>, #tpu.dimension_semantics<arbitrary>], iteration_bounds = array<i64: 2, 1, 1>, scalar_prefetch = 0 : i64, scratch_operands = 1 : i64, tpu.core_type = #tpu.core_type<tc>, window_params = [{transform_indices = @transform_0, window_bounds = array<i64: 32, 256>}, {transform_indices = @transform_1, window_bounds = array<i64: 256, 128>}, {transform_indices = @transform_2, window_bounds = array<i64: 1, 128>}, {transform_indices = @transform_3, window_bounds = array<i64: 32, 128>}]} {
    %c0 = arith.constant 0 : index
    %c0_0 = arith.constant 0 : index
    %0 = vector.load %arg3[%c0, %c0_0] : memref<32x256xbf16, #tpu.memory_space<vmem>>, vector<32x256xbf16>
    %c0_1 = arith.constant 0 : index
    %c0_2 = arith.constant 0 : index
    %1 = vector.load %arg4[%c0_1, %c0_2] : memref<256x128xbf16, #tpu.memory_space<vmem>>, vector<256x128xbf16>
    %cst = arith.constant dense<0.000000e+00> : vector<32x128xf32>
    %2 = tpu.matmul %0, %1, %cst {dimension_numbers = #tpu.dot_dimension_numbers<[1], [0], [0], [1], [0, 0, 1, 1], [], []>} : vector<32x256xbf16>, vector<256x128xbf16>, vector<32x128xf32> -> vector<32x128xf32>
    %c0_3 = arith.constant 0 : index
    %c0_4 = arith.constant 0 : index
    %3 = vector.load %arg5[%c0_3, %c0_4] : memref<1x128xf32, #tpu.memory_space<vmem>>, vector<1x128xf32>
    %4 = vector.broadcast %3 : vector<1x128xf32> to vector<32x128xf32>
    %5 = arith.addf %2, %4 : vector<32x128xf32>
    %cst_5 = arith.constant 0.000000e+00 : f32
    %6 = vector.broadcast %cst_5 : f32 to vector<32x128xf32>
    %7 = arith.maximumf %5, %6 : vector<32x128xf32>
    %8 = arith.truncf %7 : vector<32x128xf32> to vector<32x128xbf16>
    %c0_6 = arith.constant 0 : index
    %c0_7 = arith.constant 0 : index
    %9 = vector.load %arg6[%c0_6, %c0_7] : memref<32x128xbf16, #tpu.memory_space<vmem>>, vector<32x128xbf16>
    tpu.vector_store %arg6[%c0_6, %c0_7], %8 {strides = array<i32>} : memref<32x128xbf16, #tpu.memory_space<vmem>>, vector<32x128xbf16>,
    return
  }
  func.func @transform_0(%arg0: i32, %arg1: i32, %arg2: i32) -> (i32, i32) {
    %c0_i32 = arith.constant 0 : i32
    return %arg0, %arg2 : i32, i32
  }
  func.func @transform_1(%arg0: i32, %arg1: i32, %arg2: i32) -> (i32, i32) {
    %c0_i32 = arith.constant 0 : i32
    return %arg2, %arg1 : i32, i32
  }
  func.func @transform_2(%arg0: i32, %arg1: i32, %arg2: i32) -> (i32, i32) {
    %c0_i32 = arith.constant 0 : i32
    %c0_i32_0 = arith.constant 0 : i32
    return %c0_i32, %arg1 : i32, i32
  }
  func.func @transform_3(%arg0: i32, %arg1: i32, %arg2: i32) -> (i32, i32) {
    %c0_i32 = arith.constant 0 : i32
    return %arg0, %arg1 : i32, i32
  }
}

module attributes {stable_mosaic.version = 11 : i64} {
  func.func @_fused_matmul_kernel(%arg0: i32, %arg1: i32, %arg2: i32, %arg3: memref<16x1152xbf16, #tpu.memory_space<vmem>>, %arg4: memref<1152x128xbf16, #tpu.memory_space<vmem>>, %arg5: memref<1x128xf32, #tpu.memory_space<vmem>>, %arg6: memref<16x128xbf16, #tpu.memory_space<vmem>>, %arg7: memref<16x128xf32, #tpu.memory_space<vmem>>) attributes {dimension_semantics = [#tpu.dimension_semantics<parallel>, #tpu.dimension_semantics<parallel>, #tpu.dimension_semantics<arbitrary>], iteration_bounds = array<i64: 1, 1, 3>, scalar_prefetch = 0 : i64, scratch_operands = 1 : i64, tpu.core_type = #tpu.core_type<tc>, window_params = [{transform_indices = @transform_0, window_bounds = array<i64: 16, 1152>}, {transform_indices = @transform_1, window_bounds = array<i64: 1152, 128>}, {transform_indices = @transform_2, window_bounds = array<i64: 1, 128>}, {transform_indices = @transform_3, window_bounds = array<i64: 16, 128>}]} {
    %c0 = arith.constant 0 : index
    %c0_0 = arith.constant 0 : index
    %0 = vector.load %arg3[%c0, %c0_0] : memref<16x1152xbf16, #tpu.memory_space<vmem>>, vector<16x1152xbf16>
    %c0_1 = arith.constant 0 : index
    %c0_2 = arith.constant 0 : index
    %1 = vector.load %arg4[%c0_1, %c0_2] : memref<1152x128xbf16, #tpu.memory_space<vmem>>, vector<1152x128xbf16>
    %cst = arith.constant dense<0.000000e+00> : vector<16x128xf32>
    %2 = tpu.matmul %0, %1, %cst {dimension_numbers = #tpu.dot_dimension_numbers<[1], [0], [0], [1], [0, 0, 1, 1], [], []>} : vector<16x1152xbf16>, vector<1152x128xbf16>, vector<16x128xf32> -> vector<16x128xf32>
    %c0_i32 = arith.constant 0 : i32
    %3 = arith.cmpi eq, %arg2, %c0_i32 : i32
    %4 = arith.extui %3 : i1 to i32
    %c0_i32_3 = arith.constant 0 : i32
    %5 = arith.cmpi ne, %4, %c0_i32_3 : i32
    scf.if %5 {
      %c0_8 = arith.constant 0 : index
      %c0_9 = arith.constant 0 : index
      %14 = vector.load %arg7[%c0_8, %c0_9] : memref<16x128xf32, #tpu.memory_space<vmem>>, vector<16x128xf32>
      tpu.vector_store %arg7[%c0_8, %c0_9], %2 {strides = array<i32>} : memref<16x128xf32, #tpu.memory_space<vmem>>, vector<16x128xf32>,
    } else {
    }
    %c0_i32_4 = arith.constant 0 : i32
    %6 = arith.cmpi sgt, %arg2, %c0_i32_4 : i32
    %c2_i32 = arith.constant 2 : i32
    %7 = arith.cmpi slt, %arg2, %c2_i32 : i32
    %8 = arith.andi %6, %7 : i1
    %9 = arith.extui %8 : i1 to i32
    %c0_i32_5 = arith.constant 0 : i32
    %10 = arith.cmpi ne, %9, %c0_i32_5 : i32
    scf.if %10 {
      %c0_8 = arith.constant 0 : index
      %c0_9 = arith.constant 0 : index
      %14 = vector.load %arg7[%c0_8, %c0_9] : memref<16x128xf32, #tpu.memory_space<vmem>>, vector<16x128xf32>
      %15 = arith.addf %14, %2 : vector<16x128xf32>
      %c0_10 = arith.constant 0 : index
      %c0_11 = arith.constant 0 : index
      %16 = vector.load %arg7[%c0_10, %c0_11] : memref<16x128xf32, #tpu.memory_space<vmem>>, vector<16x128xf32>
      tpu.vector_store %arg7[%c0_10, %c0_11], %15 {strides = array<i32>} : memref<16x128xf32, #tpu.memory_space<vmem>>, vector<16x128xf32>,
    } else {
    }
    %c2_i32_6 = arith.constant 2 : i32
    %11 = arith.cmpi eq, %arg2, %c2_i32_6 : i32
    %12 = arith.extui %11 : i1 to i32
    %c0_i32_7 = arith.constant 0 : i32
    %13 = arith.cmpi ne, %12, %c0_i32_7 : i32
    scf.if %13 {
      %c0_8 = arith.constant 0 : index
      %c0_9 = arith.constant 0 : index
      %14 = vector.load %arg7[%c0_8, %c0_9] : memref<16x128xf32, #tpu.memory_space<vmem>>, vector<16x128xf32>
      %15 = arith.addf %14, %2 : vector<16x128xf32>
      %c0_10 = arith.constant 0 : index
      %c0_11 = arith.constant 0 : index
      %16 = vector.load %arg5[%c0_10, %c0_11] : memref<1x128xf32, #tpu.memory_space<vmem>>, vector<1x128xf32>
      %17 = vector.broadcast %16 : vector<1x128xf32> to vector<16x128xf32>
      %18 = arith.addf %15, %17 : vector<16x128xf32>
      %cst_12 = arith.constant 0.000000e+00 : f32
      %19 = vector.broadcast %cst_12 : f32 to vector<16x128xf32>
      %20 = arith.maximumf %18, %19 : vector<16x128xf32>
      %21 = arith.truncf %20 : vector<16x128xf32> to vector<16x128xbf16>
      %c0_13 = arith.constant 0 : index
      %c0_14 = arith.constant 0 : index
      %22 = vector.load %arg6[%c0_13, %c0_14] : memref<16x128xbf16, #tpu.memory_space<vmem>>, vector<16x128xbf16>
      tpu.vector_store %arg6[%c0_13, %c0_14], %21 {strides = array<i32>} : memref<16x128xbf16, #tpu.memory_space<vmem>>, vector<16x128xbf16>,
    } else {
    }
    return
  }
  func.func @transform_0(%arg0: i32, %arg1: i32, %arg2: i32) -> (i32, i32) {
    %c0_i32 = arith.constant 0 : i32
    return %arg0, %arg2 : i32, i32
  }
  func.func @transform_1(%arg0: i32, %arg1: i32, %arg2: i32) -> (i32, i32) {
    %c0_i32 = arith.constant 0 : i32
    return %arg2, %arg1 : i32, i32
  }
  func.func @transform_2(%arg0: i32, %arg1: i32, %arg2: i32) -> (i32, i32) {
    %c0_i32 = arith.constant 0 : i32
    %c0_i32_0 = arith.constant 0 : i32
    return %c0_i32, %arg1 : i32, i32
  }
  func.func @transform_3(%arg0: i32, %arg1: i32, %arg2: i32) -> (i32, i32) {
    %c0_i32 = arith.constant 0 : i32
    return %arg0, %arg1 : i32, i32
  }
}

module attributes {stable_mosaic.version = 11 : i64} {
  func.func @_fused_matmul_kernel(%arg0: i32, %arg1: i32, %arg2: i32, %arg3: memref<16x256xbf16, #tpu.memory_space<vmem>>, %arg4: memref<256x256xbf16, #tpu.memory_space<vmem>>, %arg5: memref<1x256xf32, #tpu.memory_space<vmem>>, %arg6: memref<16x256xbf16, #tpu.memory_space<vmem>>, %arg7: memref<16x256xf32, #tpu.memory_space<vmem>>) attributes {dimension_semantics = [#tpu.dimension_semantics<parallel>, #tpu.dimension_semantics<parallel>, #tpu.dimension_semantics<arbitrary>], iteration_bounds = array<i64: 1, 2, 1>, scalar_prefetch = 0 : i64, scratch_operands = 1 : i64, tpu.core_type = #tpu.core_type<tc>, window_params = [{transform_indices = @transform_0, window_bounds = array<i64: 16, 256>}, {transform_indices = @transform_1, window_bounds = array<i64: 256, 256>}, {transform_indices = @transform_2, window_bounds = array<i64: 1, 256>}, {transform_indices = @transform_3, window_bounds = array<i64: 16, 256>}]} {
    %c0 = arith.constant 0 : index
    %c0_0 = arith.constant 0 : index
    %0 = vector.load %arg3[%c0, %c0_0] : memref<16x256xbf16, #tpu.memory_space<vmem>>, vector<16x256xbf16>
    %c0_1 = arith.constant 0 : index
    %c0_2 = arith.constant 0 : index
    %1 = vector.load %arg4[%c0_1, %c0_2] : memref<256x256xbf16, #tpu.memory_space<vmem>>, vector<256x256xbf16>
    %cst = arith.constant dense<0.000000e+00> : vector<16x256xf32>
    %2 = tpu.matmul %0, %1, %cst {dimension_numbers = #tpu.dot_dimension_numbers<[1], [0], [0], [1], [0, 0, 1, 1], [], []>} : vector<16x256xbf16>, vector<256x256xbf16>, vector<16x256xf32> -> vector<16x256xf32>
    %c0_3 = arith.constant 0 : index
    %c0_4 = arith.constant 0 : index
    %3 = vector.load %arg5[%c0_3, %c0_4] : memref<1x256xf32, #tpu.memory_space<vmem>>, vector<1x256xf32>
    %4 = vector.broadcast %3 : vector<1x256xf32> to vector<16x256xf32>
    %5 = arith.addf %2, %4 : vector<16x256xf32>
    %6 = arith.truncf %5 : vector<16x256xf32> to vector<16x256xbf16>
    %c0_5 = arith.constant 0 : index
    %c0_6 = arith.constant 0 : index
    %7 = vector.load %arg6[%c0_5, %c0_6] : memref<16x256xbf16, #tpu.memory_space<vmem>>, vector<16x256xbf16>
    tpu.vector_store %arg6[%c0_5, %c0_6], %6 {strides = array<i32>} : memref<16x256xbf16, #tpu.memory_space<vmem>>, vector<16x256xbf16>,
    return
  }
  func.func @transform_0(%arg0: i32, %arg1: i32, %arg2: i32) -> (i32, i32) {
    %c0_i32 = arith.constant 0 : i32
    return %arg0, %arg2 : i32, i32
  }
  func.func @transform_1(%arg0: i32, %arg1: i32, %arg2: i32) -> (i32, i32) {
    %c0_i32 = arith.constant 0 : i32
    return %arg2, %arg1 : i32, i32
  }
  func.func @transform_2(%arg0: i32, %arg1: i32, %arg2: i32) -> (i32, i32) {
    %c0_i32 = arith.constant 0 : i32
    %c0_i32_0 = arith.constant 0 : i32
    return %c0_i32, %arg1 : i32, i32
  }
  func.func @transform_3(%arg0: i32, %arg1: i32, %arg2: i32) -> (i32, i32) {
    %c0_i32 = arith.constant 0 : i32
    return %arg0, %arg1 : i32, i32
  }
}

module attributes {stable_mosaic.version = 11 : i64} {
  func.func @_fused_matmul_kernel(%arg0: i32, %arg1: i32, %arg2: i32, %arg3: memref<16x128xbf16, #tpu.memory_space<vmem>>, %arg4: memref<128x256xbf16, #tpu.memory_space<vmem>>, %arg5: memref<1x256xf32, #tpu.memory_space<vmem>>, %arg6: memref<16x256xbf16, #tpu.memory_space<vmem>>, %arg7: memref<16x256xbf16, #tpu.memory_space<vmem>>, %arg8: memref<16x256xf32, #tpu.memory_space<vmem>>) attributes {dimension_semantics = [#tpu.dimension_semantics<parallel>, #tpu.dimension_semantics<parallel>, #tpu.dimension_semantics<arbitrary>], iteration_bounds = array<i64: 1, 2, 1>, scalar_prefetch = 0 : i64, scratch_operands = 1 : i64, tpu.core_type = #tpu.core_type<tc>, window_params = [{transform_indices = @transform_0, window_bounds = array<i64: 16, 128>}, {transform_indices = @transform_1, window_bounds = array<i64: 128, 256>}, {transform_indices = @transform_2, window_bounds = array<i64: 1, 256>}, {transform_indices = @transform_3, window_bounds = array<i64: 16, 256>}, {transform_indices = @transform_4, window_bounds = array<i64: 16, 256>}]} {
    %c0 = arith.constant 0 : index
    %c0_0 = arith.constant 0 : index
    %0 = vector.load %arg3[%c0, %c0_0] : memref<16x128xbf16, #tpu.memory_space<vmem>>, vector<16x128xbf16>
    %c0_1 = arith.constant 0 : index
    %c0_2 = arith.constant 0 : index
    %1 = vector.load %arg4[%c0_1, %c0_2] : memref<128x256xbf16, #tpu.memory_space<vmem>>, vector<128x256xbf16>
    %cst = arith.constant dense<0.000000e+00> : vector<16x256xf32>
    %2 = tpu.matmul %0, %1, %cst {dimension_numbers = #tpu.dot_dimension_numbers<[1], [0], [0], [1], [0, 0, 1, 1], [], []>} : vector<16x128xbf16>, vector<128x256xbf16>, vector<16x256xf32> -> vector<16x256xf32>
    %c0_3 = arith.constant 0 : index
    %c0_4 = arith.constant 0 : index
    %3 = vector.load %arg5[%c0_3, %c0_4] : memref<1x256xf32, #tpu.memory_space<vmem>>, vector<1x256xf32>
    %4 = vector.broadcast %3 : vector<1x256xf32> to vector<16x256xf32>
    %5 = arith.addf %2, %4 : vector<16x256xf32>
    %c0_5 = arith.constant 0 : index
    %c0_6 = arith.constant 0 : index
    %6 = vector.load %arg6[%c0_5, %c0_6] : memref<16x256xbf16, #tpu.memory_space<vmem>>, vector<16x256xbf16>
    %7 = arith.extf %6 : vector<16x256xbf16> to vector<16x256xf32>
    %8 = arith.addf %5, %7 : vector<16x256xf32>
    %cst_7 = arith.constant 0.000000e+00 : f32
    %9 = vector.broadcast %cst_7 : f32 to vector<16x256xf32>
    %10 = arith.maximumf %8, %9 : vector<16x256xf32>
    %11 = arith.truncf %10 : vector<16x256xf32> to vector<16x256xbf16>
    %c0_8 = arith.constant 0 : index
    %c0_9 = arith.constant 0 : index
    %12 = vector.load %arg7[%c0_8, %c0_9] : memref<16x256xbf16, #tpu.memory_space<vmem>>, vector<16x256xbf16>
    tpu.vector_store %arg7[%c0_8, %c0_9], %11 {strides = array<i32>} : memref<16x256xbf16, #tpu.memory_space<vmem>>, vector<16x256xbf16>,
    return
  }
  func.func @transform_0(%arg0: i32, %arg1: i32, %arg2: i32) -> (i32, i32) {
    %c0_i32 = arith.constant 0 : i32
    return %arg0, %arg2 : i32, i32
  }
  func.func @transform_1(%arg0: i32, %arg1: i32, %arg2: i32) -> (i32, i32) {
    %c0_i32 = arith.constant 0 : i32
    return %arg2, %arg1 : i32, i32
  }
  func.func @transform_2(%arg0: i32, %arg1: i32, %arg2: i32) -> (i32, i32) {
    %c0_i32 = arith.constant 0 : i32
    %c0_i32_0 = arith.constant 0 : i32
    return %c0_i32, %arg1 : i32, i32
  }
  func.func @transform_3(%arg0: i32, %arg1: i32, %arg2: i32) -> (i32, i32) {
    %c0_i32 = arith.constant 0 : i32
    return %arg0, %arg1 : i32, i32
  }
  func.func @transform_4(%arg0: i32, %arg1: i32, %arg2: i32) -> (i32, i32) {
    %c0_i32 = arith.constant 0 : i32
    return %arg0, %arg1 : i32, i32
  }
}

module attributes {stable_mosaic.version = 11 : i64} {
  func.func @_fused_matmul_kernel(%arg0: i32, %arg1: i32, %arg2: i32, %arg3: memref<16x512xbf16, #tpu.memory_space<vmem>>, %arg4: memref<512x128xbf16, #tpu.memory_space<vmem>>, %arg5: memref<1x128xf32, #tpu.memory_space<vmem>>, %arg6: memref<16x128xbf16, #tpu.memory_space<vmem>>, %arg7: memref<16x128xf32, #tpu.memory_space<vmem>>) attributes {dimension_semantics = [#tpu.dimension_semantics<parallel>, #tpu.dimension_semantics<parallel>, #tpu.dimension_semantics<arbitrary>], iteration_bounds = array<i64: 1, 1, 1>, scalar_prefetch = 0 : i64, scratch_operands = 1 : i64, tpu.core_type = #tpu.core_type<tc>, window_params = [{transform_indices = @transform_0, window_bounds = array<i64: 16, 512>}, {transform_indices = @transform_1, window_bounds = array<i64: 512, 128>}, {transform_indices = @transform_2, window_bounds = array<i64: 1, 128>}, {transform_indices = @transform_3, window_bounds = array<i64: 16, 128>}]} {
    %c0 = arith.constant 0 : index
    %c0_0 = arith.constant 0 : index
    %0 = vector.load %arg3[%c0, %c0_0] : memref<16x512xbf16, #tpu.memory_space<vmem>>, vector<16x512xbf16>
    %c0_1 = arith.constant 0 : index
    %c0_2 = arith.constant 0 : index
    %1 = vector.load %arg4[%c0_1, %c0_2] : memref<512x128xbf16, #tpu.memory_space<vmem>>, vector<512x128xbf16>
    %cst = arith.constant dense<0.000000e+00> : vector<16x128xf32>
    %2 = tpu.matmul %0, %1, %cst {dimension_numbers = #tpu.dot_dimension_numbers<[1], [0], [0], [1], [0, 0, 1, 1], [], []>} : vector<16x512xbf16>, vector<512x128xbf16>, vector<16x128xf32> -> vector<16x128xf32>
    %c0_3 = arith.constant 0 : index
    %c0_4 = arith.constant 0 : index
    %3 = vector.load %arg5[%c0_3, %c0_4] : memref<1x128xf32, #tpu.memory_space<vmem>>, vector<1x128xf32>
    %4 = vector.broadcast %3 : vector<1x128xf32> to vector<16x128xf32>
    %5 = arith.addf %2, %4 : vector<16x128xf32>
    %cst_5 = arith.constant 0.000000e+00 : f32
    %6 = vector.broadcast %cst_5 : f32 to vector<16x128xf32>
    %7 = arith.maximumf %5, %6 : vector<16x128xf32>
    %8 = arith.truncf %7 : vector<16x128xf32> to vector<16x128xbf16>
    %c0_6 = arith.constant 0 : index
    %c0_7 = arith.constant 0 : index
    %9 = vector.load %arg6[%c0_6, %c0_7] : memref<16x128xbf16, #tpu.memory_space<vmem>>, vector<16x128xbf16>
    tpu.vector_store %arg6[%c0_6, %c0_7], %8 {strides = array<i32>} : memref<16x128xbf16, #tpu.memory_space<vmem>>, vector<16x128xbf16>,
    return
  }
  func.func @transform_0(%arg0: i32, %arg1: i32, %arg2: i32) -> (i32, i32) {
    %c0_i32 = arith.constant 0 : i32
    return %arg0, %arg2 : i32, i32
  }
  func.func @transform_1(%arg0: i32, %arg1: i32, %arg2: i32) -> (i32, i32) {
    %c0_i32 = arith.constant 0 : i32
    return %arg2, %arg1 : i32, i32
  }
  func.func @transform_2(%arg0: i32, %arg1: i32, %arg2: i32) -> (i32, i32) {
    %c0_i32 = arith.constant 0 : i32
    %c0_i32_0 = arith.constant 0 : i32
    return %c0_i32, %arg1 : i32, i32
  }
  func.func @transform_3(%arg0: i32, %arg1: i32, %arg2: i32) -> (i32, i32) {
    %c0_i32 = arith.constant 0 : i32
    return %arg0, %arg1 : i32, i32
  }
}

module attributes {stable_mosaic.version = 11 : i64} {
  func.func @_fused_matmul_kernel(%arg0: i32, %arg1: i32, %arg2: i32, %arg3: memref<16x512xbf16, #tpu.memory_space<vmem>>, %arg4: memref<512x128xbf16, #tpu.memory_space<vmem>>, %arg5: memref<1x128xf32, #tpu.memory_space<vmem>>, %arg6: memref<16x128xbf16, #tpu.memory_space<vmem>>, %arg7: memref<16x128xf32, #tpu.memory_space<vmem>>) attributes {dimension_semantics = [#tpu.dimension_semantics<parallel>, #tpu.dimension_semantics<parallel>, #tpu.dimension_semantics<arbitrary>], iteration_bounds = array<i64: 1, 2, 1>, scalar_prefetch = 0 : i64, scratch_operands = 1 : i64, tpu.core_type = #tpu.core_type<tc>, window_params = [{transform_indices = @transform_0, window_bounds = array<i64: 16, 512>}, {transform_indices = @transform_1, window_bounds = array<i64: 512, 128>}, {transform_indices = @transform_2, window_bounds = array<i64: 1, 128>}, {transform_indices = @transform_3, window_bounds = array<i64: 16, 128>}]} {
    %c0 = arith.constant 0 : index
    %c0_0 = arith.constant 0 : index
    %0 = vector.load %arg3[%c0, %c0_0] : memref<16x512xbf16, #tpu.memory_space<vmem>>, vector<16x512xbf16>
    %c0_1 = arith.constant 0 : index
    %c0_2 = arith.constant 0 : index
    %1 = vector.load %arg4[%c0_1, %c0_2] : memref<512x128xbf16, #tpu.memory_space<vmem>>, vector<512x128xbf16>
    %cst = arith.constant dense<0.000000e+00> : vector<16x128xf32>
    %2 = tpu.matmul %0, %1, %cst {dimension_numbers = #tpu.dot_dimension_numbers<[1], [0], [0], [1], [0, 0, 1, 1], [], []>} : vector<16x512xbf16>, vector<512x128xbf16>, vector<16x128xf32> -> vector<16x128xf32>
    %c0_3 = arith.constant 0 : index
    %c0_4 = arith.constant 0 : index
    %3 = vector.load %arg5[%c0_3, %c0_4] : memref<1x128xf32, #tpu.memory_space<vmem>>, vector<1x128xf32>
    %4 = vector.broadcast %3 : vector<1x128xf32> to vector<16x128xf32>
    %5 = arith.addf %2, %4 : vector<16x128xf32>
    %cst_5 = arith.constant 0.000000e+00 : f32
    %6 = vector.broadcast %cst_5 : f32 to vector<16x128xf32>
    %7 = arith.maximumf %5, %6 : vector<16x128xf32>
    %8 = arith.truncf %7 : vector<16x128xf32> to vector<16x128xbf16>
    %c0_6 = arith.constant 0 : index
    %c0_7 = arith.constant 0 : index
    %9 = vector.load %arg6[%c0_6, %c0_7] : memref<16x128xbf16, #tpu.memory_space<vmem>>, vector<16x128xbf16>
    tpu.vector_store %arg6[%c0_6, %c0_7], %8 {strides = array<i32>} : memref<16x128xbf16, #tpu.memory_space<vmem>>, vector<16x128xbf16>,
    return
  }
  func.func @transform_0(%arg0: i32, %arg1: i32, %arg2: i32) -> (i32, i32) {
    %c0_i32 = arith.constant 0 : i32
    return %arg0, %arg2 : i32, i32
  }
  func.func @transform_1(%arg0: i32, %arg1: i32, %arg2: i32) -> (i32, i32) {
    %c0_i32 = arith.constant 0 : i32
    return %arg2, %arg1 : i32, i32
  }
  func.func @transform_2(%arg0: i32, %arg1: i32, %arg2: i32) -> (i32, i32) {
    %c0_i32 = arith.constant 0 : i32
    %c0_i32_0 = arith.constant 0 : i32
    return %c0_i32, %arg1 : i32, i32
  }
  func.func @transform_3(%arg0: i32, %arg1: i32, %arg2: i32) -> (i32, i32) {
    %c0_i32 = arith.constant 0 : i32
    return %arg0, %arg1 : i32, i32
  }
}

</mosaic_0001>

<bundles_post_ra>
// kernel: mil_forward.25
= control target key start
LH: loop header
LB: loop body
LE: loop exit
PB: predicated region body
PF: predicated region fallthrough
CT: control target
= control target key end

     0   :  { %s1822_s12 = smov 0   ;;  %s1824_s13 = smov 0   ;;  %s2183_s0 = inlined_call_operand.vmem [shape: bf16[512,384], index: 0, kind: input, shape index: {}]   ;;  %s2184_s1 = inlined_call_operand.vmem [shape: bf16[384,128], index: 1, kind: input, shape index: {}]   ;;  %s2185_s2 = inlined_call_operand.vmem [shape: f32[1,128], index: 2, kind: input, shape index: {}]   ;;  %s2186_s3 = inlined_call_operand.vmem [shape: bf16[512,128], index: 3, kind: output, shape index: {}]  }
   0x1   :  { %s1826_s14 = smov 0  }
   0x2 LB: > { %s32_s15 = sadd.s32 1, %s1796_s13  ;;  %p1266_p0 = scmp.ge.s32.totalorder %s1800_s14, 1  ;;  %s1800_s14 = sphi %s1826_s14, %s13_s14   ;;  %s1796_s13 = sphi %s1824_s13, %s2188_s13   ;;  %s1792_s12 = sphi %s1822_s12, %s2187_s12  }
   0x3   : > { %p34_p1 = scmp.ge.s32.totalorder %s32_s15, 2  ;;  %p191_p2 = scmp.lt.s32.totalorder %s1800_s14, 3 }
   0x5   : > { %s2190_s15 = smov (%p34_p1, %s32_s15), 0  ;;  %p192_p3 = pnand %p1266_p0, %p191_p2 }
   0x6   : > { %s1267_s7 = sshll.u32 (!%p192_p3), %s1792_s12, 5 }
   0x7   : > { %195 = sbr.rel (%p192_p3) target bundleno = 369 (0x171), region = 32  ;;  %p236_p4 = scmp.lt.s32.totalorder (!%p192_p3), %s1267_s7, 63 }
   0xc   : > { %v1616_v0 = vld [vmem:[%s2184_s1 + $0x38] sm:$0xff]  ;;  %v1615_v3 = vld [vmem:[%s2184_s1 + $0x30] sm:$0xff]  ;;  %v1614_v6 = vld [vmem:[%s2184_s1 + $0x28] sm:$0xff]  ;;  %s2192_s7 = smov (!%p236_p4, %s1267_s7), 63 }
   0xd   : > { %v1848_v1 = vld [vmem:[%s2184_s1 + $0x78] sm:$0xff]  ;;  %783 = vmatpush.bf16.msra.mxu0 %v1616_v0  ;;  %1728 = vmatpush.bf16.msra.mxu3 %v1616_v0  ;;  %v1863_v4 = vld [vmem:[%s2184_s1 + $0x70] sm:$0xff]  ;;  %v1878_v7 = vld [vmem:[%s2184_s1 + $0x68] sm:$0xff]  ;;  %s1752_s25 = smul.u32 12, %s2192_s7  ;;  %s1270_s24 = sshll.u32 %s2192_s7, 2 }
   0xe   : > { %v1853_v2 = vld [vmem:[%s2184_s1 + $0xb8] sm:$0xff]  ;;  %872 = vmatpush.bf16.msra.mxu1 %v1848_v1  ;;  %v1868_v5 = vld [vmem:[%s2184_s1 + $0xb0] sm:$0xff]  ;;  %v1883_v8 = vld [vmem:[%s2184_s1 + $0xa8] sm:$0xff]  ;;  %s2066_s27 = scalar_lea.vmem %s2186_s3, %s1270_s24 }
   0xf   : > { %961 = vmatpush.bf16.msra.mxu2 %v1853_v2  ;;  %v1613_v9 = vld [vmem:[%s2184_s1 + $0x20] sm:$0xff]  ;;  %v1612_v12 = vld [vmem:[%s2184_s1 + $0x18] sm:$0xff]  ;;  %v1611_v15 = vld [vmem:[%s2184_s1 + $0x10] sm:$0xff]  ;;  %s1935_s8 = scalar_lea.vmem %s2183_s0, %s1752_s25 }
  0x10   : > { %v1894_v10 = vld [vmem:[%s2184_s1 + $0x60] sm:$0xff]  ;;  %v1620_v13 = vld [vmem:[%s2184_s1 + $0x58] sm:$0xff]  ;;  %v1619_v16 = vld [vmem:[%s2184_s1 + $0x50] sm:$0xff] }
  0x11   : > { %784 = vmatpush.bf16.msra.mxu0 %v1615_v3  ;;  %1729 = vmatpush.bf16.msra.mxu3 %v1615_v3  ;;  %v1899_v11 = vld [vmem:[%s2184_s1 + $0xa0] sm:$0xff]  ;;  %v1914_v14 = vld [vmem:[%s2184_s1 + $0x98] sm:$0xff]  ;;  %v1927_v17 = vld [vmem:[%s2184_s1 + $0x90] sm:$0xff] }
  0x12   : > { %873 = vmatpush.bf16.msra.mxu1 %v1863_v4  ;;  %v1610_v18 = vld [vmem:[%s2184_s1 + $0x8] sm:$0xff]  ;;  %v1609_v21 = vld [vmem:[%s2184_s1] sm:$0xff]  ;;  %v1275_v29 = vld [vmem:[%s1935_s8 + $0xc] sm:$0xf0] }
  0x13   : > { %962 = vmatpush.bf16.msra.mxu2 %v1868_v5  ;;  %v1618_v19 = vld [vmem:[%s2184_s1 + $0x48] sm:$0xff]  ;;  %v1617_v22 = vld [vmem:[%s2184_s1 + $0x40] sm:$0xff]  ;;  %v1563_v31 = vld [vmem:[%s1935_s8 + $0x10] sm:$0xf0] }
  0x14   : > { %v1944_v20 = vld [vmem:[%s2184_s1 + $0x88] sm:$0xff]  ;;  %v1955_v23 = vld [vmem:[%s2184_s1 + $0x80] sm:$0xff]  ;;  %v1285_v36 = vld [vmem:[%s1935_s8 + $0x18] sm:$0xf] }
  0x15   : > { %785 = vmatpush.bf16.msra.mxu0 %v1614_v6  ;;  %1730 = vmatpush.bf16.msra.mxu3 %v1614_v6  ;;  %v1273_v24 = vld [vmem:[%s1935_s8] sm:$0xf]  ;;  %v1562_v25 = vld [vmem:[%s1935_s8 + $0x8] sm:$0xf0]  ;;  %v1561_v28 = vld [vmem:[%s1935_s8 + $0x4] sm:$0xf] }
  0x16   : > { %874 = vmatpush.bf16.msra.mxu1 %v1878_v7  ;;  %v1417_v26 = vld [vmem:[%s1935_s8 + $0x120] sm:$0xf]  ;;  %v1598_v27 = vld [vmem:[%s1935_s8 + $0x128] sm:$0xf0]  ;;  %v1281_v30 = vld [vmem:[%s1935_s8 + $0x8] sm:$0xf]  ;;  %v1274_v32 = vor.u32 %v1562_v25, %v1273_v24  ;;  %v1278_v34 = vor.u32 %v1561_v28, %v1275_v29 }
  0x17   : > { %963 = vmatpush.bf16.msra.mxu2 %v1883_v8  ;;  %v1418_v33 = vor.u32 %v1598_v27, %v1417_v26  ;;  %v1282_v35 = vor.u32 %v1563_v31, %v1281_v30  ;;  %v1565_v37 = vld [vmem:[%s1935_s8 + $0x20] sm:$0xf0]  ;;  %v1429_v38 = vld [vmem:[%s1935_s8 + $0x138] sm:$0xf]  ;;  %v1564_v40 = vld [vmem:[%s1935_s8 + $0x1c] sm:$0xf] }
  0x18   : > { %v1601_v39 = vld [vmem:[%s1935_s8 + $0x140] sm:$0xf0]  ;;  %v1287_v41 = vld [vmem:[%s1935_s8 + $0x24] sm:$0xf0]  ;;  %v1293_v42 = vld [vmem:[%s1935_s8 + $0x20] sm:$0xf]  ;;  %v1286_v44 = vor.u32 %v1565_v37, %v1285_v36 }
  0x19   : > { %786 = vmatpush.bf16.msra.mxu0 %v1613_v9  ;;  %1731 = vmatpush.bf16.msra.mxu3 %v1613_v9  ;;  %v1566_v43 = vld [vmem:[%s1935_s8 + $0x28] sm:$0xf0]  ;;  %v1430_v45 = vor.u32 %v1601_v39, %v1429_v38  ;;  %v1290_v46 = vor.u32 %v1564_v40, %v1287_v41  ;;  %v1297_v48 = vld [vmem:[%s1935_s8 + $0x30] sm:$0xf]  ;;  %v1568_v49 = vld [vmem:[%s1935_s8 + $0x38] sm:$0xf0] }
  0x1a   : > { %875 = vmatpush.bf16.msra.mxu1 %v1894_v10  ;;  %v1294_v47 = vor.u32 %v1566_v43, %v1293_v42  ;;  %v1441_v50 = vld [vmem:[%s1935_s8 + $0x150] sm:$0xf]  ;;  %v1604_v51 = vld [vmem:[%s1935_s8 + $0x158] sm:$0xf0]  ;;  %v1567_v52 = vld [vmem:[%s1935_s8 + $0x34] sm:$0xf]  ;;  %v1298_v56 = vor.u32 %v1568_v49, %v1297_v48 }
  0x1b   : > { %964 = vmatpush.bf16.msra.mxu2 %v1899_v11  ;;  %v1299_v53 = vld [vmem:[%s1935_s8 + $0x3c] sm:$0xf0]  ;;  %v1305_v54 = vld [vmem:[%s1935_s8 + $0x38] sm:$0xf]  ;;  %v1569_v55 = vld [vmem:[%s1935_s8 + $0x40] sm:$0xf0]  ;;  %v1442_v57 = vor.u32 %v1604_v51, %v1441_v50 }
  0x1c   : > { %v1302_v58 = vor.u32 %v1567_v52, %v1299_v53  ;;  %v1306_v59 = vor.u32 %v1569_v55, %v1305_v54  ;;  %v1309_v60 = vld [vmem:[%s1935_s8 + $0x48] sm:$0xf]  ;;  %v1571_v61 = vld [vmem:[%s1935_s8 + $0x50] sm:$0xf0]  ;;  %v1570_v0 = vld [vmem:[%s1935_s8 + $0x4c] sm:$0xf] }
  0x1d   : > { %787 = vmatpush.bf16.msra.mxu0 %v1612_v12  ;;  %1732 = vmatpush.bf16.msra.mxu3 %v1612_v12  ;;  %v1453_v62 = vld [vmem:[%s1935_s8 + $0x168] sm:$0xf]  ;;  %v1607_v63 = vld [vmem:[%s1935_s8 + $0x170] sm:$0xf0]  ;;  %v1572_v3 = vld [vmem:[%s1935_s8 + $0x58] sm:$0xf0] }
  0x1e   : > { %876 = vmatpush.bf16.msra.mxu1 %v1620_v13  ;;  %v1574_v9 = vld [vmem:[%s1935_s8 + $0x68] sm:$0xf0]  ;;  %v1419_v12 = vld [vmem:[%s1935_s8 + $0x12c] sm:$0xf0]  ;;  %v1600_v24 = vld [vmem:[%s1935_s8 + $0x13c] sm:$0xf] }
  0x1f   : > { %965 = vmatpush.bf16.msra.mxu2 %v1914_v14  ;;  %v1431_v25 = vld [vmem:[%s1935_s8 + $0x144] sm:$0xf0]  ;;  %v1341_v26 = vld [vmem:[%s1935_s8 + $0x80] sm:$0xf]  ;;  %v1578_v27 = vld [vmem:[%s1935_s8 + $0x88] sm:$0xf0] }
  0x20   : > { %v1434_v29 = vor.u32 %v1600_v24, %v1431_v25  ;;  %v1342_v31 = vor.u32 %v1578_v27, %v1341_v26  ;;  %v1443_v36 = vld [vmem:[%s1935_s8 + $0x15c] sm:$0xf0]  ;;  %v1353_v38 = vld [vmem:[%s1935_s8 + $0x98] sm:$0xf]  ;;  %v1581_v39 = vld [vmem:[%s1935_s8 + $0xa0] sm:$0xf0] }
  0x21   : > { %788 = vmatpush.bf16.msra.mxu0 %v1611_v15  ;;  %1733 = vmatpush.bf16.msra.mxu3 %v1611_v15  ;;  %v1575_v15 = vld [vmem:[%s1935_s8 + $0x70] sm:$0xf0]  ;;  %v1347_v37 = vld [vmem:[%s1935_s8 + $0x9c] sm:$0xf0]  ;;  %v1354_v43 = vor.u32 %v1581_v39, %v1353_v38  ;;  %v1455_v48 = vld [vmem:[%s1935_s8 + $0x174] sm:$0xf0] }
  0x22   : > { %877 = vmatpush.bf16.msra.mxu1 %v1619_v16  ;;  %v1359_v49 = vld [vmem:[%s1935_s8 + $0xb4] sm:$0xf0]  ;;  %v1365_v50 = vld [vmem:[%s1935_s8 + $0xb0] sm:$0xf]  ;;  %v1584_v51 = vld [vmem:[%s1935_s8 + $0xb8] sm:$0xf0] }
  0x23   : > { %966 = vmatpush.bf16.msra.mxu2 %v1927_v17  ;;  %v1366_v55 = vor.u32 %v1584_v51, %v1365_v50  ;;  %v1593_v50 = vld [vmem:[%s1935_s8 + $0x100] sm:$0xf0] }
  0x25   : > { %789 = vmatpush.bf16.msra.mxu0 %v1610_v18  ;;  %1734 = vmatpush.bf16.msra.mxu3 %v1610_v18 }
  0x26   : > { %878 = vmatpush.bf16.msra.mxu1 %v1618_v19 }
  0x27   : > { %967 = vmatpush.bf16.msra.mxu2 %v1944_v20 }
  0x29   : > { %790 = vmatpush.bf16.msra.mxu0 %v1609_v21  ;;  %1735 = vmatpush.bf16.msra.mxu3 %v1609_v21  ;;  %v1577_v21 = vld [vmem:[%s1935_s8 + $0x80] sm:$0xf0] }
  0x2a   : > { %879 = vmatpush.bf16.msra.mxu1 %v1617_v22 }
  0x2b   : > { %968 = vmatpush.bf16.msra.mxu2 %v1955_v23 }
  0x2c   : > { %791 = vmatmul.bf16.vlgmr.msra.gmra.mxu0 %v1274_v32  ;;  %851 = vmatmul.bf16.vlgmr.msra.gmra.mxu3 %v1418_v33  ;;  %v1345_v32 = vld [vmem:[%s1935_s8 + $0x90] sm:$0xf]  ;;  %v1580_v33 = vld [vmem:[%s1935_s8 + $0x98] sm:$0xf0] }
  0x2d   : > { %1736 = vmatpush.bf16.msrb.mxu3 %v1848_v1  ;;  %880 = vmatmul.bf16.vlgmr.msra.gmra.mxu1 %v1278_v34  ;;  %v1311_v1 = vld [vmem:[%s1935_s8 + $0x54] sm:$0xf0]  ;;  %v1579_v34 = vld [vmem:[%s1935_s8 + $0x94] sm:$0xf]  ;;  %v1346_v40 = vor.u32 %v1580_v33, %v1345_v32 }
  0x2e   : > { %969 = vmatmul.bf16.vlgmr.msra.gmra.mxu2 %v1282_v35  ;;  %v1314_v6 = vor.u32 %v1570_v0, %v1311_v1  ;;  %v1603_v35 = vld [vmem:[%s1935_s8 + $0x154] sm:$0xf]  ;;  %v1350_v42 = vor.u32 %v1579_v34, %v1347_v37 }
  0x2f   : > { %v1446_v41 = vor.u32 %v1603_v35, %v1443_v36 }
  0x31   : > { %1737 = vmatpush.bf16.msrb.mxu3 %v1863_v4  ;;  %v1310_v4 = vor.u32 %v1571_v61, %v1309_v60  ;;  %v1599_v60 = vld [vmem:[%s1935_s8 + $0x130] sm:$0xf0]  ;;  %v1371_v61 = vld [vmem:[%s1935_s8 + $0xcc] sm:$0xf0] }
  0x35   : > { %1738 = vmatpush.bf16.msrb.mxu3 %v1878_v7 }
  0x39   : > { %1739 = vmatpush.bf16.msrb.mxu3 %v1894_v10  ;;  %v1573_v10 = vld [vmem:[%s1935_s8 + $0x64] sm:$0xf] }
  0x3c   : > { %796 = vmatmul.bf16.gmra.mxu0 %v1286_v44  ;;  %856 = vmatmul.bf16.gmra.mxu3 %v1430_v45  ;;  %v1357_v44 = vld [vmem:[%s1935_s8 + $0xa8] sm:$0xf]  ;;  %v1583_v45 = vld [vmem:[%s1935_s8 + $0xb0] sm:$0xf0] }
  0x3d   : > { %1740 = vmatpush.bf16.msrb.mxu3 %v1620_v13  ;;  %885 = vmatmul.bf16.gmra.mxu1 %v1290_v46  ;;  %v1323_v13 = vld [vmem:[%s1935_s8 + $0x6c] sm:$0xf0]  ;;  %v1582_v46 = vld [vmem:[%s1935_s8 + $0xac] sm:$0xf]  ;;  %v1358_v52 = vor.u32 %v1583_v45, %v1357_v44  ;;  %v1592_v44 = vld [vmem:[%s1935_s8 + $0xf8] sm:$0xf0] }
  0x3e   : > { %974 = vmatmul.bf16.gmra.mxu2 %v1294_v47  ;;  %v1326_v18 = vor.u32 %v1573_v10, %v1323_v13  ;;  %v1606_v47 = vld [vmem:[%s1935_s8 + $0x16c] sm:$0xf]  ;;  %v1362_v54 = vor.u32 %v1582_v46, %v1359_v49  ;;  %v1591_v45 = vld [vmem:[%s1935_s8 + $0xf4] sm:$0xf]  ;;  %v1449_v46 = vld [vmem:[%s1935_s8 + $0x158] sm:$0xf] }
  0x3f   : > { %v1458_v53 = vor.u32 %v1606_v47, %v1455_v48  ;;  %v1605_v47 = vld [vmem:[%s1935_s8 + $0x160] sm:$0xf0]  ;;  %v1395_v48 = vld [vmem:[%s1935_s8 + $0xfc] sm:$0xf0]  ;;  %v1401_v49 = vld [vmem:[%s1935_s8 + $0xf8] sm:$0xf] }
  0x41   : > { %1741 = vmatpush.bf16.msrb.mxu3 %v1619_v16 }
  0x45   : > { %1742 = vmatpush.bf16.msrb.mxu3 %v1618_v19 }
  0x49   : > { %1743 = vmatpush.bf16.msrb.mxu3 %v1617_v22  ;;  %v1576_v22 = vld [vmem:[%s1935_s8 + $0x7c] sm:$0xf] }
  0x4c   : > { %801 = vmatmul.bf16.gmra.mxu0 %v1298_v56  ;;  %861 = vmatmul.bf16.gmra.mxu3 %v1442_v57  ;;  %v1369_v56 = vld [vmem:[%s1935_s8 + $0xc0] sm:$0xf]  ;;  %v1586_v57 = vld [vmem:[%s1935_s8 + $0xc8] sm:$0xf0] }
  0x4d   : > { %1744 = vmatpush.bf16.msra.mxu3 %v1853_v2  ;;  %890 = vmatmul.bf16.gmra.mxu1 %v1302_v58  ;;  %v1317_v2 = vld [vmem:[%s1935_s8 + $0x50] sm:$0xf]  ;;  %v1585_v58 = vld [vmem:[%s1935_s8 + $0xc4] sm:$0xf]  ;;  %v1370_v0 = vor.u32 %v1586_v57, %v1369_v56  ;;  %v1450_v56 = vor.u32 %v1605_v47, %v1449_v46 }
  0x4e   : > { %979 = vmatmul.bf16.gmra.mxu2 %v1306_v59  ;;  %v1318_v7 = vor.u32 %v1572_v3, %v1317_v2  ;;  %v1425_v59 = vld [vmem:[%s1935_s8 + $0x128] sm:$0xf]  ;;  %v1374_v3 = vor.u32 %v1585_v58, %v1371_v61 }
  0x4f   : > { %v1426_v1 = vor.u32 %v1599_v60, %v1425_v59  ;;  %v1398_v59 = vor.u32 %v1591_v45, %v1395_v48  ;;  %v1402_v60 = vor.u32 %v1593_v50, %v1401_v49 }
  0x51   : > { %1745 = vmatpush.bf16.msra.mxu3 %v1868_v5  ;;  %v1454_v5 = vor.u32 %v1607_v63, %v1453_v62  ;;  %v1377_v62 = vld [vmem:[%s1935_s8 + $0xc8] sm:$0xf]  ;;  %v1587_v63 = vld [vmem:[%s1935_s8 + $0xd0] sm:$0xf0] }
  0x55   : > { %1746 = vmatpush.bf16.msra.mxu3 %v1883_v8  ;;  %v1321_v8 = vld [vmem:[%s1935_s8 + $0x60] sm:$0xf] }
  0x56   : > { %v1322_v16 = vor.u32 %v1574_v9, %v1321_v8 }
  0x59   : > { %1747 = vmatpush.bf16.msra.mxu3 %v1899_v11  ;;  %v1597_v11 = vld [vmem:[%s1935_s8 + $0x124] sm:$0xf] }
  0x5c   : > { %806 = vmatmul.bf16.gmra.mxu0 %v1310_v4  ;;  %866 = vmatmul.bf16.gmra.mxu3 %v1454_v5  ;;  %v1378_v4 = vor.u32 %v1587_v63, %v1377_v62 }
  0x5d   : > { %1748 = vmatpush.bf16.msra.mxu3 %v1914_v14  ;;  %895 = vmatmul.bf16.gmra.mxu1 %v1314_v6  ;;  %v1329_v14 = vld [vmem:[%s1935_s8 + $0x68] sm:$0xf]  ;;  %v2046_v6 = vld [vmem:[%s2185_s2] ss:$0 sm:$0xff] }
  0x5e   : > { %984 = vmatmul.bf16.gmra.mxu2 %v1318_v7  ;;  %v1330_v19 = vor.u32 %v1575_v15, %v1329_v14  ;;  %v1381_v14 = vld [vmem:[%s1935_s8 + $0xd8] sm:$0xf]  ;;  %v1589_v15 = vld [vmem:[%s1935_s8 + $0xe0] sm:$0xf0] }
  0x5f   : > { %v1382_v26 = vor.u32 %v1589_v15, %v1381_v14  ;;  %v1608_v14 = vld [vmem:[%s1935_s8 + $0x178] sm:$0xf0]  ;;  %v1407_v15 = vld [vmem:[%s1935_s8 + $0x114] sm:$0xf0] }
  0x61   : > { %1749 = vmatpush.bf16.msra.mxu3 %v1927_v17  ;;  %v1422_v17 = vor.u32 %v1597_v11, %v1419_v12 }
  0x65   : > { %1750 = vmatpush.bf16.msra.mxu3 %v1944_v20  ;;  %v1333_v20 = vld [vmem:[%s1935_s8 + $0x78] sm:$0xf] }
  0x66   : > { %v1334_v28 = vor.u32 %v1577_v21, %v1333_v20  ;;  %v1389_v20 = vld [vmem:[%s1935_s8 + $0xe0] sm:$0xf]  ;;  %v1590_v21 = vld [vmem:[%s1935_s8 + $0xe8] sm:$0xf0] }
  0x69   : > { %1751 = vmatpush.bf16.msra.mxu3 %v1955_v23  ;;  %v1335_v23 = vld [vmem:[%s1935_s8 + $0x84] sm:$0xf0] }
  0x6a   : > { %v1338_v30 = vor.u32 %v1576_v22, %v1335_v23 }
  0x6c   : > { %811 = vmatmul.bf16.gmra.mxu0 %v1322_v16  ;;  %940 = vmatmul.bf16.vlgmr.msrb.gmra.mxu3 %v1422_v17  ;;  %v1588_v16 = vld [vmem:[%s1935_s8 + $0xdc] sm:$0xf]  ;;  %v1437_v17 = vld [vmem:[%s1935_s8 + $0x140] sm:$0xf] }
  0x6d   : > { %900 = vmatmul.bf16.gmra.mxu1 %v1326_v18  ;;  %v1602_v18 = vld [vmem:[%s1935_s8 + $0x148] sm:$0xf0] }
  0x6e   : > { %989 = vmatmul.bf16.gmra.mxu2 %v1330_v19  ;;  %v1383_v19 = vld [vmem:[%s1935_s8 + $0xe4] sm:$0xf0]  ;;  %v1438_v27 = vor.u32 %v1602_v18, %v1437_v17  ;;  %v1596_v17 = vld [vmem:[%s1935_s8 + $0x118] sm:$0xf0] }
  0x7c   : > { %816 = vmatmul.bf16.gmra.mxu0 %v1334_v28  ;;  %945 = vmatmul.bf16.gmra.mxu3 %v1434_v29 }
  0x7d   : > { %905 = vmatmul.bf16.gmra.mxu1 %v1338_v30  ;;  %v1386_v30 = vor.u32 %v1588_v16, %v1383_v19  ;;  %v1413_v16 = vld [vmem:[%s1935_s8 + $0x110] sm:$0xf] }
  0x7e   : > { %994 = vmatmul.bf16.gmra.mxu2 %v1342_v31  ;;  %v1390_v31 = vor.u32 %v1590_v21, %v1389_v20 }
  0x8c   : > { %821 = vmatmul.bf16.gmra.mxu0 %v1346_v40  ;;  %950 = vmatmul.bf16.gmra.mxu3 %v1446_v41 }
  0x8d   : > { %910 = vmatmul.bf16.gmra.mxu1 %v1350_v42 }
  0x8e   : > { %999 = vmatmul.bf16.gmra.mxu2 %v1354_v43  ;;  %v1393_v43 = vld [vmem:[%s1935_s8 + $0xf0] sm:$0xf] }
  0x9c   : > { %826 = vmatmul.bf16.gmra.mxu0 %v1358_v52  ;;  %955 = vmatmul.bf16.gmra.mxu3 %v1458_v53 }
  0x9d   : > { %915 = vmatmul.bf16.gmra.mxu1 %v1362_v54 }
  0x9e   : > { %1004 = vmatmul.bf16.gmra.mxu2 %v1366_v55  ;;  %v1394_v55 = vor.u32 %v1592_v44, %v1393_v43 }
  0xa9   : > { %v792_v2 = vpop.f32.mrf.mxu0 }
  0xaa   : > { %v881_v5 = vpop.f32.mrf.mxu1  ;;  %v793_v7 = vadd.f32 %v2046_v6, %v792_v2 }
  0xac   : > { %831 = vmatmul.bf16.gmra.mxu0 %v1370_v0  ;;  %1029 = vmatmul.bf16.vlgmr.msra.gmra.mxu3 %v1426_v1  ;;  %v882_v12 = vadd.f32 %v881_v5, %v793_v7 }
  0xad   : > { %920 = vmatmul.bf16.gmra.mxu1 %v1374_v3 }
  0xae   : > { %1009 = vmatmul.bf16.gmra.mxu2 %v1378_v4 }
  0xaf   : > { %v2049_v8 = vpop.f32.mrf.mxu3 }
  0xb1   : > { %v970_v9 = vpop.f32.mrf.mxu2  ;;  %v794_v10 = vpop.f32.mrf.mxu0 }
  0xb2   : > { %v883_v11 = vpop.f32.mrf.mxu1  ;;  %v795_v13 = vadd.f32 %v2046_v6, %v794_v10  ;;  %v971_v22 = vadd.f32 %v970_v9, %v882_v12  ;;  %v1405_v10 = vld [vmem:[%s1935_s8 + $0x108] sm:$0xf]  ;;  %v1594_v12 = vld [vmem:[%s1935_s8 + $0x10c] sm:$0xf] }
  0xb4   : > { %v884_v24 = vadd.f32 %v883_v11, %v795_v13  ;;  %v1050_v33 = vmax.f32 %v971_v22, 0.0  ;;  %v1595_v11 = vld [vmem:[%s1935_s8 + $0x110] sm:$0xf0]  ;;  %v1461_v13 = vld [vmem:[%s1935_s8 + $0x170] sm:$0xf] }
  0xb5   : > { %v1406_v22 = vor.u32 %v1595_v11, %v1405_v10 }
  0xb7   : > { %v2060_v25 = vpop.f32.mrf.mxu3 }
  0xb9   : > { %v972_v23 = vpop.f32.mrf.mxu2  ;;  %v797_v29 = vpop.f32.mrf.mxu0 }
  0xba   : > { %v973_v28 = vadd.f32 %v972_v23, %v884_v24  ;;  %v886_v32 = vpop.f32.mrf.mxu1  ;;  %v798_v36 = vadd.f32 %v2046_v6, %v797_v29  ;;  %v1462_v24 = vor.u32 %v1608_v14, %v1461_v13 }
  0xbc   : > { %v1051_v34 = vmax.f32 %v973_v28, 0.0  ;;  %836 = vmatmul.bf16.gmra.mxu0 %v1382_v26  ;;  %1034 = vmatmul.bf16.gmra.mxu3 %v1438_v27  ;;  %v887_v41 = vadd.f32 %v886_v32, %v798_v36  ;;  %v1410_v27 = vor.u32 %v1594_v12, %v1407_v15  ;;  %v1414_v28 = vor.u32 %v1596_v17, %v1413_v16 }
  0xbd   : > { %925 = vmatmul.bf16.gmra.mxu1 %v1386_v30 }
  0xbe   : > { %v1636_v35 = vpack.c.bf16 %v1051_v34, %v1050_v33  ;;  %1014 = vmatmul.bf16.gmra.mxu2 %v1390_v31 }
  0xbf   : > { %v2070_v37 = vpop.f32.mrf.mxu3 }
  0xc0   : > { %1637 = vst [vmem:[%s2066_s27] sm:$0xff] %v1636_v35  }
  0xc1   : > { %v975_v38 = vpop.f32.mrf.mxu2  ;;  %v799_v39 = vpop.f32.mrf.mxu0 }
  0xc2   : > { %v888_v40 = vpop.f32.mrf.mxu1  ;;  %v800_v42 = vadd.f32 %v2046_v6, %v799_v39  ;;  %v976_v51 = vadd.f32 %v975_v38, %v887_v41 }
  0xc4   : > { %v889_v52 = vadd.f32 %v888_v40, %v800_v42  ;;  %v1052_v62 = vmax.f32 %v976_v51, 0.0  ;;  %v853_v51 = vadd.f32 %v2046_v6, %v2049_v8 }
  0xc7   : > { %v2081_v53 = vpop.f32.mrf.mxu3 }
  0xc9   : > { %v977_v54 = vpop.f32.mrf.mxu2  ;;  %v802_v58 = vpop.f32.mrf.mxu0 }
  0xca   : > { %v978_v57 = vadd.f32 %v977_v54, %v889_v52  ;;  %v891_v61 = vpop.f32.mrf.mxu1  ;;  %v803_v1 = vadd.f32 %v2046_v6, %v802_v58 }
  0xcc   : > { %v1053_v63 = vmax.f32 %v978_v57, 0.0  ;;  %841 = vmatmul.bf16.gmra.mxu0 %v1394_v55  ;;  %1039 = vmatmul.bf16.gmra.mxu3 %v1450_v56  ;;  %v892_v7 = vadd.f32 %v891_v61, %v803_v1 }
  0xcd   : > { %930 = vmatmul.bf16.gmra.mxu1 %v1398_v59 }
  0xce   : > { %v1641_v0 = vpack.c.bf16 %v1053_v63, %v1052_v62  ;;  %1019 = vmatmul.bf16.gmra.mxu2 %v1402_v60 }
  0xcf   : > { %v2085_v2 = vpop.f32.mrf.mxu3 }
  0xd0   : > { %1713 = vst [vmem:[%s2066_s27 + $0x8] sm:$0xff] %v1641_v0  }
  0xd1   : > { %v980_v3 = vpop.f32.mrf.mxu2  ;;  %v804_v4 = vpop.f32.mrf.mxu0 }
  0xd2   : > { %v893_v5 = vpop.f32.mrf.mxu1  ;;  %v805_v9 = vadd.f32 %v2046_v6, %v804_v4  ;;  %v981_v18 = vadd.f32 %v980_v3, %v892_v7 }
  0xd4   : > { %v894_v19 = vadd.f32 %v893_v5, %v805_v9  ;;  %v1054_v30 = vmax.f32 %v981_v18, 0.0  ;;  %v858_v9 = vadd.f32 %v2046_v6, %v2070_v37 }
  0xd7   : > { %v2096_v20 = vpop.f32.mrf.mxu3 }
  0xd9   : > { %v982_v21 = vpop.f32.mrf.mxu2  ;;  %v807_v26 = vpop.f32.mrf.mxu0 }
  0xda   : > { %v983_v23 = vadd.f32 %v982_v21, %v894_v19  ;;  %v896_v29 = vpop.f32.mrf.mxu1  ;;  %v808_v33 = vadd.f32 %v2046_v6, %v807_v26 }
  0xdc   : > { %v1055_v31 = vmax.f32 %v983_v23, 0.0  ;;  %846 = vmatmul.bf16.gmra.mxu0 %v1406_v22  ;;  %1044 = vmatmul.bf16.gmra.mxu3 %v1462_v24  ;;  %v897_v39 = vadd.f32 %v896_v29, %v808_v33  ;;  %v863_v29 = vadd.f32 %v2046_v6, %v2085_v2 }
  0xdd   : > { %935 = vmatmul.bf16.gmra.mxu1 %v1410_v27 }
  0xde   : > { %v1646_v32 = vpack.c.bf16 %v1055_v31, %v1054_v30  ;;  %1024 = vmatmul.bf16.gmra.mxu2 %v1414_v28 }
  0xdf   : > { %v2100_v34 = vpop.f32.mrf.mxu3 }
  0xe0   : > { %1714 = vst [vmem:[%s2066_s27 + $0x10] sm:$0xff] %v1646_v32  }
  0xe1   : > { %v985_v35 = vpop.f32.mrf.mxu2  ;;  %v809_v36 = vpop.f32.mrf.mxu0 }
  0xe2   : > { %v898_v38 = vpop.f32.mrf.mxu1  ;;  %v810_v40 = vadd.f32 %v2046_v6, %v809_v36  ;;  %v986_v41 = vadd.f32 %v985_v35, %v897_v39 }
  0xe4   : > { %v899_v42 = vadd.f32 %v898_v38, %v810_v40  ;;  %v1056_v48 = vmax.f32 %v986_v41, 0.0 }
  0xe7   : > { %v2103_v43 = vpop.f32.mrf.mxu3 }
  0xe9   : > { %v987_v44 = vpop.f32.mrf.mxu2  ;;  %v812_v46 = vpop.f32.mrf.mxu0 }
  0xea   : > { %v988_v45 = vadd.f32 %v987_v44, %v899_v42  ;;  %v901_v47 = vpop.f32.mrf.mxu1  ;;  %v813_v52 = vadd.f32 %v2046_v6, %v812_v46 }
  0xec   : > { %v1057_v49 = vmax.f32 %v988_v45, 0.0  ;;  %v902_v59 = vadd.f32 %v901_v47, %v813_v52 }
  0xee   : > { %v1651_v50 = vpack.c.bf16 %v1057_v49, %v1056_v48 }
  0xef   : > { %v941_v54 = vpop.f32.mrf.mxu3 }
  0xf0   : > { %1715 = vst [vmem:[%s2066_s27 + $0x18] sm:$0xff] %v1651_v50   ;;  %v2109_v55 = vadd.f32 %v941_v54, %v853_v51  ;;  %v868_v50 = vadd.f32 %v2046_v6, %v2100_v34 }
  0xf1   : > { %v990_v56 = vpop.f32.mrf.mxu2  ;;  %v814_v57 = vpop.f32.mrf.mxu0 }
  0xf2   : > { %v903_v58 = vpop.f32.mrf.mxu1  ;;  %v815_v60 = vadd.f32 %v2046_v6, %v814_v57  ;;  %v991_v61 = vadd.f32 %v990_v56, %v902_v59 }
  0xf4   : > { %v904_v62 = vadd.f32 %v903_v58, %v815_v60  ;;  %v1058_v4 = vmax.f32 %v991_v61, 0.0 }
  0xf7   : > { %v2112_v63 = vpop.f32.mrf.mxu3 }
  0xf9   : > { %v992_v0 = vpop.f32.mrf.mxu2  ;;  %v817_v8 = vpop.f32.mrf.mxu0 }
  0xfa   : > { %v993_v1 = vadd.f32 %v992_v0, %v904_v62  ;;  %v906_v3 = vpop.f32.mrf.mxu1  ;;  %v818_v10 = vadd.f32 %v2046_v6, %v817_v8 }
  0xfc   : > { %v1059_v5 = vmax.f32 %v993_v1, 0.0  ;;  %v907_v16 = vadd.f32 %v906_v3, %v818_v10 }
  0xfe   : > { %v1656_v7 = vpack.c.bf16 %v1059_v5, %v1058_v4 }
  0xff   : > { %v946_v11 = vpop.f32.mrf.mxu3 }
 0x100   : > { %1716 = vst [vmem:[%s2066_s27 + $0x20] sm:$0xff] %v1656_v7   ;;  %v2118_v12 = vadd.f32 %v946_v11, %v858_v9 }
 0x101   : > { %v995_v13 = vpop.f32.mrf.mxu2  ;;  %v819_v14 = vpop.f32.mrf.mxu0 }
 0x102   : > { %v908_v15 = vpop.f32.mrf.mxu1  ;;  %v820_v17 = vadd.f32 %v2046_v6, %v819_v14  ;;  %v996_v18 = vadd.f32 %v995_v13, %v907_v16 }
 0x104   : > { %v909_v19 = vadd.f32 %v908_v15, %v820_v17  ;;  %v1060_v26 = vmax.f32 %v996_v18, 0.0  ;;  %v855_v17 = vadd.f32 %v2046_v6, %v2060_v25 }
 0x106   : > { %v944_v18 = vadd.f32 %v2112_v63, %v855_v17 }
 0x107   : > { %v2121_v21 = vpop.f32.mrf.mxu3 }
 0x109   : > { %v997_v22 = vpop.f32.mrf.mxu2  ;;  %v822_v37 = vpop.f32.mrf.mxu0 }
 0x10a   : > { %v998_v24 = vadd.f32 %v997_v22, %v909_v19  ;;  %v911_v23 = vpop.f32.mrf.mxu1  ;;  %v823_v30 = vadd.f32 %v2046_v6, %v822_v37 }
 0x10c   : > { %v1061_v27 = vmax.f32 %v998_v24, 0.0  ;;  %v912_v38 = vadd.f32 %v911_v23, %v823_v30 }
 0x10e   : > { %v1661_v28 = vpack.c.bf16 %v1061_v27, %v1060_v26 }
 0x10f   : > { %v951_v31 = vpop.f32.mrf.mxu3 }
 0x110   : > { %1717 = vst [vmem:[%s2066_s27 + $0x28] sm:$0xff] %v1661_v28   ;;  %v2127_v32 = vadd.f32 %v951_v31, %v863_v29 }
 0x111   : > { %v1000_v33 = vpop.f32.mrf.mxu2  ;;  %v824_v35 = vpop.f32.mrf.mxu0 }
 0x112   : > { %v913_v36 = vpop.f32.mrf.mxu1  ;;  %v825_v39 = vadd.f32 %v2046_v6, %v824_v35  ;;  %v1001_v40 = vadd.f32 %v1000_v33, %v912_v38 }
 0x114   : > { %v914_v41 = vadd.f32 %v913_v36, %v825_v39  ;;  %v1062_v47 = vmax.f32 %v1001_v40, 0.0 }
 0x117   : > { %v2130_v42 = vpop.f32.mrf.mxu3 }
 0x119   : > { %v1002_v44 = vpop.f32.mrf.mxu2  ;;  %v827_v2 = vpop.f32.mrf.mxu0 }
 0x11a   : > { %v1003_v45 = vadd.f32 %v1002_v44, %v914_v41  ;;  %v916_v46 = vpop.f32.mrf.mxu1  ;;  %v828_v51 = vadd.f32 %v2046_v6, %v827_v2 }
 0x11c   : > { %v1063_v48 = vmax.f32 %v1003_v45, 0.0  ;;  %v917_v59 = vadd.f32 %v916_v46, %v828_v51  ;;  %v860_v45 = vadd.f32 %v2046_v6, %v2081_v53 }
 0x11e   : > { %v1666_v49 = vpack.c.bf16 %v1063_v48, %v1062_v47  ;;  %v949_v2 = vadd.f32 %v2121_v21, %v860_v45 }
 0x11f   : > { %v956_v52 = vpop.f32.mrf.mxu3 }
 0x120   : > { %1718 = vst [vmem:[%s2066_s27 + $0x30] sm:$0xff] %v1666_v49   ;;  %v2136_v54 = vadd.f32 %v956_v52, %v868_v50 }
 0x121   : > { %v1005_v56 = vpop.f32.mrf.mxu2  ;;  %v829_v57 = vpop.f32.mrf.mxu0 }
 0x122   : > { %v918_v58 = vpop.f32.mrf.mxu1  ;;  %v830_v60 = vadd.f32 %v2046_v6, %v829_v57  ;;  %v1006_v61 = vadd.f32 %v1005_v56, %v917_v59 }
 0x124   : > { %v919_v62 = vadd.f32 %v918_v58, %v830_v60  ;;  %v1064_v4 = vmax.f32 %v1006_v61, 0.0 }
 0x127   : > { %v2139_v0 = vpop.f32.mrf.mxu3 }
 0x129   : > { %v1007_v1 = vpop.f32.mrf.mxu2  ;;  %v832_v34 = vpop.f32.mrf.mxu0 }
 0x12a   : > { %v1008_v8 = vadd.f32 %v1007_v1, %v919_v62  ;;  %v921_v3 = vpop.f32.mrf.mxu1  ;;  %v833_v9 = vadd.f32 %v2046_v6, %v832_v34 }
 0x12c   : > { %v1065_v5 = vmax.f32 %v1008_v8, 0.0  ;;  %v922_v15 = vadd.f32 %v921_v3, %v833_v9 }
 0x12e   : > { %v1671_v7 = vpack.c.bf16 %v1065_v5, %v1064_v4  ;;  %v865_v5 = vadd.f32 %v2046_v6, %v2096_v20 }
 0x12f   : > { %v1030_v10 = vpop.f32.mrf.mxu3 }
 0x130   : > { %1719 = vst [vmem:[%s2066_s27 + $0x38] sm:$0xff] %v1671_v7   ;;  %v1031_v19 = vadd.f32 %v1030_v10, %v2109_v55  ;;  %v954_v7 = vadd.f32 %v2130_v42, %v865_v5 }
 0x131   : > { %v1010_v11 = vpop.f32.mrf.mxu2  ;;  %v834_v13 = vpop.f32.mrf.mxu0 }
 0x132   : > { %v923_v14 = vpop.f32.mrf.mxu1  ;;  %v835_v16 = vadd.f32 %v2046_v6, %v834_v13  ;;  %v1011_v22 = vadd.f32 %v1010_v11, %v922_v15  ;;  %v1074_v29 = vmax.f32 %v1031_v19, 0.0 }
 0x134   : > { %v924_v24 = vadd.f32 %v923_v14, %v835_v16  ;;  %v1066_v33 = vmax.f32 %v1011_v22, 0.0 }
 0x137   : > { %v1032_v37 = vpop.f32.mrf.mxu3 }
 0x138   : > { %v1033_v26 = vadd.f32 %v1032_v37, %v944_v18 }
 0x139   : > { %v1012_v23 = vpop.f32.mrf.mxu2  ;;  %v837_v28 = vpop.f32.mrf.mxu0 }
 0x13a   : > { %v1013_v27 = vadd.f32 %v1012_v23, %v924_v24  ;;  %v1075_v30 = vmax.f32 %v1033_v26, 0.0  ;;  %v926_v31 = vpop.f32.mrf.mxu1  ;;  %v838_v63 = vadd.f32 %v2046_v6, %v837_v28 }
 0x13c   : > { %v1067_v35 = vmax.f32 %v1013_v27, 0.0  ;;  %v1696_v36 = vpack.c.bf16 %v1075_v30, %v1074_v29  ;;  %v927_v41 = vadd.f32 %v926_v31, %v838_v63  ;;  %v870_v30 = vadd.f32 %v2046_v6, %v2103_v43 }
 0x13e   : > { %v1676_v25 = vpack.c.bf16 %v1067_v35, %v1066_v33  ;;  %1724 = vst [vmem:[%s2066_s27 + $0x60] sm:$0xff] %v1696_v36   ;;  %v959_v31 = vadd.f32 %v2139_v0, %v870_v30 }
 0x13f   : > { %v1035_v55 = vpop.f32.mrf.mxu3 }
 0x140   : > { %1720 = vst [vmem:[%s2066_s27 + $0x40] sm:$0xff] %v1676_v25   ;;  %v1036_v46 = vadd.f32 %v1035_v55, %v2118_v12 }
 0x141   : > { %v1015_v38 = vpop.f32.mrf.mxu2  ;;  %v839_v39 = vpop.f32.mrf.mxu0 }
 0x142   : > { %v928_v40 = vpop.f32.mrf.mxu1  ;;  %v840_v44 = vadd.f32 %v2046_v6, %v839_v39  ;;  %v1016_v47 = vadd.f32 %v1015_v38, %v927_v41  ;;  %v1076_v57 = vmax.f32 %v1036_v46, 0.0 }
 0x144   : > { %v929_v48 = vadd.f32 %v928_v40, %v840_v44  ;;  %v1068_v60 = vmax.f32 %v1016_v47, 0.0 }
 0x147   : > { %v1037_v49 = vpop.f32.mrf.mxu3 }
 0x148   : > { %v1038_v51 = vadd.f32 %v1037_v49, %v949_v2 }
 0x149   : > { %v1017_v50 = vpop.f32.mrf.mxu2  ;;  %v842_v56 = vpop.f32.mrf.mxu0 }
 0x14a   : > { %v1018_v52 = vadd.f32 %v1017_v50, %v929_v48  ;;  %v1077_v58 = vmax.f32 %v1038_v51, 0.0  ;;  %v931_v59 = vpop.f32.mrf.mxu1  ;;  %v843_v21 = vadd.f32 %v2046_v6, %v842_v56 }
 0x14c   : > { %v1069_v61 = vmax.f32 %v1018_v52, 0.0  ;;  %v1701_v62 = vpack.c.bf16 %v1077_v58, %v1076_v57  ;;  %v932_v3 = vadd.f32 %v931_v59, %v843_v21 }
 0x14e   : > { %v1681_v53 = vpack.c.bf16 %v1069_v61, %v1068_v60  ;;  %1725 = vst [vmem:[%s2066_s27 + $0x68] sm:$0xff] %v1701_v62  }
 0x14f   : > { %v1040_v12 = vpop.f32.mrf.mxu3 }
 0x150   : > { %1721 = vst [vmem:[%s2066_s27 + $0x48] sm:$0xff] %v1681_v53   ;;  %v1041_v9 = vadd.f32 %v1040_v12, %v2127_v32 }
 0x151   : > { %v1020_v1 = vpop.f32.mrf.mxu2  ;;  %v844_v8 = vpop.f32.mrf.mxu0 }
 0x152   : > { %v933_v34 = vpop.f32.mrf.mxu1  ;;  %v845_v4 = vadd.f32 %v2046_v6, %v844_v8  ;;  %v1021_v10 = vadd.f32 %v1020_v1, %v932_v3  ;;  %v1078_v18 = vmax.f32 %v1041_v9, 0.0 }
 0x154   : > { %v934_v11 = vadd.f32 %v933_v34, %v845_v4  ;;  %v1070_v22 = vmax.f32 %v1021_v10, 0.0 }
 0x157   : > { %v1042_v13 = vpop.f32.mrf.mxu3 }
 0x158   : > { %v1043_v15 = vadd.f32 %v1042_v13, %v954_v7 }
 0x159   : > { %v1022_v14 = vpop.f32.mrf.mxu2  ;;  %v847_v17 = vpop.f32.mrf.mxu0 }
 0x15a   : > { %v1023_v16 = vadd.f32 %v1022_v14, %v934_v11  ;;  %v1079_v19 = vmax.f32 %v1043_v15, 0.0  ;;  %v936_v23 = vpop.f32.mrf.mxu1  ;;  %v848_v42 = vadd.f32 %v2046_v6, %v847_v17 }
 0x15c   : > { %v1071_v24 = vmax.f32 %v1023_v16, 0.0  ;;  %v1706_v37 = vpack.c.bf16 %v1079_v19, %v1078_v18  ;;  %v937_v28 = vadd.f32 %v936_v23, %v848_v42 }
 0x15e   : > { %v1686_v20 = vpack.c.bf16 %v1071_v24, %v1070_v22  ;;  %1726 = vst [vmem:[%s2066_s27 + $0x70] sm:$0xff] %v1706_v37  }
 0x15f   : > { %v1045_v32 = vpop.f32.mrf.mxu3 }
 0x160   : > { %1722 = vst [vmem:[%s2066_s27 + $0x50] sm:$0xff] %v1686_v20   ;;  %v1046_v33 = vadd.f32 %v1045_v32, %v2136_v54 }
 0x161   : > { %v1025_v26 = vpop.f32.mrf.mxu2  ;;  %v849_v27 = vpop.f32.mrf.mxu0 }
 0x162   : > { %v850_v29 = vadd.f32 %v2046_v6, %v849_v27  ;;  %v938_v35 = vpop.f32.mrf.mxu1  ;;  %v1026_v36 = vadd.f32 %v1025_v26, %v937_v28  ;;  %v1080_v40 = vmax.f32 %v1046_v33, 0.0 }
 0x164   : > { %v939_v25 = vadd.f32 %v938_v35, %v850_v29  ;;  %v1072_v44 = vmax.f32 %v1026_v36, 0.0 }
 0x167   : > { %v1047_v63 = vpop.f32.mrf.mxu3 }
 0x168   : > { %v1048_v38 = vadd.f32 %v1047_v63, %v959_v31 }
 0x169   : > { %v1027_v55 = vpop.f32.mrf.mxu2 }
 0x16a   : > { %v1028_v39 = vadd.f32 %v1027_v55, %v939_v25  ;;  %v1081_v41 = vmax.f32 %v1048_v38, 0.0 }
 0x16c   : > { %v1073_v45 = vmax.f32 %v1028_v39, 0.0  ;;  %v1711_v2 = vpack.c.bf16 %v1081_v41, %v1080_v40 }
 0x16e   : > { %v1691_v46 = vpack.c.bf16 %v1073_v45, %v1072_v44  ;;  %1727 = vst [vmem:[%s2066_s27 + $0x78] sm:$0xff] %v1711_v2  }
 0x170   : > { %1723 = vst [vmem:[%s2066_s27 + $0x58] sm:$0xff] %v1691_v46  }
 0x171 PF: > { %s13_s14 = sadd.s32 1, %s1800_s14   ;;  %s2187_s12 = smov %s1796_s13 }
 0x172   : > { %p10_p5 = scmp.ge.s32.totalorder %s13_s14, 4   ;;  %s2188_s13 = smov %s2190_s15 }
 0x174   :  { %12 = sbr.rel (!%p10_p5) target bundleno = 2 (0x2), region = 68 }

// kernel: mil_forward.26
= control target key start
LH: loop header
LB: loop body
LE: loop exit
PB: predicated region body
PF: predicated region fallthrough
CT: control target
= control target key end

     0   :  { %s636_s12 = smov 0   ;;  %s638_s13 = smov 0   ;;  %s699_s0 = inlined_call_operand.vmem [shape: bf16[64,128], index: 0, kind: input, shape index: {}]   ;;  %s700_s1 = inlined_call_operand.vmem [shape: bf16[128,128], index: 1, kind: input, shape index: {}]   ;;  %s701_s2 = inlined_call_operand.vmem [shape: f32[1,128], index: 2, kind: input, shape index: {}]   ;;  %s702_s3 = inlined_call_operand.vmem [shape: bf16[64,128], index: 3, kind: output, shape index: {}]  }
   0x1   :  { %s640_s14 = smov 0  }
   0x2 LB: > { %s32_s15 = sadd.s32 1, %s610_s13  ;;  %p491_p0 = scmp.ge.s32.totalorder %s614_s14, 1  ;;  %s614_s14 = sphi %s640_s14, %s13_s14   ;;  %s610_s13 = sphi %s638_s13, %s704_s13   ;;  %s606_s12 = sphi %s636_s12, %s703_s12  }
   0x3   : > { %p34_p1 = scmp.ge.s32.totalorder %s32_s15, 2  ;;  %p188_p2 = scmp.lt.s32.totalorder %s614_s14, 3 }
   0x5   : > { %s706_s15 = smov (%p34_p1, %s32_s15), 0  ;;  %p189_p3 = pnand %p491_p0, %p188_p2 }
   0x6   : > { %s492_s24 = sshll.u32 (!%p189_p3), %s606_s12, 2 }
   0x7   : > { %192 = sbr.rel (%p189_p3) target bundleno = 186 (0xba), region = 32  ;;  %p230_p4 = scmp.lt.s32.totalorder (!%p189_p3), %s492_s24, 7 }
   0xc   : > { %v547_v0 = vld [vmem:[%s700_s1 + $0x38] sm:$0xff]  ;;  %v546_v1 = vld [vmem:[%s700_s1 + $0x30] sm:$0xff]  ;;  %v545_v2 = vld [vmem:[%s700_s1 + $0x28] sm:$0xff]  ;;  %s708_s24 = smov (!%p230_p4, %s492_s24), 7 }
   0xd   : > { %343 = vmatpush.bf16.msra.mxu0 %v547_v0  ;;  %559 = vmatpush.bf16.msra.mxu1 %v547_v0  ;;  %v544_v3 = vld [vmem:[%s700_s1 + $0x20] sm:$0xff]  ;;  %v543_v4 = vld [vmem:[%s700_s1 + $0x18] sm:$0xff]  ;;  %v542_v5 = vld [vmem:[%s700_s1 + $0x10] sm:$0xff]  ;;  %s493_s4 = sshll.u32 %s708_s24, 2 }
   0xe   : > { %v541_v6 = vld [vmem:[%s700_s1 + $0x8] sm:$0xff]  ;;  %v540_v7 = vld [vmem:[%s700_s1] sm:$0xff]  ;;  %s236_s9 = scalar_lea.vmem %s699_s0, %s493_s4  ;;  %s257_s17 = scalar_lea.vmem %s702_s3, %s493_s4 }
   0xf   : > { %v538_v8 = vld [vmem:[%s236_s9] sm:$0xff]  ;;  %v539_v9 = vld [vmem:[%s236_s9 + $0x8] sm:$0xff] }
  0x10   : > { %v591_v12 = vld [vmem:[%s701_s2] ss:$0 sm:$0xff] }
  0x11   : > { %344 = vmatpush.bf16.msra.mxu0 %v546_v1  ;;  %560 = vmatpush.bf16.msra.mxu1 %v546_v1 }
  0x15   : > { %345 = vmatpush.bf16.msra.mxu0 %v545_v2  ;;  %561 = vmatpush.bf16.msra.mxu1 %v545_v2 }
  0x19   : > { %346 = vmatpush.bf16.msra.mxu0 %v544_v3  ;;  %562 = vmatpush.bf16.msra.mxu1 %v544_v3 }
  0x1d   : > { %347 = vmatpush.bf16.msra.mxu0 %v543_v4  ;;  %563 = vmatpush.bf16.msra.mxu1 %v543_v4 }
  0x21   : > { %348 = vmatpush.bf16.msra.mxu0 %v542_v5  ;;  %564 = vmatpush.bf16.msra.mxu1 %v542_v5 }
  0x25   : > { %349 = vmatpush.bf16.msra.mxu0 %v541_v6  ;;  %565 = vmatpush.bf16.msra.mxu1 %v541_v6 }
  0x29   : > { %350 = vmatpush.bf16.msra.mxu0 %v540_v7  ;;  %566 = vmatpush.bf16.msra.mxu1 %v540_v7 }
  0x2c   : > { %351 = vmatmul.bf16.vlgmr.msra.gmra.mxu0 %v538_v8  ;;  %356 = vmatmul.bf16.vlgmr.msra.gmra.mxu1 %v539_v9 }
  0xa9   : > { %v352_v10 = vpop.f32.mrf.mxu0  ;;  %v357_v11 = vpop.f32.mrf.mxu1 }
  0xaa   : > { %v353_v13 = vadd.f32 %v591_v12, %v352_v10  ;;  %v358_v14 = vadd.f32 %v591_v12, %v357_v11 }
  0xac   : > { %v362_v19 = vmax.f32 %v353_v13, 0.0  ;;  %v364_v20 = vmax.f32 %v358_v14, 0.0 }
  0xb1   : > { %v354_v15 = vpop.f32.mrf.mxu0  ;;  %v359_v16 = vpop.f32.mrf.mxu1 }
  0xb2   : > { %v355_v17 = vadd.f32 %v591_v12, %v354_v15  ;;  %v360_v18 = vadd.f32 %v591_v12, %v359_v16 }
  0xb4   : > { %v363_v21 = vmax.f32 %v355_v17, 0.0  ;;  %v365_v22 = vmax.f32 %v360_v18, 0.0 }
  0xb6   : > { %v551_v23 = vpack.c.bf16 %v363_v21, %v362_v19  ;;  %v556_v24 = vpack.c.bf16 %v365_v22, %v364_v20 }
  0xb8   : > { %552 = vst [vmem:[%s257_s17] sm:$0xff] %v551_v23  }
  0xb9   : > { %558 = vst [vmem:[%s257_s17 + $0x8] sm:$0xff] %v556_v24  }
  0xba PF: > { %s13_s14 = sadd.s32 1, %s614_s14   ;;  %s703_s12 = smov %s610_s13 }
  0xbb   : > { %p10_p5 = scmp.ge.s32.totalorder %s13_s14, 4   ;;  %s704_s13 = smov %s706_s15 }
  0xbd   :  { %12 = sbr.rel (!%p10_p5) target bundleno = 2 (0x2), region = 68 }

// kernel: mil_forward.28
= control target key start
LH: loop header
LB: loop body
LE: loop exit
PB: predicated region body
PF: predicated region fallthrough
CT: control target
= control target key end

     0   :  { %8 = vsyncpa [#allocation5], 0  ;;  %s1119_s0 = inlined_call_operand.vmem [shape: bf16[64,128], index: 0, kind: input, shape index: {}]   ;;  %s1120_s1 = inlined_call_operand.vmem [shape: bf16[128,256], index: 1, kind: input, shape index: {}]   ;;  %s1121_s2 = inlined_call_operand.hbm [shape: f32[1,256], index: 2, kind: input, shape index: {}]   ;;  %s1122_s3 = inlined_call_operand.vmem [shape: bf16[64,256], index: 3, kind: output, shape index: {}]  }
   0x1   :  { %10 = vsyncpa [#allocation5 + $0x1], 0  ;;  %s971_s12 = smov 0   ;;  %s973_s13 = smov 0  }
   0x2   :  { %s975_s14 = smov 0   ;;  %s977_s15 = smov 0  }
   0x3   :  { %s979_s16 = smov 0   ;;  %s981_s17 = smov 0  }
   0x4 LB: > { %s699_s18 = sadd.s32 4294967295, %s949_s17   ;;  %s31_s19 = sadd.s32 1, %s945_s16  ;;  %s949_s17 = sphi %s981_s17, %s16_s17   ;;  %s945_s16 = sphi %s979_s16, %s1130_s16   ;;  %s941_s15 = sphi %s977_s15, %s1129_s15   ;;  %s937_s14 = sphi %s975_s14, %s1128_s14   ;;  %s933_s13 = sphi %s973_s13, %s1127_s13   ;;  %s929_s12 = sphi %s971_s12, %s1126_s12  }
   0x5   : > { %p33_p0 = scmp.ge.s32.totalorder %s31_s19, 2  ;;  %s72_s20 = sadd.s32 1, %s937_s14 }
   0x6   : > { %p79_p1 = scmp.ne.s32.totalorder %s937_s14, %s933_s13  ;;  %p80_p2 = scmp.eq.s32.totalorder %s949_s17, 0 }
   0x7   : > { %s1132_s19 = smov (%p33_p0, %s31_s19), 0  ;;  %p111_p4 = scmp.ne.s32.totalorder %s933_s13, %s929_s12 }
   0x8   : > { %p1007_p3 = por %p80_p2, %p79_p1  ;;  %s68_s22 = ssub.s32 %s945_s16, %s1132_s19 }
   0x9   : > { %p112_p5 = scmp.eq.s32.totalorder %s699_s18, 0  ;;  %p70_p6 = scmp.eq.s32.totalorder %s68_s22, 0 }
   0xa   : > { %p137_p7 = scmp.eq.s32.totalorder %s699_s18, 1  ;;  %p703_p10 = scmp.ge.s32.totalorder %s949_s17, 2 }
   0xb   : > { %p1014_p8 = por %p112_p5, %p111_p4 }
   0xc   : > { %s1019_s24 = scalar_select %p70_p6, %s937_s14, %s72_s20  }
   0xd   : > { %p1021_p9 = por %p137_p7, %p79_p1  ;;  %171 = sbr.rel (%p703_p10) target bundleno = 42 (0x2a), region = 20 }
  0x12   : > { %174 = sbr.rel (!%p1007_p3) target bundleno = 38 (0x26), region = 24  ;;  %s176_s26 = sand.u32 (%p1007_p3), 1, %s937_s14  }
  0x13   : > { %s705_s27 = sshll.u32 (%p1007_p3), %s945_s16, 2  ;;  %s704_s28 = sshll.u32 (%p1007_p3), %s176_s26, 6 }
  0x14   : > { %s1033_s4 = scalar_lea.vmem (%p1007_p3), %s1120_s1, %s705_s27  ;;  %s178_s5 = scalar_lea.vmem (%p1007_p3), [#allocation3], %s704_s28 }
  0x15   : > { %v200_v0 = vld [vmem:[%s1033_s4] sm:$0xf] (%p1007_p3)  ;;  %v202_v1 = vld [vmem:[%s1033_s4 + $0x8] sm:$0xf] (%p1007_p3)  ;;  %v204_v2 = vld [vmem:[%s1033_s4 + $0x10] sm:$0xf] (%p1007_p3) }
  0x16   : > { %201 = vst [vmem:[%s178_s5] sm:$0xf] (%p1007_p3), %v200_v0  ;;  %v206_v3 = vld [vmem:[%s1033_s4 + $0x18] sm:$0xf] (%p1007_p3)  ;;  %v208_v4 = vld [vmem:[%s1033_s4 + $0x20] sm:$0xf] (%p1007_p3) }
  0x17   : > { %203 = vst [vmem:[%s178_s5 + $0x4] sm:$0xf] %v202_v1  ;;  %v210_v5 = vld [vmem:[%s1033_s4 + $0x28] sm:$0xf]  ;;  %v212_v6 = vld [vmem:[%s1033_s4 + $0x30] sm:$0xf] }
  0x18   : > { %205 = vst [vmem:[%s178_s5 + $0x8] sm:$0xf] %v204_v2  ;;  %v214_v7 = vld [vmem:[%s1033_s4 + $0x38] sm:$0xf]  ;;  %v216_v8 = vld [vmem:[%s1033_s4 + $0x40] sm:$0xf] }
  0x19   : > { %207 = vst [vmem:[%s178_s5 + $0xc] sm:$0xf] %v206_v3  ;;  %v218_v9 = vld [vmem:[%s1033_s4 + $0x48] sm:$0xf]  ;;  %v220_v10 = vld [vmem:[%s1033_s4 + $0x50] sm:$0xf] }
  0x1a   : > { %209 = vst [vmem:[%s178_s5 + $0x10] sm:$0xf] %v208_v4  ;;  %v222_v11 = vld [vmem:[%s1033_s4 + $0x58] sm:$0xf]  ;;  %v224_v12 = vld [vmem:[%s1033_s4 + $0x60] sm:$0xf] }
  0x1b   : > { %211 = vst [vmem:[%s178_s5 + $0x14] sm:$0xf] %v210_v5  ;;  %v226_v13 = vld [vmem:[%s1033_s4 + $0x68] sm:$0xf]  ;;  %v228_v14 = vld [vmem:[%s1033_s4 + $0x70] sm:$0xf] }
  0x1c   : > { %213 = vst [vmem:[%s178_s5 + $0x18] sm:$0xf] %v212_v6  ;;  %v230_v15 = vld [vmem:[%s1033_s4 + $0x78] sm:$0xf] }
  0x1d   : > { %215 = vst [vmem:[%s178_s5 + $0x1c] sm:$0xf] %v214_v7 }
  0x1e   : > { %217 = vst [vmem:[%s178_s5 + $0x20] sm:$0xf] %v216_v8 }
  0x1f   : > { %219 = vst [vmem:[%s178_s5 + $0x24] sm:$0xf] %v218_v9 }
  0x20   : > { %221 = vst [vmem:[%s178_s5 + $0x28] sm:$0xf] %v220_v10 }
  0x21   : > { %223 = vst [vmem:[%s178_s5 + $0x2c] sm:$0xf] %v222_v11 }
  0x22   : > { %225 = vst [vmem:[%s178_s5 + $0x30] sm:$0xf] %v224_v12 }
  0x23   : > { %227 = vst [vmem:[%s178_s5 + $0x34] sm:$0xf] %v226_v13 }
  0x24   : > { %229 = vst [vmem:[%s178_s5 + $0x38] sm:$0xf] %v228_v14 }
  0x25   : > { %231 = vst [vmem:[%s178_s5 + $0x3c] sm:$0xf] %v230_v15 }
  0x26 PF: > { %s288_s6 = sand.u32 1, %s937_s14   ;;  %s294_s9 = scalar_lea.hbm %s1121_s2, %s945_s16 }
  0x27   : > { %s296_s10 = sshll.u32 %s294_s9, 4  ;;  %s291_s11 = scalar_lea.vmem [#allocation4], %s288_s6  ;;  %s297_s10 = int_to_ptr.hbm [resolvable:$true] %s296_s10 }
  0x28   : > { %s298_s12 = sshll.u32 %s291_s11, 4  ;;  %s289_s18 = scalar_lea.sflag [#allocation5], %s288_s6  ;;  %s299_s12 = int_to_ptr.vmem [resolvable:$true] %s298_s12 }
  0x29   : > { %820 = dma.hbm_to_vmem [thread:$0]  (%p1007_p3), %s297_s10, 16, %s299_s12, %s289_s18  }
  0x2a PF: > { %p706_p11 = scmp.ge.s32.totalorder %s949_s17, 1  ;;  %p303_p12 = scmp.lt.s32.totalorder %s949_s17, 3 }
  0x2c   : > { %p304_p13 = pnand %p706_p11, %p303_p12 }
  0x2d   : > { %s1061_s20 = sand.u32 (!%p304_p13), 1, %s933_s13  }
  0x2e   : > { %307 = sbr.rel (%p304_p13) target bundleno = 241 (0xf1), region = 69  ;;  %s707_s22 = sshll.u32 (!%p304_p13), %s1061_s20, 6 }
  0x2f   : > { %s1064_s26 = scalar_lea.vmem (!%p304_p13), [#allocation3], %s707_s22  ;;  %s317_s27 = scalar_lea.sflag (!%p304_p13), [#allocation5], %s1061_s20 }
  0x30   : > { %s319_s21 = scalar_lea.vmem (!%p304_p13), [#allocation4], %s1061_s20 }
  0x33   : > { %924 = dma.done.wait (%p1014_p8), %s317_s27, 16  }
  0x34   : > { %926 = vsyncadd (%p1014_p8), %s317_s27, 4294967280  ;;  %v772_v16 = vld [vmem:[%s1064_s26 + $0x38] sm:$0xff]  ;;  %v771_v17 = vld [vmem:[%s1064_s26 + $0x30] sm:$0xff]  ;;  %s708_s8 = sshll.u32 %s1061_s20, 5  ;;  %s758_s10 = sshll.u32 (%p1021_p9), %s941_s15, 2 }
  0x35   : > { %464 = vmatpush.bf16.msra.mxu0 %v772_v16  ;;  %796 = vmatpush.bf16.msra.mxu1 %v772_v16  ;;  %v770_v18 = vld [vmem:[%s1064_s26 + $0x28] sm:$0xff]  ;;  %v769_v19 = vld [vmem:[%s1064_s26 + $0x20] sm:$0xff]  ;;  %v768_v20 = vld [vmem:[%s1064_s26 + $0x18] sm:$0xff]  ;;  %s352_s9 = scalar_lea.vmem [#allocation6], %s708_s8  ;;  %s520_s18 = scalar_lea.vmem (%p1021_p9), %s1122_s3, %s758_s10 }
  0x36   : > { %797 = vmatpush.bf16.msra.mxu2 %v772_v16  ;;  %798 = vmatpush.bf16.msra.mxu3 %v772_v16  ;;  %v767_v21 = vld [vmem:[%s1064_s26 + $0x10] sm:$0xff]  ;;  %v766_v22 = vld [vmem:[%s1064_s26 + $0x8] sm:$0xff]  ;;  %v765_v23 = vld [vmem:[%s1064_s26] sm:$0xff] }
  0x37   : > { %v761_v24 = vld [vmem:[%s1119_s0] sm:$0xff]  ;;  %v762_v25 = vld [vmem:[%s1119_s0 + $0x8] sm:$0xff]  ;;  %v763_v26 = vld [vmem:[%s1119_s0 + $0x10] sm:$0xff] }
  0x38   : > { %v764_v27 = vld [vmem:[%s1119_s0 + $0x18] sm:$0xff]  ;;  %v870_v30 = vld [vmem:[%s319_s21] ss:$0 sm:$0xff] }
  0x39   : > { %465 = vmatpush.bf16.msra.mxu0 %v771_v17  ;;  %799 = vmatpush.bf16.msra.mxu1 %v771_v17 }
  0x3a   : > { %800 = vmatpush.bf16.msra.mxu2 %v771_v17  ;;  %801 = vmatpush.bf16.msra.mxu3 %v771_v17 }
  0x3d   : > { %466 = vmatpush.bf16.msra.mxu0 %v770_v18  ;;  %802 = vmatpush.bf16.msra.mxu1 %v770_v18 }
  0x3e   : > { %803 = vmatpush.bf16.msra.mxu2 %v770_v18  ;;  %804 = vmatpush.bf16.msra.mxu3 %v770_v18 }
  0x41   : > { %467 = vmatpush.bf16.msra.mxu0 %v769_v19  ;;  %805 = vmatpush.bf16.msra.mxu1 %v769_v19 }
  0x42   : > { %806 = vmatpush.bf16.msra.mxu2 %v769_v19  ;;  %807 = vmatpush.bf16.msra.mxu3 %v769_v19 }
  0x45   : > { %468 = vmatpush.bf16.msra.mxu0 %v768_v20  ;;  %808 = vmatpush.bf16.msra.mxu1 %v768_v20 }
  0x46   : > { %809 = vmatpush.bf16.msra.mxu2 %v768_v20  ;;  %810 = vmatpush.bf16.msra.mxu3 %v768_v20 }
  0x49   : > { %469 = vmatpush.bf16.msra.mxu0 %v767_v21  ;;  %811 = vmatpush.bf16.msra.mxu1 %v767_v21 }
  0x4a   : > { %812 = vmatpush.bf16.msra.mxu2 %v767_v21  ;;  %813 = vmatpush.bf16.msra.mxu3 %v767_v21 }
  0x4d   : > { %470 = vmatpush.bf16.msra.mxu0 %v766_v22  ;;  %814 = vmatpush.bf16.msra.mxu1 %v766_v22 }
  0x4e   : > { %815 = vmatpush.bf16.msra.mxu2 %v766_v22  ;;  %816 = vmatpush.bf16.msra.mxu3 %v766_v22 }
  0x51   : > { %471 = vmatpush.bf16.msra.mxu0 %v765_v23  ;;  %817 = vmatpush.bf16.msra.mxu1 %v765_v23 }
  0x52   : > { %818 = vmatpush.bf16.msra.mxu2 %v765_v23  ;;  %819 = vmatpush.bf16.msra.mxu3 %v765_v23 }
  0x54   : > { %472 = vmatmul.bf16.vlgmr.msra.gmra.mxu0 %v761_v24  ;;  %477 = vmatmul.bf16.vlgmr.msra.gmra.mxu1 %v762_v25 }
  0x55   : > { %482 = vmatmul.bf16.vlgmr.msra.gmra.mxu2 %v763_v26  ;;  %487 = vmatmul.bf16.vlgmr.msra.gmra.mxu3 %v764_v27 }
  0xd1   : > { %v473_v28 = vpop.f32.mrf.mxu0  ;;  %v478_v29 = vpop.f32.mrf.mxu1 }
  0xd2   : > { %v474_v35 = vadd.f32 %v870_v30, %v473_v28  ;;  %v479_v36 = vadd.f32 %v870_v30, %v478_v29 }
  0xd8   : > { %v483_v31 = vpop.f32.mrf.mxu2  ;;  %v488_v32 = vpop.f32.mrf.mxu3 }
  0xd9   : > { %v475_v33 = vpop.f32.mrf.mxu0  ;;  %v480_v34 = vpop.f32.mrf.mxu1  ;;  %v484_v43 = vadd.f32 %v870_v30, %v483_v31  ;;  %v489_v44 = vadd.f32 %v870_v30, %v488_v32 }
  0xda   : > { %v476_v37 = vadd.f32 %v870_v30, %v475_v33  ;;  %v481_v38 = vadd.f32 %v870_v30, %v480_v34 }
  0xdc   : > { %v776_v39 = vpack.c.bf16 %v476_v37, %v474_v35  ;;  %v781_v40 = vpack.c.bf16 %v481_v38, %v479_v36 }
  0xde   : > { %777 = vst [vmem:[%s352_s9] sm:$0xff] %v776_v39  }
  0xdf   : > { %793 = vst [vmem:[%s352_s9 + $0x8] sm:$0xff] %v781_v40  }
  0xe0   : > { %v485_v41 = vpop.f32.mrf.mxu2  ;;  %v490_v42 = vpop.f32.mrf.mxu3 }
  0xe1   : > { %v486_v45 = vadd.f32 %v870_v30, %v485_v41  ;;  %v491_v46 = vadd.f32 %v870_v30, %v490_v42 }
  0xe2   : > { %515 = sbr.rel (!%p1021_p9) target bundleno = 241 (0xf1), region = 81 }
  0xe3   : > { %v786_v47 = vpack.c.bf16 %v486_v45, %v484_v43  ;;  %v791_v48 = vpack.c.bf16 %v491_v46, %v489_v44 }
  0xe5   : > { %794 = vst [vmem:[%s352_s9 + $0x10] sm:$0xff] %v786_v47   ;;  %v537_v49 = vld [vmem:[%s352_s9] sm:$0xf] (%p1021_p9)  ;;  %v539_v50 = vld [vmem:[%s352_s9 + $0x4] sm:$0xf] (%p1021_p9) }
  0xe6   : > { %795 = vst [vmem:[%s352_s9 + $0x18] sm:$0xff] %v791_v48   ;;  %v541_v51 = vld [vmem:[%s352_s9 + $0x8] sm:$0xf] (%p1021_p9)  ;;  %v543_v52 = vld [vmem:[%s352_s9 + $0xc] sm:$0xf] (%p1021_p9) }
  0xe7   : > { %538 = vst [vmem:[%s520_s18] sm:$0xf] %v537_v49 }
  0xe8   : > { %540 = vst [vmem:[%s520_s18 + $0x8] sm:$0xf] %v539_v50 }
  0xe9   : > { %542 = vst [vmem:[%s520_s18 + $0x10] sm:$0xf] %v541_v51 }
  0xea   : > { %544 = vst [vmem:[%s520_s18 + $0x18] sm:$0xf] %v543_v52 }
  0xec   : > { %v545_v53 = vld [vmem:[%s352_s9 + $0x10] sm:$0xf]  ;;  %v547_v54 = vld [vmem:[%s352_s9 + $0x14] sm:$0xf] }
  0xed   : > { %v549_v55 = vld [vmem:[%s352_s9 + $0x18] sm:$0xf]  ;;  %546 = vst [vmem:[%s520_s18 + $0x20] sm:$0xf] %v545_v53  ;;  %v551_v56 = vld [vmem:[%s352_s9 + $0x1c] sm:$0xf] }
  0xee   : > { %548 = vst [vmem:[%s520_s18 + $0x28] sm:$0xf] %v547_v54 }
  0xef   : > { %550 = vst [vmem:[%s520_s18 + $0x30] sm:$0xf] %v549_v55 }
  0xf0   : > { %552 = vst [vmem:[%s520_s18 + $0x38] sm:$0xf] %v551_v56 }
  0xf1 PF: > { %s16_s17 = sadd.s32 1, %s949_s17   ;;  %s1126_s12 = smov %s933_s13 }
  0xf2   : > { %p13_p0 = scmp.ge.s32.totalorder %s16_s17, 4   ;;  %s1127_s13 = smov %s937_s14 }
  0xf3   : > { %s1128_s14 = smov %s1019_s24  ;;  %s1129_s15 = smov %s945_s16 }
  0xf4   : > { %s1130_s16 = smov %s1132_s19  ;;  %15 = sbr.rel (!%p13_p0) target bundleno = 4 (0x4), region = 165 }
  0xf9   :  { %602 = vsyncpa [#allocation5], 1 }
  0xfa   :  { %604 = vsyncpa [#allocation5 + $0x1], 1 }

// kernel: mil_forward.29
= control target key start
LH: loop header
LB: loop body
LE: loop exit
PB: predicated region body
PF: predicated region fallthrough
CT: control target
= control target key end

     0   :  { %9 = vsyncpa [#allocation5], 0  ;;  %s1332_s0 = inlined_call_operand.vmem [shape: bf16[64,128], index: 0, kind: input, shape index: {}]   ;;  %s1333_s1 = inlined_call_operand.vmem [shape: bf16[128,256], index: 1, kind: input, shape index: {}]   ;;  %s1334_s2 = inlined_call_operand.hbm [shape: f32[1,256], index: 2, kind: input, shape index: {}]   ;;  %s1335_s3 = inlined_call_operand.vmem [shape: bf16[64,256], index: 3, kind: input, shape index: {}]   ;;  %s1336_s4 = inlined_call_operand.vmem [shape: bf16[64,256], index: 4, kind: output, shape index: {}]  }
   0x1   :  { %11 = vsyncpa [#allocation5 + $0x1], 0  ;;  %s1174_s15 = smov 0   ;;  %s1176_s16 = smov 0  }
   0x2   :  { %s1178_s17 = smov 0   ;;  %s1180_s18 = smov 0  }
   0x3   :  { %s1182_s19 = smov 0   ;;  %s1184_s20 = smov 0  }
   0x4 LB: > { %s875_s21 = sadd.s32 4294967295, %s1147_s20   ;;  %s32_s22 = sadd.s32 1, %s1143_s19  ;;  %s1147_s20 = sphi %s1184_s20, %s17_s20   ;;  %s1143_s19 = sphi %s1182_s19, %s1344_s19   ;;  %s1139_s18 = sphi %s1180_s18, %s1343_s18   ;;  %s1135_s17 = sphi %s1178_s17, %s1342_s17   ;;  %s1131_s16 = sphi %s1176_s16, %s1341_s16   ;;  %s1127_s15 = sphi %s1174_s15, %s1340_s15  }
   0x5   : > { %p34_p0 = scmp.ge.s32.totalorder %s32_s22, 2  ;;  %s73_s23 = sadd.s32 1, %s1135_s17 }
   0x6   : > { %p80_p1 = scmp.ne.s32.totalorder %s1135_s17, %s1131_s16  ;;  %p81_p2 = scmp.eq.s32.totalorder %s1147_s20, 0 }
   0x7   : > { %s1346_s22 = smov (%p34_p0, %s32_s22), 0  ;;  %p112_p4 = scmp.ne.s32.totalorder %s1131_s16, %s1127_s15 }
   0x8   : > { %p1210_p3 = por %p81_p2, %p80_p1  ;;  %s69_s25 = ssub.s32 %s1143_s19, %s1346_s22 }
   0x9   : > { %p113_p5 = scmp.eq.s32.totalorder %s875_s21, 0  ;;  %p71_p6 = scmp.eq.s32.totalorder %s69_s25, 0 }
   0xa   : > { %p166_p7 = scmp.eq.s32.totalorder %s875_s21, 1  ;;  %p879_p10 = scmp.ge.s32.totalorder %s1147_s20, 2 }
   0xb   : > { %p1217_p8 = por %p113_p5, %p112_p4 }
   0xc   : > { %s1222_s27 = scalar_select %p71_p6, %s1135_s17, %s73_s23  }
   0xd   : > { %p1224_p9 = por %p166_p7, %p80_p1  ;;  %200 = sbr.rel (%p879_p10) target bundleno = 54 (0x36), region = 20 }
  0x12   : > { %203 = sbr.rel (!%p1210_p3) target bundleno = 38 (0x26), region = 24  ;;  %s205_s29 = sand.u32 (%p1210_p3), 1, %s1135_s17  }
  0x13   : > { %s881_s30 = sshll.u32 (%p1210_p3), %s1143_s19, 2  ;;  %s880_s5 = sshll.u32 (%p1210_p3), %s205_s29, 6 }
  0x14   : > { %s1236_s8 = scalar_lea.vmem (%p1210_p3), %s1333_s1, %s881_s30  ;;  %s207_s9 = scalar_lea.vmem (%p1210_p3), [#allocation3], %s880_s5 }
  0x15   : > { %v229_v0 = vld [vmem:[%s1236_s8] sm:$0xf] (%p1210_p3)  ;;  %v231_v1 = vld [vmem:[%s1236_s8 + $0x8] sm:$0xf] (%p1210_p3)  ;;  %v233_v2 = vld [vmem:[%s1236_s8 + $0x10] sm:$0xf] (%p1210_p3) }
  0x16   : > { %230 = vst [vmem:[%s207_s9] sm:$0xf] (%p1210_p3), %v229_v0  ;;  %v235_v3 = vld [vmem:[%s1236_s8 + $0x18] sm:$0xf] (%p1210_p3)  ;;  %v237_v4 = vld [vmem:[%s1236_s8 + $0x20] sm:$0xf] (%p1210_p3) }
  0x17   : > { %232 = vst [vmem:[%s207_s9 + $0x4] sm:$0xf] %v231_v1  ;;  %v239_v5 = vld [vmem:[%s1236_s8 + $0x28] sm:$0xf]  ;;  %v241_v6 = vld [vmem:[%s1236_s8 + $0x30] sm:$0xf] }
  0x18   : > { %234 = vst [vmem:[%s207_s9 + $0x8] sm:$0xf] %v233_v2  ;;  %v243_v7 = vld [vmem:[%s1236_s8 + $0x38] sm:$0xf]  ;;  %v245_v8 = vld [vmem:[%s1236_s8 + $0x40] sm:$0xf] }
  0x19   : > { %236 = vst [vmem:[%s207_s9 + $0xc] sm:$0xf] %v235_v3  ;;  %v247_v9 = vld [vmem:[%s1236_s8 + $0x48] sm:$0xf]  ;;  %v249_v10 = vld [vmem:[%s1236_s8 + $0x50] sm:$0xf] }
  0x1a   : > { %238 = vst [vmem:[%s207_s9 + $0x10] sm:$0xf] %v237_v4  ;;  %v251_v11 = vld [vmem:[%s1236_s8 + $0x58] sm:$0xf]  ;;  %v253_v12 = vld [vmem:[%s1236_s8 + $0x60] sm:$0xf] }
  0x1b   : > { %240 = vst [vmem:[%s207_s9 + $0x14] sm:$0xf] %v239_v5  ;;  %v255_v13 = vld [vmem:[%s1236_s8 + $0x68] sm:$0xf]  ;;  %v257_v14 = vld [vmem:[%s1236_s8 + $0x70] sm:$0xf] }
  0x1c   : > { %242 = vst [vmem:[%s207_s9 + $0x18] sm:$0xf] %v241_v6  ;;  %v259_v15 = vld [vmem:[%s1236_s8 + $0x78] sm:$0xf] }
  0x1d   : > { %244 = vst [vmem:[%s207_s9 + $0x1c] sm:$0xf] %v243_v7 }
  0x1e   : > { %246 = vst [vmem:[%s207_s9 + $0x20] sm:$0xf] %v245_v8 }
  0x1f   : > { %248 = vst [vmem:[%s207_s9 + $0x24] sm:$0xf] %v247_v9 }
  0x20   : > { %250 = vst [vmem:[%s207_s9 + $0x28] sm:$0xf] %v249_v10 }
  0x21   : > { %252 = vst [vmem:[%s207_s9 + $0x2c] sm:$0xf] %v251_v11 }
  0x22   : > { %254 = vst [vmem:[%s207_s9 + $0x30] sm:$0xf] %v253_v12 }
  0x23   : > { %256 = vst [vmem:[%s207_s9 + $0x34] sm:$0xf] %v255_v13 }
  0x24   : > { %258 = vst [vmem:[%s207_s9 + $0x38] sm:$0xf] %v257_v14 }
  0x25   : > { %260 = vst [vmem:[%s207_s9 + $0x3c] sm:$0xf] %v259_v15 }
  0x26 PF: > { %s317_s10 = sand.u32 1, %s1135_s17   ;;  %s323_s13 = scalar_lea.hbm %s1334_s2, %s1143_s19 }
  0x27   : > { %s325_s14 = sshll.u32 %s323_s13, 4  ;;  %s320_s15 = scalar_lea.vmem [#allocation4], %s317_s10  ;;  %s326_s14 = int_to_ptr.hbm [resolvable:$true] %s325_s14 }
  0x28   : > { %s327_s21 = sshll.u32 %s320_s15, 4  ;;  %s318_s23 = scalar_lea.sflag [#allocation5], %s317_s10  ;;  %s328_s21 = int_to_ptr.vmem [resolvable:$true] %s327_s21 }
  0x29   : > { %1018 = dma.hbm_to_vmem [thread:$0]  (%p1210_p3), %s326_s14, 16, %s328_s21, %s318_s23  }
  0x2a   : > { %333 = sbr.rel (!%p1210_p3) target bundleno = 54 (0x36), region = 69  ;;  %s882_s25 = sshll.u32 (%p1210_p3), %s317_s10, 5 }
  0x2b   : > { %s883_s29 = sshll.u32 (%p1210_p3), %s1143_s19, 2  ;;  %s337_s7 = scalar_lea.vmem (%p1210_p3), [#allocation6], %s882_s25 }
  0x2c   : > { %s342_s6 = scalar_lea.vmem (%p1210_p3), %s1335_s3, %s883_s29 }
  0x2d   : > { %v359_v16 = vld [vmem:[%s342_s6] sm:$0xf] (%p1210_p3)  ;;  %v361_v17 = vld [vmem:[%s342_s6 + $0x8] sm:$0xf] (%p1210_p3)  ;;  %v363_v18 = vld [vmem:[%s342_s6 + $0x10] sm:$0xf] (%p1210_p3) }
  0x2e   : > { %360 = vst [vmem:[%s337_s7] sm:$0xf] (%p1210_p3), %v359_v16  ;;  %v365_v19 = vld [vmem:[%s342_s6 + $0x18] sm:$0xf] (%p1210_p3)  ;;  %v367_v20 = vld [vmem:[%s342_s6 + $0x20] sm:$0xf] (%p1210_p3) }
  0x2f   : > { %362 = vst [vmem:[%s337_s7 + $0x4] sm:$0xf] %v361_v17  ;;  %v369_v21 = vld [vmem:[%s342_s6 + $0x28] sm:$0xf]  ;;  %v371_v22 = vld [vmem:[%s342_s6 + $0x30] sm:$0xf] }
  0x30   : > { %364 = vst [vmem:[%s337_s7 + $0x8] sm:$0xf] %v363_v18  ;;  %v373_v23 = vld [vmem:[%s342_s6 + $0x38] sm:$0xf] }
  0x31   : > { %366 = vst [vmem:[%s337_s7 + $0xc] sm:$0xf] %v365_v19 }
  0x32   : > { %368 = vst [vmem:[%s337_s7 + $0x10] sm:$0xf] %v367_v20 }
  0x33   : > { %370 = vst [vmem:[%s337_s7 + $0x14] sm:$0xf] %v369_v21 }
  0x34   : > { %372 = vst [vmem:[%s337_s7 + $0x18] sm:$0xf] %v371_v22 }
  0x35   : > { %374 = vst [vmem:[%s337_s7 + $0x1c] sm:$0xf] %v373_v23 }
  0x36 PF: > { %p884_p11 = scmp.ge.s32.totalorder %s1147_s20, 1  ;;  %p413_p12 = scmp.lt.s32.totalorder %s1147_s20, 3 }
  0x38   : > { %p414_p13 = pnand %p884_p11, %p413_p12 }
  0x39   : > { %s1270_s24 = sand.u32 (!%p414_p13), 1, %s1131_s16  }
  0x3a   : > { %417 = sbr.rel (%p414_p13) target bundleno = 257 (0x101), region = 110  ;;  %s885_s8 = sshll.u32 (!%p414_p13), %s1270_s24, 6 }
  0x3b   : > { %s1273_s9 = scalar_lea.vmem (!%p414_p13), [#allocation3], %s885_s8  ;;  %s427_s10 = scalar_lea.sflag (!%p414_p13), [#allocation5], %s1270_s24 }
  0x3c   : > { %s429_s11 = scalar_lea.vmem (!%p414_p13), [#allocation4], %s1270_s24 }
  0x3f   : > { %1122 = dma.done.wait (%p1217_p8), %s427_s10, 16  }
  0x40   : > { %1124 = vsyncadd (%p1217_p8), %s427_s10, 4294967280  ;;  %v951_v24 = vld [vmem:[%s1273_s9 + $0x38] sm:$0xff]  ;;  %v950_v25 = vld [vmem:[%s1273_s9 + $0x30] sm:$0xff]  ;;  %s886_s29 = sshll.u32 %s1270_s24, 5  ;;  %s937_s6 = sshll.u32 (%p1224_p9), %s1139_s18, 2 }
  0x41   : > { %588 = vmatpush.bf16.msra.mxu0 %v951_v24  ;;  %994 = vmatpush.bf16.msra.mxu1 %v951_v24  ;;  %v949_v26 = vld [vmem:[%s1273_s9 + $0x28] sm:$0xff]  ;;  %v948_v27 = vld [vmem:[%s1273_s9 + $0x20] sm:$0xff]  ;;  %v947_v28 = vld [vmem:[%s1273_s9 + $0x18] sm:$0xff]  ;;  %s438_s30 = scalar_lea.vmem [#allocation6], %s886_s29  ;;  %s475_s5 = scalar_lea.vmem [#allocation7], %s886_s29 }
  0x42   : > { %995 = vmatpush.bf16.msra.mxu2 %v951_v24  ;;  %996 = vmatpush.bf16.msra.mxu3 %v951_v24  ;;  %v946_v29 = vld [vmem:[%s1273_s9 + $0x10] sm:$0xff]  ;;  %v945_v30 = vld [vmem:[%s1273_s9 + $0x8] sm:$0xff]  ;;  %v944_v31 = vld [vmem:[%s1273_s9] sm:$0xff]  ;;  %s676_s8 = scalar_lea.vmem (%p1224_p9), %s1336_s4, %s937_s6 }
  0x43   : > { %v940_v32 = vld [vmem:[%s1332_s0] sm:$0xff]  ;;  %v941_v33 = vld [vmem:[%s1332_s0 + $0x8] sm:$0xff]  ;;  %v942_v34 = vld [vmem:[%s1332_s0 + $0x10] sm:$0xff] }
  0x44   : > { %v943_v35 = vld [vmem:[%s1332_s0 + $0x18] sm:$0xff]  ;;  %v1068_v38 = vld [vmem:[%s429_s11] ss:$0 sm:$0xff]  ;;  %v953_v39 = vld [vmem:[%s438_s30] sm:$0xff]  }
  0x45   : > { %589 = vmatpush.bf16.msra.mxu0 %v950_v25  ;;  %997 = vmatpush.bf16.msra.mxu1 %v950_v25  ;;  %v988_v40 = vld [vmem:[%s438_s30 + $0x8] sm:$0xff]   ;;  %v954_v42 = vunpack.c.l.bf16 %v953_v39  ;;  %v955_v47 = vunpack.c.h.bf16 %v953_v39  ;;  %v989_v53 = vld [vmem:[%s438_s30 + $0x10] sm:$0xff]   ;;  %v990_v54 = vld [vmem:[%s438_s30 + $0x18] sm:$0xff]  }
  0x46   : > { %998 = vmatpush.bf16.msra.mxu2 %v950_v25  ;;  %999 = vmatpush.bf16.msra.mxu3 %v950_v25  ;;  %v958_v44 = vunpack.c.l.bf16 %v988_v40  ;;  %v959_v48 = vunpack.c.h.bf16 %v988_v40  ;;  %v962_v60 = vunpack.c.l.bf16 %v989_v53  ;;  %v966_v62 = vunpack.c.l.bf16 %v990_v54 }
  0x47   : > { %v963_v3 = vunpack.c.h.bf16 %v989_v53  ;;  %v967_v4 = vunpack.c.h.bf16 %v990_v54 }
  0x49   : > { %590 = vmatpush.bf16.msra.mxu0 %v949_v26  ;;  %1000 = vmatpush.bf16.msra.mxu1 %v949_v26 }
  0x4a   : > { %1001 = vmatpush.bf16.msra.mxu2 %v949_v26  ;;  %1002 = vmatpush.bf16.msra.mxu3 %v949_v26 }
  0x4d   : > { %591 = vmatpush.bf16.msra.mxu0 %v948_v27  ;;  %1003 = vmatpush.bf16.msra.mxu1 %v948_v27 }
  0x4e   : > { %1004 = vmatpush.bf16.msra.mxu2 %v948_v27  ;;  %1005 = vmatpush.bf16.msra.mxu3 %v948_v27 }
  0x51   : > { %592 = vmatpush.bf16.msra.mxu0 %v947_v28  ;;  %1006 = vmatpush.bf16.msra.mxu1 %v947_v28 }
  0x52   : > { %1007 = vmatpush.bf16.msra.mxu2 %v947_v28  ;;  %1008 = vmatpush.bf16.msra.mxu3 %v947_v28 }
  0x55   : > { %593 = vmatpush.bf16.msra.mxu0 %v946_v29  ;;  %1009 = vmatpush.bf16.msra.mxu1 %v946_v29 }
  0x56   : > { %1010 = vmatpush.bf16.msra.mxu2 %v946_v29  ;;  %1011 = vmatpush.bf16.msra.mxu3 %v946_v29 }
  0x59   : > { %594 = vmatpush.bf16.msra.mxu0 %v945_v30  ;;  %1012 = vmatpush.bf16.msra.mxu1 %v945_v30 }
  0x5a   : > { %1013 = vmatpush.bf16.msra.mxu2 %v945_v30  ;;  %1014 = vmatpush.bf16.msra.mxu3 %v945_v30 }
  0x5d   : > { %595 = vmatpush.bf16.msra.mxu0 %v944_v31  ;;  %1015 = vmatpush.bf16.msra.mxu1 %v944_v31 }
  0x5e   : > { %1016 = vmatpush.bf16.msra.mxu2 %v944_v31  ;;  %1017 = vmatpush.bf16.msra.mxu3 %v944_v31 }
  0x60   : > { %596 = vmatmul.bf16.vlgmr.msra.gmra.mxu0 %v940_v32  ;;  %601 = vmatmul.bf16.vlgmr.msra.gmra.mxu1 %v941_v33 }
  0x61   : > { %606 = vmatmul.bf16.vlgmr.msra.gmra.mxu2 %v942_v34  ;;  %611 = vmatmul.bf16.vlgmr.msra.gmra.mxu3 %v943_v35 }
  0xdd   : > { %v597_v36 = vpop.f32.mrf.mxu0  ;;  %v602_v37 = vpop.f32.mrf.mxu1 }
  0xde   : > { %v598_v41 = vadd.f32 %v1068_v38, %v597_v36  ;;  %v603_v43 = vadd.f32 %v1068_v38, %v602_v37 }
  0xe0   : > { %v633_v51 = vadd.f32 %v954_v42, %v598_v41  ;;  %v635_v52 = vadd.f32 %v958_v44, %v603_v43 }
  0xe2   : > { %v641_v63 = vmax.f32 %v633_v51, 0.0  ;;  %v643_v0 = vmax.f32 %v635_v52, 0.0 }
  0xe4   : > { %v607_v45 = vpop.f32.mrf.mxu2  ;;  %v612_v46 = vpop.f32.mrf.mxu3 }
  0xe5   : > { %v599_v49 = vpop.f32.mrf.mxu0  ;;  %v604_v50 = vpop.f32.mrf.mxu1  ;;  %v608_v59 = vadd.f32 %v1068_v38, %v607_v45  ;;  %v613_v61 = vadd.f32 %v1068_v38, %v612_v46 }
  0xe6   : > { %v600_v55 = vadd.f32 %v1068_v38, %v599_v49  ;;  %v605_v56 = vadd.f32 %v1068_v38, %v604_v50 }
  0xe7   : > { %v637_v9 = vadd.f32 %v962_v60, %v608_v59  ;;  %v639_v10 = vadd.f32 %v966_v62, %v613_v61 }
  0xe8   : > { %v634_v57 = vadd.f32 %v955_v47, %v600_v55  ;;  %v636_v58 = vadd.f32 %v959_v48, %v605_v56 }
  0xe9   : > { %v645_v15 = vmax.f32 %v637_v9, 0.0  ;;  %v647_v16 = vmax.f32 %v639_v10, 0.0 }
  0xea   : > { %v642_v1 = vmax.f32 %v634_v57, 0.0  ;;  %v644_v2 = vmax.f32 %v636_v58, 0.0 }
  0xec   : > { %v971_v5 = vpack.c.bf16 %v642_v1, %v641_v63  ;;  %v976_v6 = vpack.c.bf16 %v644_v2, %v643_v0  ;;  %v609_v7 = vpop.f32.mrf.mxu2  ;;  %v614_v8 = vpop.f32.mrf.mxu3 }
  0xed   : > { %v610_v11 = vadd.f32 %v1068_v38, %v609_v7  ;;  %v615_v12 = vadd.f32 %v1068_v38, %v614_v8 }
  0xee   : > { %972 = vst [vmem:[%s475_s5] sm:$0xff] %v971_v5  }
  0xef   : > { %991 = vst [vmem:[%s475_s5 + $0x8] sm:$0xff] %v976_v6   ;;  %v638_v13 = vadd.f32 %v963_v3, %v610_v11  ;;  %v640_v14 = vadd.f32 %v967_v4, %v615_v12 }
  0xf1   : > { %v646_v17 = vmax.f32 %v638_v13, 0.0  ;;  %v648_v18 = vmax.f32 %v640_v14, 0.0 }
  0xf2   : > { %671 = sbr.rel (!%p1224_p9) target bundleno = 257 (0x101), region = 126 }
  0xf3   : > { %v981_v19 = vpack.c.bf16 %v646_v17, %v645_v15  ;;  %v986_v20 = vpack.c.bf16 %v648_v18, %v647_v16 }
  0xf5   : > { %992 = vst [vmem:[%s475_s5 + $0x10] sm:$0xff] %v981_v19   ;;  %v693_v21 = vld [vmem:[%s475_s5] sm:$0xf] (%p1224_p9)  ;;  %v695_v22 = vld [vmem:[%s475_s5 + $0x4] sm:$0xf] (%p1224_p9) }
  0xf6   : > { %993 = vst [vmem:[%s475_s5 + $0x18] sm:$0xff] %v986_v20   ;;  %v697_v23 = vld [vmem:[%s475_s5 + $0x8] sm:$0xf] (%p1224_p9)  ;;  %v699_v24 = vld [vmem:[%s475_s5 + $0xc] sm:$0xf] (%p1224_p9) }
  0xf7   : > { %694 = vst [vmem:[%s676_s8] sm:$0xf] %v693_v21 }
  0xf8   : > { %696 = vst [vmem:[%s676_s8 + $0x8] sm:$0xf] %v695_v22 }
  0xf9   : > { %698 = vst [vmem:[%s676_s8 + $0x10] sm:$0xf] %v697_v23 }
  0xfa   : > { %700 = vst [vmem:[%s676_s8 + $0x18] sm:$0xf] %v699_v24 }
  0xfc   : > { %v701_v25 = vld [vmem:[%s475_s5 + $0x10] sm:$0xf]  ;;  %v703_v26 = vld [vmem:[%s475_s5 + $0x14] sm:$0xf] }
  0xfd   : > { %v705_v27 = vld [vmem:[%s475_s5 + $0x18] sm:$0xf]  ;;  %702 = vst [vmem:[%s676_s8 + $0x20] sm:$0xf] %v701_v25  ;;  %v707_v28 = vld [vmem:[%s475_s5 + $0x1c] sm:$0xf] }
  0xfe   : > { %704 = vst [vmem:[%s676_s8 + $0x28] sm:$0xf] %v703_v26 }
  0xff   : > { %706 = vst [vmem:[%s676_s8 + $0x30] sm:$0xf] %v705_v27 }
 0x100   : > { %708 = vst [vmem:[%s676_s8 + $0x38] sm:$0xf] %v707_v28 }
 0x101 PF: > { %s17_s20 = sadd.s32 1, %s1147_s20   ;;  %s1340_s15 = smov %s1131_s16 }
 0x102   : > { %p14_p0 = scmp.ge.s32.totalorder %s17_s20, 4   ;;  %s1341_s16 = smov %s1135_s17 }
 0x103   : > { %s1342_s17 = smov %s1222_s27  ;;  %s1343_s18 = smov %s1143_s19 }
 0x104   : > { %s1344_s19 = smov %s1346_s22  ;;  %16 = sbr.rel (!%p14_p0) target bundleno = 4 (0x4), region = 218 }
 0x109   :  { %758 = vsyncpa [#allocation5], 1 }
 0x10a   :  { %760 = vsyncpa [#allocation5 + $0x1], 1 }

// kernel: mil_forward.27
= control target key start
LH: loop header
LB: loop body
LE: loop exit
PB: predicated region body
PF: predicated region fallthrough
CT: control target
= control target key end

     0   :  { %s2537_s12 = smov 0   ;;  %s2539_s13 = smov 0   ;;  %s2974_s0 = inlined_call_operand.vmem [shape: bf16[64,1792], index: 0, kind: input, shape index: {}]   ;;  %s2975_s1 = inlined_call_operand.vmem [shape: bf16[1792,128], index: 1, kind: input, shape index: {}]   ;;  %s2976_s2 = inlined_call_operand.vmem [shape: f32[1,128], index: 2, kind: input, shape index: {}]   ;;  %s2977_s3 = inlined_call_operand.vmem [shape: bf16[64,128], index: 3, kind: output, shape index: {}]  }
   0x1   :  { %s2541_s14 = smov 0  }
   0x2 LB: > { %s32_s15 = sadd.s32 1, %s2511_s13  ;;  %p1733_p0 = scmp.ge.s32.totalorder %s2515_s14, 1  ;;  %s2515_s14 = sphi %s2541_s14, %s13_s14   ;;  %s2511_s13 = sphi %s2539_s13, %s2979_s13   ;;  %s2507_s12 = sphi %s2537_s12, %s2978_s12  }
   0x3   : > { %p34_p1 = scmp.ge.s32.totalorder %s32_s15, 2  ;;  %p191_p2 = scmp.lt.s32.totalorder %s2515_s14, 3 }
   0x5   : > { %s2981_s15 = smov (%p34_p1, %s32_s15), 0  ;;  %p192_p3 = pnand %p1733_p0, %p191_p2 }
   0x6   : > { %s1734_s17 = sshll.u32 (!%p192_p3), %s2507_s12, 2 }
   0x7   : > { %195 = sbr.rel (%p192_p3) target bundleno = 291 (0x123), region = 32  ;;  %p236_p4 = scmp.lt.s32.totalorder (!%p192_p3), %s1734_s17, 7 }
   0xc   : > { %v2335_v0 = vld [vmem:[%s2975_s1 + $0x38] sm:$0xff]  ;;  %v2334_v4 = vld [vmem:[%s2975_s1 + $0x30] sm:$0xff]  ;;  %v2333_v8 = vld [vmem:[%s2975_s1 + $0x28] sm:$0xff]  ;;  %s2983_s17 = smov (!%p236_p4, %s1734_s17), 7 }
   0xd   : > { %v2343_v1 = vld [vmem:[%s2975_s1 + $0x78] sm:$0xff]  ;;  %1335 = vmatpush.bf16.msra.mxu0 %v2335_v0  ;;  %v2342_v5 = vld [vmem:[%s2975_s1 + $0x70] sm:$0xff]  ;;  %v2341_v9 = vld [vmem:[%s2975_s1 + $0x68] sm:$0xff]  ;;  %s2467_s10 = smul.u32 56, %s2983_s17 }
   0xe   : > { %v2351_v2 = vld [vmem:[%s2975_s1 + $0xb8] sm:$0xff]  ;;  %1354 = vmatpush.bf16.msra.mxu1 %v2343_v1  ;;  %v2350_v6 = vld [vmem:[%s2975_s1 + $0xb0] sm:$0xff]  ;;  %v2349_v10 = vld [vmem:[%s2975_s1 + $0xa8] sm:$0xff] }
   0xf   : > { %v2359_v3 = vld [vmem:[%s2975_s1 + $0xf8] sm:$0xff]  ;;  %1373 = vmatpush.bf16.msra.mxu2 %v2351_v2  ;;  %v2358_v7 = vld [vmem:[%s2975_s1 + $0xf0] sm:$0xff]  ;;  %v2357_v11 = vld [vmem:[%s2975_s1 + $0xe8] sm:$0xff]  ;;  %s2642_s12 = scalar_lea.vmem %s2974_s0, %s2467_s10 }
  0x10   : > { %1392 = vmatpush.bf16.msra.mxu3 %v2359_v3  ;;  %v2332_v12 = vld [vmem:[%s2975_s1 + $0x20] sm:$0xff]  ;;  %v2331_v16 = vld [vmem:[%s2975_s1 + $0x18] sm:$0xff]  ;;  %v2330_v20 = vld [vmem:[%s2975_s1 + $0x10] sm:$0xff] }
  0x11   : > { %1336 = vmatpush.bf16.msra.mxu0 %v2334_v4  ;;  %v2340_v13 = vld [vmem:[%s2975_s1 + $0x60] sm:$0xff]  ;;  %v2339_v17 = vld [vmem:[%s2975_s1 + $0x58] sm:$0xff]  ;;  %v2338_v21 = vld [vmem:[%s2975_s1 + $0x50] sm:$0xff] }
  0x12   : > { %1355 = vmatpush.bf16.msra.mxu1 %v2342_v5  ;;  %v2348_v14 = vld [vmem:[%s2975_s1 + $0xa0] sm:$0xff]  ;;  %v2347_v18 = vld [vmem:[%s2975_s1 + $0x98] sm:$0xff]  ;;  %v2346_v22 = vld [vmem:[%s2975_s1 + $0x90] sm:$0xff] }
  0x13   : > { %1374 = vmatpush.bf16.msra.mxu2 %v2350_v6  ;;  %v2356_v15 = vld [vmem:[%s2975_s1 + $0xe0] sm:$0xff]  ;;  %v2355_v19 = vld [vmem:[%s2975_s1 + $0xd8] sm:$0xff]  ;;  %v2354_v23 = vld [vmem:[%s2975_s1 + $0xd0] sm:$0xff] }
  0x14   : > { %1393 = vmatpush.bf16.msra.mxu3 %v2358_v7  ;;  %v2329_v24 = vld [vmem:[%s2975_s1 + $0x8] sm:$0xff]  ;;  %v2328_v28 = vld [vmem:[%s2975_s1] sm:$0xff]  ;;  %v2307_v33 = vld [vmem:[%s2642_s12 + $0x34] sm:$0xf0] }
  0x15   : > { %1337 = vmatpush.bf16.msra.mxu0 %v2333_v8  ;;  %v2337_v25 = vld [vmem:[%s2975_s1 + $0x48] sm:$0xff]  ;;  %v2336_v29 = vld [vmem:[%s2975_s1 + $0x40] sm:$0xff]  ;;  %v1742_v35 = vld [vmem:[%s2642_s12 + $0x38] sm:$0xf0] }
  0x16   : > { %1356 = vmatpush.bf16.msra.mxu1 %v2341_v9  ;;  %v2345_v26 = vld [vmem:[%s2975_s1 + $0x88] sm:$0xff]  ;;  %v2344_v30 = vld [vmem:[%s2975_s1 + $0x80] sm:$0xff]  ;;  %v2383_v40 = vld [vmem:[%s2975_s1 + $0x1b8] sm:$0xff] }
  0x17   : > { %1375 = vmatpush.bf16.msra.mxu2 %v2349_v10  ;;  %v2353_v27 = vld [vmem:[%s2975_s1 + $0xc8] sm:$0xff]  ;;  %v2352_v31 = vld [vmem:[%s2975_s1 + $0xc0] sm:$0xff]  ;;  %v2367_v41 = vld [vmem:[%s2975_s1 + $0x138] sm:$0xff] }
  0x18   : > { %1394 = vmatpush.bf16.msra.mxu3 %v2357_v11  ;;  %v1740_v32 = vld [vmem:[%s2642_s12] sm:$0xf]  ;;  %v2300_v34 = vld [vmem:[%s2642_s12 + $0x4] sm:$0xf]  ;;  %v1748_v36 = vld [vmem:[%s2642_s12 + $0x8] sm:$0xf] }
  0x19   : > { %1338 = vmatpush.bf16.msra.mxu0 %v2332_v12  ;;  %v2308_v37 = vld [vmem:[%s2642_s12 + $0x3c] sm:$0xf0]  ;;  %v2301_v38 = vld [vmem:[%s2642_s12 + $0xc] sm:$0xf]  ;;  %v1750_v39 = vld [vmem:[%s2642_s12 + $0x40] sm:$0xf0]  ;;  %v1741_v42 = vor.u32 %v2307_v33, %v1740_v32  ;;  %v1745_v43 = vor.u32 %v2300_v34, %v1742_v35 }
  0x1a   : > { %1357 = vmatpush.bf16.msra.mxu1 %v2340_v13  ;;  %v1749_v44 = vor.u32 %v2308_v37, %v1748_v36  ;;  %v1753_v45 = vor.u32 %v2301_v38, %v1750_v39  ;;  %v2375_v46 = vld [vmem:[%s2975_s1 + $0x178] sm:$0xff]  ;;  %v2382_v48 = vld [vmem:[%s2975_s1 + $0x1b0] sm:$0xff]  ;;  %v2381_v52 = vld [vmem:[%s2975_s1 + $0x1a8] sm:$0xff] }
  0x1b   : > { %1376 = vmatpush.bf16.msra.mxu2 %v2348_v14  ;;  %v2391_v47 = vld [vmem:[%s2975_s1 + $0x1f8] sm:$0xff]  ;;  %v2366_v49 = vld [vmem:[%s2975_s1 + $0x130] sm:$0xff]  ;;  %v2365_v53 = vld [vmem:[%s2975_s1 + $0x128] sm:$0xff] }
  0x1c   : > { %1395 = vmatpush.bf16.msra.mxu3 %v2356_v15  ;;  %v2374_v50 = vld [vmem:[%s2975_s1 + $0x170] sm:$0xff]  ;;  %v2373_v54 = vld [vmem:[%s2975_s1 + $0x168] sm:$0xff]  ;;  %v2380_v56 = vld [vmem:[%s2975_s1 + $0x1a0] sm:$0xff] }
  0x1d   : > { %1339 = vmatpush.bf16.msra.mxu0 %v2331_v16  ;;  %v2390_v51 = vld [vmem:[%s2975_s1 + $0x1f0] sm:$0xff]  ;;  %v2389_v55 = vld [vmem:[%s2975_s1 + $0x1e8] sm:$0xff]  ;;  %v2364_v57 = vld [vmem:[%s2975_s1 + $0x120] sm:$0xff] }
  0x1e   : > { %1358 = vmatpush.bf16.msra.mxu1 %v2339_v17  ;;  %v2372_v58 = vld [vmem:[%s2975_s1 + $0x160] sm:$0xff]  ;;  %v1796_v60 = vld [vmem:[%s2642_s12 + $0x70] sm:$0xf]  ;;  %v2321_v61 = vld [vmem:[%s2642_s12 + $0xa4] sm:$0xf0] }
  0x1f   : > { %1377 = vmatpush.bf16.msra.mxu2 %v2347_v18  ;;  %v2388_v59 = vld [vmem:[%s2975_s1 + $0x1e0] sm:$0xff]  ;;  %v2314_v62 = vld [vmem:[%s2642_s12 + $0x74] sm:$0xf]  ;;  %v1798_v63 = vld [vmem:[%s2642_s12 + $0xa8] sm:$0xf0]  ;;  %v1797_v6 = vor.u32 %v2321_v61, %v1796_v60 }
  0x20   : > { %1396 = vmatpush.bf16.msra.mxu3 %v2355_v19  ;;  %v1804_v0 = vld [vmem:[%s2642_s12 + $0x78] sm:$0xf]  ;;  %v2322_v1 = vld [vmem:[%s2642_s12 + $0xac] sm:$0xf0]  ;;  %v2315_v2 = vld [vmem:[%s2642_s12 + $0x7c] sm:$0xf]  ;;  %v1801_v7 = vor.u32 %v2314_v62, %v1798_v63 }
  0x21   : > { %1340 = vmatpush.bf16.msra.mxu0 %v2330_v20  ;;  %v1806_v3 = vld [vmem:[%s2642_s12 + $0xb0] sm:$0xf0]  ;;  %v2379_v4 = vld [vmem:[%s2975_s1 + $0x198] sm:$0xff]  ;;  %v1805_v8 = vor.u32 %v2322_v1, %v1804_v0  ;;  %v2377_v16 = vld [vmem:[%s2975_s1 + $0x188] sm:$0xff] }
  0x22   : > { %1359 = vmatpush.bf16.msra.mxu1 %v2338_v21  ;;  %v2363_v5 = vld [vmem:[%s2975_s1 + $0x118] sm:$0xff]  ;;  %v1809_v9 = vor.u32 %v2315_v2, %v1806_v3  ;;  %v2378_v12 = vld [vmem:[%s2975_s1 + $0x190] sm:$0xff]  ;;  %v2361_v17 = vld [vmem:[%s2975_s1 + $0x108] sm:$0xff] }
  0x23   : > { %1378 = vmatpush.bf16.msra.mxu2 %v2346_v22  ;;  %v2371_v10 = vld [vmem:[%s2975_s1 + $0x158] sm:$0xff]  ;;  %v2362_v13 = vld [vmem:[%s2975_s1 + $0x110] sm:$0xff]  ;;  %v2369_v18 = vld [vmem:[%s2975_s1 + $0x148] sm:$0xff] }
  0x24   : > { %1397 = vmatpush.bf16.msra.mxu3 %v2354_v23  ;;  %v2387_v11 = vld [vmem:[%s2975_s1 + $0x1d8] sm:$0xff]  ;;  %v2370_v14 = vld [vmem:[%s2975_s1 + $0x150] sm:$0xff]  ;;  %v2385_v19 = vld [vmem:[%s2975_s1 + $0x1c8] sm:$0xff] }
  0x25   : > { %1341 = vmatpush.bf16.msra.mxu0 %v2329_v24  ;;  %v2386_v15 = vld [vmem:[%s2975_s1 + $0x1d0] sm:$0xff]  ;;  %v2376_v20 = vld [vmem:[%s2975_s1 + $0x180] sm:$0xff]  ;;  %v2303_v32 = vld [vmem:[%s2642_s12 + $0x1c] sm:$0xf] }
  0x26   : > { %1360 = vmatpush.bf16.msra.mxu1 %v2337_v25  ;;  %v2360_v21 = vld [vmem:[%s2975_s1 + $0x100] sm:$0xff]  ;;  %v1756_v24 = vld [vmem:[%s2642_s12 + $0x10] sm:$0xf]  ;;  %v2415_v25 = vld [vmem:[%s2975_s1 + $0x2b8] sm:$0xff] }
  0x27   : > { %1379 = vmatpush.bf16.msra.mxu2 %v2345_v26  ;;  %v2368_v22 = vld [vmem:[%s2975_s1 + $0x140] sm:$0xff]  ;;  %v2399_v26 = vld [vmem:[%s2975_s1 + $0x238] sm:$0xff]  ;;  %v1766_v33 = vld [vmem:[%s2642_s12 + $0x50] sm:$0xf0] }
  0x28   : > { %1398 = vmatpush.bf16.msra.mxu3 %v2353_v27  ;;  %v2384_v23 = vld [vmem:[%s2975_s1 + $0x1c0] sm:$0xff]  ;;  %v2309_v27 = vld [vmem:[%s2642_s12 + $0x44] sm:$0xf0]  ;;  %v2407_v34 = vld [vmem:[%s2975_s1 + $0x278] sm:$0xff] }
  0x29   : > { %1342 = vmatpush.bf16.msra.mxu0 %v2328_v28  ;;  %v2302_v28 = vld [vmem:[%s2642_s12 + $0x14] sm:$0xf]  ;;  %v2423_v35 = vld [vmem:[%s2975_s1 + $0x2f8] sm:$0xff]  ;;  %v1757_v36 = vor.u32 %v2309_v27, %v1756_v24  ;;  %v1822_v61 = vld [vmem:[%s2642_s12 + $0xc0] sm:$0xf0] }
  0x2a   : > { %1361 = vmatpush.bf16.msra.mxu1 %v2336_v29  ;;  %v1758_v29 = vld [vmem:[%s2642_s12 + $0x48] sm:$0xf0]  ;;  %v2414_v37 = vld [vmem:[%s2975_s1 + $0x2b0] sm:$0xff]  ;;  %v2395_v60 = vld [vmem:[%s2975_s1 + $0x218] sm:$0xff] }
  0x2b   : > { %1380 = vmatpush.bf16.msra.mxu2 %v2344_v30  ;;  %v1764_v30 = vld [vmem:[%s2642_s12 + $0x18] sm:$0xf]  ;;  %v1761_v38 = vor.u32 %v2302_v28, %v1758_v29  ;;  %v2410_v1 = vld [vmem:[%s2975_s1 + $0x290] sm:$0xff]  ;;  %v2312_v24 = vld [vmem:[%s2642_s12 + $0x5c] sm:$0xf0] }
  0x2c   : > { %1399 = vmatpush.bf16.msra.mxu3 %v2352_v31  ;;  %1343 = vmatmul.bf16.vlgmr.msra.gmra.mxu0 %v1741_v42  ;;  %v2310_v31 = vld [vmem:[%s2642_s12 + $0x4c] sm:$0xf0]  ;;  %v2403_v62 = vld [vmem:[%s2975_s1 + $0x258] sm:$0xff] }
  0x2d   : > { %1411 = vmatpush.bf16.msrb.mxu0 %v2367_v41  ;;  %1362 = vmatmul.bf16.vlgmr.msra.gmra.mxu1 %v1745_v43  ;;  %v1765_v39 = vor.u32 %v2310_v31, %v1764_v30  ;;  %v2398_v41 = vld [vmem:[%s2975_s1 + $0x230] sm:$0xff]  ;;  %v2419_v63 = vld [vmem:[%s2975_s1 + $0x2d8] sm:$0xff] }
  0x2e   : > { %1381 = vmatmul.bf16.vlgmr.msra.gmra.mxu2 %v1749_v44  ;;  %1430 = vmatpush.bf16.msrb.mxu1 %v2375_v46  ;;  %v2406_v42 = vld [vmem:[%s2975_s1 + $0x270] sm:$0xff]  ;;  %v2413_v44 = vld [vmem:[%s2975_s1 + $0x2a8] sm:$0xff] }
  0x2f   : > { %1449 = vmatpush.bf16.msrb.mxu2 %v2383_v40  ;;  %1400 = vmatmul.bf16.vlgmr.msra.gmra.mxu3 %v1753_v45  ;;  %v1769_v40 = vor.u32 %v2303_v32, %v1766_v33  ;;  %v2422_v43 = vld [vmem:[%s2975_s1 + $0x2f0] sm:$0xff]  ;;  %v2397_v45 = vld [vmem:[%s2975_s1 + $0x228] sm:$0xff] }
  0x30   : > { %1468 = vmatpush.bf16.msrb.mxu3 %v2391_v47  ;;  %v2405_v46 = vld [vmem:[%s2975_s1 + $0x268] sm:$0xff]  ;;  %v2438_v28 = vld [vmem:[%s2975_s1 + $0x370] sm:$0xff] }
  0x31   : > { %1412 = vmatpush.bf16.msrb.mxu0 %v2366_v49  ;;  %v2421_v47 = vld [vmem:[%s2975_s1 + $0x2e8] sm:$0xff]  ;;  %v2396_v49 = vld [vmem:[%s2975_s1 + $0x220] sm:$0xff] }
  0x32   : > { %1431 = vmatpush.bf16.msrb.mxu1 %v2374_v50  ;;  %v2404_v50 = vld [vmem:[%s2975_s1 + $0x260] sm:$0xff]  ;;  %v2429_v32 = vld [vmem:[%s2975_s1 + $0x328] sm:$0xff] }
  0x33   : > { %1450 = vmatpush.bf16.msrb.mxu2 %v2382_v48  ;;  %v2412_v48 = vld [vmem:[%s2975_s1 + $0x2a0] sm:$0xff]  ;;  %v2437_v33 = vld [vmem:[%s2975_s1 + $0x368] sm:$0xff] }
  0x34   : > { %1469 = vmatpush.bf16.msrb.mxu3 %v2390_v51  ;;  %v2420_v51 = vld [vmem:[%s2975_s1 + $0x2e0] sm:$0xff] }
  0x35   : > { %1413 = vmatpush.bf16.msrb.mxu0 %v2365_v53  ;;  %v2323_v53 = vld [vmem:[%s2642_s12 + $0xb4] sm:$0xf0] }
  0x36   : > { %1432 = vmatpush.bf16.msrb.mxu1 %v2373_v54  ;;  %v2411_v54 = vld [vmem:[%s2975_s1 + $0x298] sm:$0xff] }
  0x37   : > { %1451 = vmatpush.bf16.msrb.mxu2 %v2381_v52  ;;  %v1812_v52 = vld [vmem:[%s2642_s12 + $0x80] sm:$0xf] }
  0x38   : > { %1470 = vmatpush.bf16.msrb.mxu3 %v2389_v55  ;;  %v2316_v55 = vld [vmem:[%s2642_s12 + $0x84] sm:$0xf]  ;;  %v1813_v0 = vor.u32 %v2323_v53, %v1812_v52  ;;  %v2425_v52 = vld [vmem:[%s2975_s1 + $0x308] sm:$0xff] }
  0x39   : > { %1414 = vmatpush.bf16.msrb.mxu0 %v2364_v57  ;;  %v1820_v57 = vld [vmem:[%s2642_s12 + $0x88] sm:$0xf] }
  0x3a   : > { %1433 = vmatpush.bf16.msrb.mxu1 %v2372_v58  ;;  %v2324_v58 = vld [vmem:[%s2642_s12 + $0xbc] sm:$0xf0]  ;;  %v2433_v53 = vld [vmem:[%s2975_s1 + $0x348] sm:$0xff] }
  0x3b   : > { %1452 = vmatpush.bf16.msrb.mxu2 %v2380_v56  ;;  %v1814_v56 = vld [vmem:[%s2642_s12 + $0xb8] sm:$0xf0]  ;;  %v1821_v3 = vor.u32 %v2324_v58, %v1820_v57  ;;  %v2313_v57 = vld [vmem:[%s2642_s12 + $0x64] sm:$0xf0]  ;;  %v1844_v58 = vld [vmem:[%s2642_s12 + $0xa0] sm:$0xf] }
  0x3c   : > { %1471 = vmatpush.bf16.msrb.mxu3 %v2388_v59  ;;  %1348 = vmatmul.bf16.gmra.mxu0 %v1797_v6  ;;  %v2317_v59 = vld [vmem:[%s2642_s12 + $0x8c] sm:$0xf]  ;;  %v1817_v2 = vor.u32 %v2316_v55, %v1814_v56  ;;  %v2402_v6 = vld [vmem:[%s2975_s1 + $0x250] sm:$0xff]  ;;  %v2432_v55 = vld [vmem:[%s2975_s1 + $0x340] sm:$0xff] }
  0x3d   : > { %1415 = vmatpush.bf16.msrb.mxu0 %v2363_v5  ;;  %1367 = vmatmul.bf16.gmra.mxu1 %v1801_v7  ;;  %v2394_v5 = vld [vmem:[%s2975_s1 + $0x210] sm:$0xff] }
  0x3e   : > { %1386 = vmatmul.bf16.gmra.mxu2 %v1805_v8  ;;  %1434 = vmatpush.bf16.msrb.mxu1 %v2371_v10  ;;  %v2418_v7 = vld [vmem:[%s2975_s1 + $0x2d0] sm:$0xff]  ;;  %v2409_v8 = vld [vmem:[%s2975_s1 + $0x288] sm:$0xff] }
  0x3f   : > { %1453 = vmatpush.bf16.msrb.mxu2 %v2379_v4  ;;  %1405 = vmatmul.bf16.gmra.mxu3 %v1809_v9  ;;  %v1825_v4 = vor.u32 %v2317_v59, %v1822_v61  ;;  %v2393_v9 = vld [vmem:[%s2975_s1 + $0x208] sm:$0xff]  ;;  %v1788_v56 = vld [vmem:[%s2642_s12 + $0x30] sm:$0xf]  ;;  %v2327_v59 = vld [vmem:[%s2642_s12 + $0xd4] sm:$0xf0] }
  0x40   : > { %1472 = vmatpush.bf16.msrb.mxu3 %v2387_v11  ;;  %v2401_v10 = vld [vmem:[%s2975_s1 + $0x248] sm:$0xff] }
  0x41   : > { %1416 = vmatpush.bf16.msrb.mxu0 %v2362_v13  ;;  %v2417_v11 = vld [vmem:[%s2975_s1 + $0x2c8] sm:$0xff]  ;;  %v2431_v13 = vld [vmem:[%s2975_s1 + $0x338] sm:$0xff] }
  0x42   : > { %1435 = vmatpush.bf16.msrb.mxu1 %v2370_v14  ;;  %v2392_v14 = vld [vmem:[%s2975_s1 + $0x200] sm:$0xff]  ;;  %v1790_v61 = vld [vmem:[%s2642_s12 + $0x68] sm:$0xf0] }
  0x43   : > { %1454 = vmatpush.bf16.msrb.mxu2 %v2378_v12  ;;  %v2408_v12 = vld [vmem:[%s2975_s1 + $0x280] sm:$0xff] }
  0x44   : > { %1473 = vmatpush.bf16.msrb.mxu3 %v2386_v15  ;;  %v2400_v15 = vld [vmem:[%s2975_s1 + $0x240] sm:$0xff] }
  0x45   : > { %1417 = vmatpush.bf16.msrb.mxu0 %v2361_v17  ;;  %v1772_v17 = vld [vmem:[%s2642_s12 + $0x20] sm:$0xf] }
  0x46   : > { %1436 = vmatpush.bf16.msrb.mxu1 %v2369_v18  ;;  %v2439_v18 = vld [vmem:[%s2975_s1 + $0x378] sm:$0xff] }
  0x47   : > { %1455 = vmatpush.bf16.msrb.mxu2 %v2377_v16  ;;  %v2416_v16 = vld [vmem:[%s2975_s1 + $0x2c0] sm:$0xff] }
  0x48   : > { %1474 = vmatpush.bf16.msrb.mxu3 %v2385_v19  ;;  %v2311_v19 = vld [vmem:[%s2642_s12 + $0x54] sm:$0xf0] }
  0x49   : > { %1418 = vmatpush.bf16.msrb.mxu0 %v2360_v21  ;;  %v2430_v21 = vld [vmem:[%s2975_s1 + $0x330] sm:$0xff]  ;;  %v1773_v27 = vor.u32 %v2311_v19, %v1772_v17 }
  0x4a   : > { %1437 = vmatpush.bf16.msrb.mxu1 %v2368_v22  ;;  %v1774_v22 = vld [vmem:[%s2642_s12 + $0x58] sm:$0xf0] }
  0x4b   : > { %1456 = vmatpush.bf16.msrb.mxu2 %v2376_v20  ;;  %v2304_v20 = vld [vmem:[%s2642_s12 + $0x24] sm:$0xf] }
  0x4c   : > { %1475 = vmatpush.bf16.msrb.mxu3 %v2384_v23  ;;  %1419 = vmatmul.bf16.vlgmr.msrb.gmra.mxu0 %v1757_v36  ;;  %v1780_v23 = vld [vmem:[%s2642_s12 + $0x28] sm:$0xf]  ;;  %v1777_v29 = vor.u32 %v2304_v20, %v1774_v22  ;;  %v2427_v36 = vld [vmem:[%s2975_s1 + $0x318] sm:$0xff] }
  0x4d   : > { %1487 = vmatpush.bf16.msra.mxu0 %v2399_v26  ;;  %1438 = vmatmul.bf16.vlgmr.msrb.gmra.mxu1 %v1761_v38  ;;  %v1782_v26 = vld [vmem:[%s2642_s12 + $0x60] sm:$0xf0]  ;;  %v1781_v30 = vor.u32 %v2312_v24, %v1780_v23  ;;  %v1828_v38 = vld [vmem:[%s2642_s12 + $0x90] sm:$0xf] }
  0x4e   : > { %1506 = vmatpush.bf16.msra.mxu1 %v2407_v34  ;;  %1457 = vmatmul.bf16.vlgmr.msrb.gmra.mxu2 %v1765_v39  ;;  %v2428_v34 = vld [vmem:[%s2975_s1 + $0x320] sm:$0xff]  ;;  %v2325_v39 = vld [vmem:[%s2642_s12 + $0xc4] sm:$0xf0] }
  0x4f   : > { %1525 = vmatpush.bf16.msra.mxu2 %v2415_v25  ;;  %1476 = vmatmul.bf16.vlgmr.msrb.gmra.mxu3 %v1769_v40  ;;  %v2305_v25 = vld [vmem:[%s2642_s12 + $0x2c] sm:$0xf]  ;;  %v2318_v40 = vld [vmem:[%s2642_s12 + $0x94] sm:$0xf] }
  0x50   : > { %1544 = vmatpush.bf16.msra.mxu3 %v2423_v35  ;;  %v1785_v31 = vor.u32 %v2305_v25, %v1782_v26  ;;  %v2436_v35 = vld [vmem:[%s2975_s1 + $0x360] sm:$0xff] }
  0x51   : > { %1488 = vmatpush.bf16.msra.mxu0 %v2398_v41  ;;  %v1830_v41 = vld [vmem:[%s2642_s12 + $0xc8] sm:$0xf0] }
  0x52   : > { %1507 = vmatpush.bf16.msra.mxu1 %v2406_v42  ;;  %v1836_v42 = vld [vmem:[%s2642_s12 + $0x98] sm:$0xf] }
  0x53   : > { %1526 = vmatpush.bf16.msra.mxu2 %v2414_v37  ;;  %v2435_v37 = vld [vmem:[%s2975_s1 + $0x358] sm:$0xff] }
  0x54   : > { %1545 = vmatpush.bf16.msra.mxu3 %v2422_v43  ;;  %v2326_v43 = vld [vmem:[%s2642_s12 + $0xcc] sm:$0xf0] }
  0x55   : > { %1489 = vmatpush.bf16.msra.mxu0 %v2397_v45  ;;  %v1838_v45 = vld [vmem:[%s2642_s12 + $0xd0] sm:$0xf0] }
  0x56   : > { %1508 = vmatpush.bf16.msra.mxu1 %v2405_v46  ;;  %v2426_v46 = vld [vmem:[%s2975_s1 + $0x310] sm:$0xff] }
  0x57   : > { %1527 = vmatpush.bf16.msra.mxu2 %v2413_v44  ;;  %v2319_v44 = vld [vmem:[%s2642_s12 + $0x9c] sm:$0xf] }
  0x58   : > { %1546 = vmatpush.bf16.msra.mxu3 %v2421_v47  ;;  %v1829_v47 = vor.u32 %v2325_v39, %v1828_v38 }
  0x59   : > { %1490 = vmatpush.bf16.msra.mxu0 %v2396_v49  ;;  %v1833_v49 = vor.u32 %v2318_v40, %v1830_v41 }
  0x5a   : > { %1509 = vmatpush.bf16.msra.mxu1 %v2404_v50  ;;  %v1837_v50 = vor.u32 %v2326_v43, %v1836_v42 }
  0x5b   : > { %1528 = vmatpush.bf16.msra.mxu2 %v2412_v48  ;;  %v2434_v48 = vld [vmem:[%s2975_s1 + $0x350] sm:$0xff] }
  0x5c   : > { %1547 = vmatpush.bf16.msra.mxu3 %v2420_v51  ;;  %1424 = vmatmul.bf16.gmra.mxu0 %v1813_v0  ;;  %v1841_v51 = vor.u32 %v2319_v44, %v1838_v45  ;;  %v1789_v0 = vor.u32 %v2313_v57, %v1788_v56 }
  0x5d   : > { %1491 = vmatpush.bf16.msra.mxu0 %v2395_v60  ;;  %1443 = vmatmul.bf16.gmra.mxu1 %v1817_v2  ;;  %v2306_v60 = vld [vmem:[%s2642_s12 + $0x34] sm:$0xf] }
  0x5e   : > { %1510 = vmatpush.bf16.msra.mxu1 %v2403_v62  ;;  %1462 = vmatmul.bf16.gmra.mxu2 %v1821_v3  ;;  %v2320_v62 = vld [vmem:[%s2642_s12 + $0xa4] sm:$0xf]  ;;  %v1793_v2 = vor.u32 %v2306_v60, %v1790_v61 }
  0x5f   : > { %1529 = vmatpush.bf16.msra.mxu2 %v2411_v54  ;;  %1481 = vmatmul.bf16.gmra.mxu3 %v1825_v4  ;;  %v2424_v54 = vld [vmem:[%s2975_s1 + $0x300] sm:$0xff] }
  0x60   : > { %1548 = vmatpush.bf16.msra.mxu3 %v2419_v63  ;;  %v1846_v63 = vld [vmem:[%s2642_s12 + $0xd8] sm:$0xf0]  ;;  %v2492_v4 = vld [vmem:[%s2976_s2] ss:$0 sm:$0xff]  ;;  %s1737_s12 = sshll.u32 %s2983_s17, 2 }
  0x61   : > { %1492 = vmatpush.bf16.msra.mxu0 %v2394_v5  ;;  %v1849_v3 = vor.u32 %v2320_v62, %v1846_v63  ;;  %s265_s26 = scalar_lea.vmem %s2977_s3, %s1737_s12 }
  0x62   : > { %1511 = vmatpush.bf16.msra.mxu1 %v2402_v6 }
  0x63   : > { %1530 = vmatpush.bf16.msra.mxu2 %v2410_v1  ;;  %v1845_v1 = vor.u32 %v2327_v59, %v1844_v58 }
  0x64   : > { %1549 = vmatpush.bf16.msra.mxu3 %v2418_v7 }
  0x65   : > { %1493 = vmatpush.bf16.msra.mxu0 %v2393_v9 }
  0x66   : > { %1512 = vmatpush.bf16.msra.mxu1 %v2401_v10 }
  0x67   : > { %1531 = vmatpush.bf16.msra.mxu2 %v2409_v8 }
  0x68   : > { %1550 = vmatpush.bf16.msra.mxu3 %v2417_v11 }
  0x69   : > { %1494 = vmatpush.bf16.msra.mxu0 %v2392_v14 }
  0x6a   : > { %1513 = vmatpush.bf16.msra.mxu1 %v2400_v15 }
  0x6b   : > { %1532 = vmatpush.bf16.msra.mxu2 %v2408_v12 }
  0x6c   : > { %1551 = vmatpush.bf16.msra.mxu3 %v2416_v16  ;;  %1495 = vmatmul.bf16.vlgmr.msra.gmra.mxu0 %v1773_v27 }
  0x6d   : > { %1563 = vmatpush.bf16.msrb.mxu0 %v2431_v13  ;;  %1514 = vmatmul.bf16.vlgmr.msra.gmra.mxu1 %v1777_v29 }
  0x6e   : > { %1582 = vmatpush.bf16.msrb.mxu1 %v2439_v18  ;;  %1533 = vmatmul.bf16.vlgmr.msra.gmra.mxu2 %v1781_v30 }
  0x6f   : > { %2451 = vmatpush.bf16.msrb.mxu2 %v2431_v13  ;;  %1552 = vmatmul.bf16.vlgmr.msra.gmra.mxu3 %v1785_v31 }
  0x70   : > { %2459 = vmatpush.bf16.msrb.mxu3 %v2439_v18 }
  0x71   : > { %1564 = vmatpush.bf16.msrb.mxu0 %v2430_v21 }
  0x72   : > { %1583 = vmatpush.bf16.msrb.mxu1 %v2438_v28 }
  0x73   : > { %2452 = vmatpush.bf16.msrb.mxu2 %v2430_v21 }
  0x74   : > { %2460 = vmatpush.bf16.msrb.mxu3 %v2438_v28 }
  0x75   : > { %1565 = vmatpush.bf16.msrb.mxu0 %v2429_v32 }
  0x76   : > { %1584 = vmatpush.bf16.msrb.mxu1 %v2437_v33 }
  0x77   : > { %2453 = vmatpush.bf16.msrb.mxu2 %v2429_v32 }
  0x78   : > { %2461 = vmatpush.bf16.msrb.mxu3 %v2437_v33 }
  0x79   : > { %1566 = vmatpush.bf16.msrb.mxu0 %v2428_v34 }
  0x7a   : > { %1585 = vmatpush.bf16.msrb.mxu1 %v2436_v35 }
  0x7b   : > { %2454 = vmatpush.bf16.msrb.mxu2 %v2428_v34 }
  0x7c   : > { %2462 = vmatpush.bf16.msrb.mxu3 %v2436_v35  ;;  %1500 = vmatmul.bf16.gmra.mxu0 %v1829_v47 }
  0x7d   : > { %1567 = vmatpush.bf16.msrb.mxu0 %v2427_v36  ;;  %1519 = vmatmul.bf16.gmra.mxu1 %v1833_v49 }
  0x7e   : > { %1586 = vmatpush.bf16.msrb.mxu1 %v2435_v37  ;;  %1538 = vmatmul.bf16.gmra.mxu2 %v1837_v50 }
  0x7f   : > { %2455 = vmatpush.bf16.msrb.mxu2 %v2427_v36  ;;  %1557 = vmatmul.bf16.gmra.mxu3 %v1841_v51 }
  0x80   : > { %2463 = vmatpush.bf16.msrb.mxu3 %v2435_v37 }
  0x81   : > { %1568 = vmatpush.bf16.msrb.mxu0 %v2426_v46 }
  0x82   : > { %1587 = vmatpush.bf16.msrb.mxu1 %v2434_v48 }
  0x83   : > { %2456 = vmatpush.bf16.msrb.mxu2 %v2426_v46 }
  0x84   : > { %2464 = vmatpush.bf16.msrb.mxu3 %v2434_v48 }
  0x85   : > { %1569 = vmatpush.bf16.msrb.mxu0 %v2425_v52 }
  0x86   : > { %1588 = vmatpush.bf16.msrb.mxu1 %v2433_v53 }
  0x87   : > { %2457 = vmatpush.bf16.msrb.mxu2 %v2425_v52 }
  0x88   : > { %2465 = vmatpush.bf16.msrb.mxu3 %v2433_v53 }
  0x89   : > { %1570 = vmatpush.bf16.msrb.mxu0 %v2424_v54 }
  0x8a   : > { %1589 = vmatpush.bf16.msrb.mxu1 %v2432_v55 }
  0x8b   : > { %2458 = vmatpush.bf16.msrb.mxu2 %v2424_v54 }
  0x8c   : > { %2466 = vmatpush.bf16.msrb.mxu3 %v2432_v55  ;;  %1571 = vmatmul.bf16.vlgmr.msrb.gmra.mxu0 %v1789_v0 }
  0x8d   : > { %1590 = vmatmul.bf16.vlgmr.msrb.gmra.mxu1 %v1793_v2 }
  0x8e   : > { %1576 = vmatmul.bf16.vlgmr.msrb.gmra.mxu2 %v1845_v1 }
  0x8f   : > { %1595 = vmatmul.bf16.vlgmr.msrb.gmra.mxu3 %v1849_v3 }
  0xa9   : > { %v1344_v5 = vpop.f32.mrf.mxu0 }
  0xaa   : > { %v1363_v6 = vpop.f32.mrf.mxu1  ;;  %v1345_v7 = vadd.f32 %v2492_v4, %v1344_v5 }
  0xac   : > { %v1364_v8 = vadd.f32 %v1363_v6, %v1345_v7 }
  0xb1   : > { %v1382_v9 = vpop.f32.mrf.mxu2  ;;  %v1346_v12 = vpop.f32.mrf.mxu0 }
  0xb2   : > { %v1401_v10 = vpop.f32.mrf.mxu3  ;;  %v1383_v11 = vadd.f32 %v1382_v9, %v1364_v8  ;;  %v1365_v13 = vpop.f32.mrf.mxu1  ;;  %v1347_v14 = vadd.f32 %v2492_v4, %v1346_v12 }
  0xb4   : > { %v1402_v15 = vadd.f32 %v1401_v10, %v1383_v11  ;;  %v1366_v16 = vadd.f32 %v1365_v13, %v1347_v14 }
  0xb9   : > { %v1384_v17 = vpop.f32.mrf.mxu2  ;;  %v1349_v20 = vpop.f32.mrf.mxu0 }
  0xba   : > { %v1403_v18 = vpop.f32.mrf.mxu3  ;;  %v1385_v19 = vadd.f32 %v1384_v17, %v1366_v16  ;;  %v1368_v21 = vpop.f32.mrf.mxu1  ;;  %v1350_v22 = vadd.f32 %v2492_v4, %v1349_v20 }
  0xbc   : > { %v1404_v23 = vadd.f32 %v1403_v18, %v1385_v19  ;;  %v1369_v24 = vadd.f32 %v1368_v21, %v1350_v22 }
  0xc1   : > { %v1387_v25 = vpop.f32.mrf.mxu2  ;;  %v1351_v28 = vpop.f32.mrf.mxu0 }
  0xc2   : > { %v1406_v26 = vpop.f32.mrf.mxu3  ;;  %v1388_v27 = vadd.f32 %v1387_v25, %v1369_v24  ;;  %v1370_v29 = vpop.f32.mrf.mxu1  ;;  %v1352_v55 = vadd.f32 %v2492_v4, %v1351_v28 }
  0xc4   : > { %v1407_v30 = vadd.f32 %v1406_v26, %v1388_v27  ;;  %v1371_v58 = vadd.f32 %v1370_v29, %v1352_v55 }
  0xc9   : > { %v1389_v31 = vpop.f32.mrf.mxu2  ;;  %v1420_v33 = vpop.f32.mrf.mxu0 }
  0xca   : > { %v1408_v32 = vpop.f32.mrf.mxu3  ;;  %v1439_v34 = vpop.f32.mrf.mxu1  ;;  %v1421_v56 = vadd.f32 %v1420_v33, %v1402_v15  ;;  %v1390_v0 = vadd.f32 %v1389_v31, %v1371_v58 }
  0xcc   : > { %v1440_v61 = vadd.f32 %v1439_v34, %v1421_v56  ;;  %v1409_v5 = vadd.f32 %v1408_v32, %v1390_v0 }
  0xd1   : > { %v1458_v35 = vpop.f32.mrf.mxu2  ;;  %v1422_v37 = vpop.f32.mrf.mxu0 }
  0xd2   : > { %v1477_v36 = vpop.f32.mrf.mxu3  ;;  %v1441_v38 = vpop.f32.mrf.mxu1  ;;  %v1423_v62 = vadd.f32 %v1422_v37, %v1404_v23  ;;  %v1459_v1 = vadd.f32 %v1458_v35, %v1440_v61 }
  0xd4   : > { %v1442_v3 = vadd.f32 %v1441_v38, %v1423_v62  ;;  %v1478_v6 = vadd.f32 %v1477_v36, %v1459_v1 }
  0xd9   : > { %v1460_v39 = vpop.f32.mrf.mxu2  ;;  %v1425_v41 = vpop.f32.mrf.mxu0 }
  0xda   : > { %v1479_v40 = vpop.f32.mrf.mxu3  ;;  %v1444_v42 = vpop.f32.mrf.mxu1  ;;  %v1426_v2 = vadd.f32 %v1425_v41, %v1407_v30  ;;  %v1461_v7 = vadd.f32 %v1460_v39, %v1442_v3 }
  0xdc   : > { %v1445_v9 = vadd.f32 %v1444_v42, %v1426_v2  ;;  %v1480_v15 = vadd.f32 %v1479_v40, %v1461_v7 }
  0xe1   : > { %v1463_v43 = vpop.f32.mrf.mxu2  ;;  %v1427_v45 = vpop.f32.mrf.mxu0 }
  0xe2   : > { %v1482_v44 = vpop.f32.mrf.mxu3  ;;  %v1446_v46 = vpop.f32.mrf.mxu1  ;;  %v1428_v10 = vadd.f32 %v1427_v45, %v1409_v5  ;;  %v1464_v14 = vadd.f32 %v1463_v43, %v1445_v9 }
  0xe4   : > { %v1447_v16 = vadd.f32 %v1446_v46, %v1428_v10  ;;  %v1483_v19 = vadd.f32 %v1482_v44, %v1464_v14 }
  0xe9   : > { %v1465_v47 = vpop.f32.mrf.mxu2  ;;  %v1496_v49 = vpop.f32.mrf.mxu0 }
  0xea   : > { %v1484_v48 = vpop.f32.mrf.mxu3  ;;  %v1515_v50 = vpop.f32.mrf.mxu1  ;;  %v1497_v12 = vadd.f32 %v1496_v49, %v1478_v6  ;;  %v1466_v20 = vadd.f32 %v1465_v47, %v1447_v16 }
  0xec   : > { %v1516_v17 = vadd.f32 %v1515_v50, %v1497_v12  ;;  %v1485_v28 = vadd.f32 %v1484_v48, %v1466_v20 }
  0xf1   : > { %v1534_v51 = vpop.f32.mrf.mxu2  ;;  %v1498_v53 = vpop.f32.mrf.mxu0 }
  0xf2   : > { %v1553_v52 = vpop.f32.mrf.mxu3  ;;  %v1517_v54 = vpop.f32.mrf.mxu1  ;;  %v1499_v18 = vadd.f32 %v1498_v53, %v1480_v15  ;;  %v1535_v21 = vadd.f32 %v1534_v51, %v1516_v17 }
  0xf4   : > { %v1518_v26 = vadd.f32 %v1517_v54, %v1499_v18  ;;  %v1554_v29 = vadd.f32 %v1553_v52, %v1535_v21 }
  0xf9   : > { %v1536_v57 = vpop.f32.mrf.mxu2  ;;  %v1501_v60 = vpop.f32.mrf.mxu0 }
  0xfa   : > { %v1555_v59 = vpop.f32.mrf.mxu3  ;;  %v1520_v63 = vpop.f32.mrf.mxu1  ;;  %v1502_v23 = vadd.f32 %v1501_v60, %v1483_v19  ;;  %v1537_v30 = vadd.f32 %v1536_v57, %v1518_v26 }
  0xfc   : > { %v1521_v31 = vadd.f32 %v1520_v63, %v1502_v23  ;;  %v1556_v35 = vadd.f32 %v1555_v59, %v1537_v30 }
 0x101   : > { %v1539_v8 = vpop.f32.mrf.mxu2  ;;  %v1503_v4 = vpop.f32.mrf.mxu0 }
 0x102   : > { %v1558_v11 = vpop.f32.mrf.mxu3  ;;  %v1522_v13 = vpop.f32.mrf.mxu1  ;;  %v1504_v32 = vadd.f32 %v1503_v4, %v1485_v28  ;;  %v1540_v34 = vadd.f32 %v1539_v8, %v1521_v31 }
 0x104   : > { %v1523_v37 = vadd.f32 %v1522_v13, %v1504_v32  ;;  %v1559_v42 = vadd.f32 %v1558_v11, %v1540_v34 }
 0x109   : > { %v1541_v22 = vpop.f32.mrf.mxu2  ;;  %v1572_v25 = vpop.f32.mrf.mxu0 }
 0x10a   : > { %v1560_v24 = vpop.f32.mrf.mxu3  ;;  %v1591_v27 = vpop.f32.mrf.mxu1  ;;  %v1573_v33 = vadd.f32 %v1572_v25, %v1554_v29  ;;  %v1542_v43 = vadd.f32 %v1541_v22, %v1523_v37 }
 0x10c   : > { %v1592_v40 = vadd.f32 %v1591_v27, %v1573_v33  ;;  %v1561_v49 = vadd.f32 %v1560_v24, %v1542_v43 }
 0x10e   : > { %v1601_v47 = vmax.f32 %v1592_v40, 0.0 }
 0x111   : > { %v1577_v36 = vpop.f32.mrf.mxu2  ;;  %v1574_v39 = vpop.f32.mrf.mxu0 }
 0x112   : > { %v1596_v38 = vpop.f32.mrf.mxu3  ;;  %v1575_v41 = vadd.f32 %v1574_v39, %v1556_v35  ;;  %v1593_v44 = vpop.f32.mrf.mxu1  ;;  %v1578_v46 = vadd.f32 %v1577_v36, %v1559_v42 }
 0x114   : > { %v1594_v45 = vadd.f32 %v1593_v44, %v1575_v41  ;;  %v1597_v52 = vadd.f32 %v1596_v38, %v1578_v46 }
 0x116   : > { %v1602_v48 = vmax.f32 %v1594_v45, 0.0  ;;  %v1603_v56 = vmax.f32 %v1597_v52, 0.0 }
 0x118   : > { %v2443_v50 = vpack.c.bf16 %v1602_v48, %v1601_v47 }
 0x119   : > { %v1579_v51 = vpop.f32.mrf.mxu2 }
 0x11a   : > { %v1580_v53 = vadd.f32 %v1579_v51, %v1561_v49  ;;  %2444 = vst [vmem:[%s265_s26] sm:$0xff] %v2443_v50   ;;  %v1598_v54 = vpop.f32.mrf.mxu3 }
 0x11c   : > { %v1599_v55 = vadd.f32 %v1598_v54, %v1580_v53 }
 0x11e   : > { %v1604_v57 = vmax.f32 %v1599_v55, 0.0 }
 0x120   : > { %v2448_v58 = vpack.c.bf16 %v1604_v57, %v1603_v56 }
 0x122   : > { %2450 = vst [vmem:[%s265_s26 + $0x8] sm:$0xff] %v2448_v58  }
 0x123 PF: > { %s13_s14 = sadd.s32 1, %s2515_s14   ;;  %s2978_s12 = smov %s2511_s13 }
 0x124   : > { %p10_p5 = scmp.ge.s32.totalorder %s13_s14, 4   ;;  %s2979_s13 = smov %s2981_s15 }
 0x126   :  { %12 = sbr.rel (!%p10_p5) target bundleno = 2 (0x2), region = 68 }

// kernel: mil_forward.30
= control target key start
LH: loop header
LB: loop body
LE: loop exit
PB: predicated region body
PF: predicated region fallthrough
CT: control target
= control target key end

     0   :  { %s798_s12 = smov 0   ;;  %s800_s13 = smov 0   ;;  %s889_s0 = inlined_call_operand.vmem [shape: bf16[64,256], index: 0, kind: input, shape index: {}]   ;;  %s890_s1 = inlined_call_operand.vmem [shape: bf16[256,128], index: 1, kind: input, shape index: {}]   ;;  %s891_s2 = inlined_call_operand.vmem [shape: f32[1,128], index: 2, kind: input, shape index: {}]   ;;  %s892_s3 = inlined_call_operand.vmem [shape: bf16[64,128], index: 3, kind: output, shape index: {}]  }
   0x1   :  { %s802_s14 = smov 0  }
   0x2 LB: > { %s32_s15 = sadd.s32 1, %s772_s13  ;;  %p593_p0 = scmp.ge.s32.totalorder %s776_s14, 1  ;;  %s776_s14 = sphi %s802_s14, %s13_s14   ;;  %s772_s13 = sphi %s800_s13, %s894_s13   ;;  %s768_s12 = sphi %s798_s12, %s893_s12  }
   0x3   : > { %p34_p1 = scmp.ge.s32.totalorder %s32_s15, 2  ;;  %p191_p2 = scmp.lt.s32.totalorder %s776_s14, 3 }
   0x5   : > { %s896_s15 = smov (%p34_p1, %s32_s15), 0  ;;  %p192_p3 = pnand %p593_p0, %p191_p2 }
   0x6   : > { %s594_s28 = sshll.u32 (!%p192_p3), %s768_s12, 2 }
   0x7   : > { %195 = sbr.rel (%p192_p3) target bundleno = 193 (0xc1), region = 32  ;;  %p236_p4 = scmp.lt.s32.totalorder (!%p192_p3), %s594_s28, 7 }
   0xc   : > { %v693_v0 = vld [vmem:[%s890_s1 + $0x38] sm:$0xff]  ;;  %v692_v2 = vld [vmem:[%s890_s1 + $0x30] sm:$0xff]  ;;  %v691_v4 = vld [vmem:[%s890_s1 + $0x28] sm:$0xff]  ;;  %s898_s28 = smov (!%p236_p4, %s594_s28), 7 }
   0xd   : > { %v701_v1 = vld [vmem:[%s890_s1 + $0x78] sm:$0xff]  ;;  %423 = vmatpush.bf16.msra.mxu0 %v693_v0  ;;  %713 = vmatpush.bf16.msra.mxu2 %v693_v0  ;;  %v700_v3 = vld [vmem:[%s890_s1 + $0x70] sm:$0xff]  ;;  %v699_v5 = vld [vmem:[%s890_s1 + $0x68] sm:$0xff]  ;;  %s681_s17 = sshll.u32 %s898_s28, 3  ;;  %s598_s5 = sshll.u32 %s898_s28, 2 }
   0xe   : > { %442 = vmatpush.bf16.msra.mxu1 %v701_v1  ;;  %721 = vmatpush.bf16.msra.mxu3 %v701_v1  ;;  %v690_v6 = vld [vmem:[%s890_s1 + $0x20] sm:$0xff]  ;;  %v689_v8 = vld [vmem:[%s890_s1 + $0x18] sm:$0xff]  ;;  %v688_v10 = vld [vmem:[%s890_s1 + $0x10] sm:$0xff]  ;;  %s243_s22 = scalar_lea.vmem %s889_s0, %s681_s17  ;;  %s265_s8 = scalar_lea.vmem %s892_s3, %s598_s5 }
   0xf   : > { %v698_v7 = vld [vmem:[%s890_s1 + $0x60] sm:$0xff]  ;;  %v697_v9 = vld [vmem:[%s890_s1 + $0x58] sm:$0xff]  ;;  %v696_v11 = vld [vmem:[%s890_s1 + $0x50] sm:$0xff] }
  0x10   : > { %v687_v12 = vld [vmem:[%s890_s1 + $0x8] sm:$0xff]  ;;  %v686_v14 = vld [vmem:[%s890_s1] sm:$0xff]  ;;  %v609_v18 = vld [vmem:[%s243_s22 + $0x10] sm:$0xf] }
  0x11   : > { %424 = vmatpush.bf16.msra.mxu0 %v692_v2  ;;  %714 = vmatpush.bf16.msra.mxu2 %v692_v2  ;;  %v695_v13 = vld [vmem:[%s890_s1 + $0x48] sm:$0xff]  ;;  %v694_v15 = vld [vmem:[%s890_s1 + $0x40] sm:$0xff]  ;;  %v685_v19 = vld [vmem:[%s243_s22 + $0x14] sm:$0xf0] }
  0x12   : > { %443 = vmatpush.bf16.msra.mxu1 %v700_v3  ;;  %722 = vmatpush.bf16.msra.mxu3 %v700_v3  ;;  %v601_v16 = vld [vmem:[%s243_s22] sm:$0xf]  ;;  %v683_v17 = vld [vmem:[%s243_s22 + $0x4] sm:$0xf0]  ;;  %v682_v20 = vld [vmem:[%s243_s22 + $0x4] sm:$0xf]  ;;  %v610_v25 = vor.u32 %v685_v19, %v609_v18 }
  0x13   : > { %v603_v21 = vld [vmem:[%s243_s22 + $0x8] sm:$0xf0]  ;;  %v684_v22 = vld [vmem:[%s243_s22 + $0x14] sm:$0xf]  ;;  %v611_v23 = vld [vmem:[%s243_s22 + $0x18] sm:$0xf0]  ;;  %v602_v24 = vor.u32 %v683_v17, %v601_v16 }
  0x14   : > { %v606_v26 = vor.u32 %v682_v20, %v603_v21  ;;  %v614_v27 = vor.u32 %v684_v22, %v611_v23  ;;  %v753_v29 = vld [vmem:[%s891_s2] ss:$0 sm:$0xff] }
  0x15   : > { %425 = vmatpush.bf16.msra.mxu0 %v691_v4  ;;  %715 = vmatpush.bf16.msra.mxu2 %v691_v4 }
  0x16   : > { %444 = vmatpush.bf16.msra.mxu1 %v699_v5  ;;  %723 = vmatpush.bf16.msra.mxu3 %v699_v5 }
  0x19   : > { %426 = vmatpush.bf16.msra.mxu0 %v690_v6  ;;  %716 = vmatpush.bf16.msra.mxu2 %v690_v6 }
  0x1a   : > { %445 = vmatpush.bf16.msra.mxu1 %v698_v7  ;;  %724 = vmatpush.bf16.msra.mxu3 %v698_v7 }
  0x1d   : > { %427 = vmatpush.bf16.msra.mxu0 %v689_v8  ;;  %717 = vmatpush.bf16.msra.mxu2 %v689_v8 }
  0x1e   : > { %446 = vmatpush.bf16.msra.mxu1 %v697_v9  ;;  %725 = vmatpush.bf16.msra.mxu3 %v697_v9 }
  0x21   : > { %428 = vmatpush.bf16.msra.mxu0 %v688_v10  ;;  %718 = vmatpush.bf16.msra.mxu2 %v688_v10 }
  0x22   : > { %447 = vmatpush.bf16.msra.mxu1 %v696_v11  ;;  %726 = vmatpush.bf16.msra.mxu3 %v696_v11 }
  0x25   : > { %429 = vmatpush.bf16.msra.mxu0 %v687_v12  ;;  %719 = vmatpush.bf16.msra.mxu2 %v687_v12 }
  0x26   : > { %448 = vmatpush.bf16.msra.mxu1 %v695_v13  ;;  %727 = vmatpush.bf16.msra.mxu3 %v695_v13 }
  0x29   : > { %430 = vmatpush.bf16.msra.mxu0 %v686_v14  ;;  %720 = vmatpush.bf16.msra.mxu2 %v686_v14 }
  0x2a   : > { %449 = vmatpush.bf16.msra.mxu1 %v694_v15  ;;  %728 = vmatpush.bf16.msra.mxu3 %v694_v15 }
  0x2c   : > { %431 = vmatmul.bf16.vlgmr.msra.gmra.mxu0 %v602_v24  ;;  %436 = vmatmul.bf16.vlgmr.msra.gmra.mxu2 %v610_v25 }
  0x2d   : > { %450 = vmatmul.bf16.vlgmr.msra.gmra.mxu1 %v606_v26  ;;  %455 = vmatmul.bf16.vlgmr.msra.gmra.mxu3 %v614_v27 }
  0xa9   : > { %v432_v28 = vpop.f32.mrf.mxu0 }
  0xaa   : > { %v451_v30 = vpop.f32.mrf.mxu1  ;;  %v433_v31 = vadd.f32 %v753_v29, %v432_v28 }
  0xac   : > { %v452_v35 = vadd.f32 %v451_v30, %v433_v31 }
  0xae   : > { %v461_v40 = vmax.f32 %v452_v35, 0.0 }
  0xaf   : > { %v437_v32 = vpop.f32.mrf.mxu2 }
  0xb0   : > { %v456_v33 = vpop.f32.mrf.mxu3  ;;  %v438_v38 = vadd.f32 %v753_v29, %v437_v32 }
  0xb1   : > { %v434_v34 = vpop.f32.mrf.mxu0 }
  0xb2   : > { %v435_v36 = vadd.f32 %v753_v29, %v434_v34  ;;  %v453_v37 = vpop.f32.mrf.mxu1  ;;  %v457_v43 = vadd.f32 %v456_v33, %v438_v38 }
  0xb4   : > { %v454_v39 = vadd.f32 %v453_v37, %v435_v36  ;;  %v463_v48 = vmax.f32 %v457_v43, 0.0 }
  0xb6   : > { %v462_v41 = vmax.f32 %v454_v39, 0.0 }
  0xb7   : > { %v439_v42 = vpop.f32.mrf.mxu2 }
  0xb8   : > { %v705_v44 = vpack.c.bf16 %v462_v41, %v461_v40  ;;  %v440_v45 = vadd.f32 %v753_v29, %v439_v42  ;;  %v458_v46 = vpop.f32.mrf.mxu3 }
  0xba   : > { %706 = vst [vmem:[%s265_s8] sm:$0xff] %v705_v44   ;;  %v459_v47 = vadd.f32 %v458_v46, %v440_v45 }
  0xbc   : > { %v464_v49 = vmax.f32 %v459_v47, 0.0 }
  0xbe   : > { %v710_v50 = vpack.c.bf16 %v464_v49, %v463_v48 }
  0xc0   : > { %712 = vst [vmem:[%s265_s8 + $0x8] sm:$0xff] %v710_v50  }
  0xc1 PF: > { %s13_s14 = sadd.s32 1, %s776_s14   ;;  %s893_s12 = smov %s772_s13 }
  0xc2   : > { %p10_p5 = scmp.ge.s32.totalorder %s13_s14, 4   ;;  %s894_s13 = smov %s896_s15 }
  0xc4   :  { %12 = sbr.rel (!%p10_p5) target bundleno = 2 (0x2), region = 68 }

// kernel: mil_forward.36
= control target key start
LH: loop header
LB: loop body
LE: loop exit
PB: predicated region body
PF: predicated region fallthrough
CT: control target
= control target key end

     0   :  { %8 = vsyncpa [#allocation4], 0  ;;  %s853_s12 = smov 0   ;;  %s855_s13 = smov 0   ;;  %s945_s0 = inlined_call_operand.vmem [shape: bf16[64,256], index: 0, kind: input, shape index: {}]   ;;  %s946_s1 = inlined_call_operand.vmem [shape: bf16[256,128], index: 1, kind: input, shape index: {}]   ;;  %s947_s2 = inlined_call_operand.hbm [shape: f32[1,128], index: 2, kind: input, shape index: {}]   ;;  %s948_s3 = inlined_call_operand.vmem [shape: bf16[64,128], index: 3, kind: output, shape index: {}]  }
   0x1   :  { %s857_s14 = smov 0  }
   0x2 LB: > { %s595_s15 = sadd.s32 4294967295, %s830_s14   ;;  %s33_s16 = sadd.s32 1, %s826_s13  ;;  %s830_s14 = sphi %s857_s14, %s14_s14   ;;  %s826_s13 = sphi %s855_s13, %s950_s13   ;;  %s822_s12 = sphi %s853_s12, %s949_s12  }
   0x3   : > { %p35_p0 = scmp.ge.s32.totalorder %s33_s16, 2  ;;  %p597_p1 = scmp.ge.s32.totalorder %s830_s14, 1 }
   0x4   : > { %p148_p2 = scmp.lt.s32.totalorder %s830_s14, 3  ;;  %p746_p4 = scmp.eq.s32.totalorder %s595_s15, 0 }
   0x5   : > { %s952_s16 = smov (%p35_p0, %s33_s16), 0  ;;  %s173_s19 = sshll.u32 %s947_s2, 4  ;;  %s174_s19 = int_to_ptr.hbm [resolvable:$true] %s173_s19 }
   0x6   : > { %p149_p3 = pnand %p597_p1, %p148_p2  ;;  %s832_s20 = smov [#allocation3]  }
   0x7   : > { %s175_s21 = sshll.u32 %s832_s20, 4  ;;  %s176_s21 = int_to_ptr.vmem [resolvable:$true] %s175_s21 }
   0x8   : > { %p742_p5 = pneg %p149_p3  ;;  %203 = sbr.rel (%p149_p3) target bundleno = 195 (0xc3), region = 32 }
   0xa   : > { %p743_p6 = pnand %p746_p4, %p742_p5 }
   0xc   : > { %745 = dma.hbm_to_vmem [thread:$0]  (!%p743_p6), %s174_s19, 16, %s176_s21, [#allocation4]  }
   0xd   : > { %817 = dma.done.wait (%p746_p4), [#allocation4], 16  }
   0xe   : > { %819 = vsyncadd (%p746_p4), [#allocation4], 4294967280  ;;  %v702_v0 = vld [vmem:[%s946_s1 + $0x38] sm:$0xff]  ;;  %v701_v2 = vld [vmem:[%s946_s1 + $0x30] sm:$0xff]  ;;  %s603_s7 = sshll.u32 %s822_s12, 2 }
   0xf   : > { %v710_v1 = vld [vmem:[%s946_s1 + $0x78] sm:$0xff]  ;;  %430 = vmatpush.bf16.msra.mxu0 %v702_v0  ;;  %722 = vmatpush.bf16.msra.mxu2 %v702_v0  ;;  %v709_v3 = vld [vmem:[%s946_s1 + $0x70] sm:$0xff]  ;;  %v700_v4 = vld [vmem:[%s946_s1 + $0x28] sm:$0xff]  ;;  %p246_p7 = scmp.lt.s32.totalorder %s603_s7, 7 }
  0x10   : > { %449 = vmatpush.bf16.msra.mxu1 %v710_v1  ;;  %730 = vmatpush.bf16.msra.mxu3 %v710_v1  ;;  %v708_v5 = vld [vmem:[%s946_s1 + $0x68] sm:$0xff]  ;;  %v699_v6 = vld [vmem:[%s946_s1 + $0x20] sm:$0xff]  ;;  %v698_v8 = vld [vmem:[%s946_s1 + $0x18] sm:$0xff] }
  0x11   : > { %v707_v7 = vld [vmem:[%s946_s1 + $0x60] sm:$0xff]  ;;  %v706_v9 = vld [vmem:[%s946_s1 + $0x58] sm:$0xff]  ;;  %s954_s7 = smov (!%p246_p7, %s603_s7), 7  ;;  %v697_v10 = vld [vmem:[%s946_s1 + $0x10] sm:$0xff] }
  0x12   : > { %v705_v11 = vld [vmem:[%s946_s1 + $0x50] sm:$0xff]  ;;  %s690_s23 = sshll.u32 %s954_s7, 3  ;;  %v696_v12 = vld [vmem:[%s946_s1 + $0x8] sm:$0xff]  ;;  %v695_v14 = vld [vmem:[%s946_s1] sm:$0xff]  ;;  %s607_s9 = sshll.u32 %s954_s7, 2 }
  0x13   : > { %431 = vmatpush.bf16.msra.mxu0 %v701_v2  ;;  %723 = vmatpush.bf16.msra.mxu2 %v701_v2  ;;  %s253_s28 = scalar_lea.vmem %s945_s0, %s690_s23  ;;  %v704_v13 = vld [vmem:[%s946_s1 + $0x48] sm:$0xff]  ;;  %v703_v15 = vld [vmem:[%s946_s1 + $0x40] sm:$0xff]  ;;  %s272_s15 = scalar_lea.vmem %s948_s3, %s607_s9 }
  0x14   : > { %450 = vmatpush.bf16.msra.mxu1 %v709_v3  ;;  %731 = vmatpush.bf16.msra.mxu3 %v709_v3  ;;  %v610_v16 = vld [vmem:[%s253_s28] sm:$0xf]  ;;  %v692_v17 = vld [vmem:[%s253_s28 + $0x4] sm:$0xf0]  ;;  %v618_v18 = vld [vmem:[%s253_s28 + $0x10] sm:$0xf] }
  0x15   : > { %v694_v19 = vld [vmem:[%s253_s28 + $0x14] sm:$0xf0]  ;;  %v691_v20 = vld [vmem:[%s253_s28 + $0x4] sm:$0xf]  ;;  %v612_v21 = vld [vmem:[%s253_s28 + $0x8] sm:$0xf0]  ;;  %v611_v24 = vor.u32 %v692_v17, %v610_v16 }
  0x16   : > { %v693_v22 = vld [vmem:[%s253_s28 + $0x14] sm:$0xf]  ;;  %v620_v23 = vld [vmem:[%s253_s28 + $0x18] sm:$0xf0]  ;;  %v619_v25 = vor.u32 %v694_v19, %v618_v18  ;;  %v615_v26 = vor.u32 %v691_v20, %v612_v21  ;;  %v773_v29 = vld [vmem:[#allocation3] ss:$0 sm:$0xff] }
  0x17   : > { %432 = vmatpush.bf16.msra.mxu0 %v700_v4  ;;  %724 = vmatpush.bf16.msra.mxu2 %v700_v4  ;;  %v623_v27 = vor.u32 %v693_v22, %v620_v23 }
  0x18   : > { %451 = vmatpush.bf16.msra.mxu1 %v708_v5  ;;  %732 = vmatpush.bf16.msra.mxu3 %v708_v5 }
  0x1b   : > { %433 = vmatpush.bf16.msra.mxu0 %v699_v6  ;;  %725 = vmatpush.bf16.msra.mxu2 %v699_v6 }
  0x1c   : > { %452 = vmatpush.bf16.msra.mxu1 %v707_v7  ;;  %733 = vmatpush.bf16.msra.mxu3 %v707_v7 }
  0x1f   : > { %434 = vmatpush.bf16.msra.mxu0 %v698_v8  ;;  %726 = vmatpush.bf16.msra.mxu2 %v698_v8 }
  0x20   : > { %453 = vmatpush.bf16.msra.mxu1 %v706_v9  ;;  %734 = vmatpush.bf16.msra.mxu3 %v706_v9 }
  0x23   : > { %435 = vmatpush.bf16.msra.mxu0 %v697_v10  ;;  %727 = vmatpush.bf16.msra.mxu2 %v697_v10 }
  0x24   : > { %454 = vmatpush.bf16.msra.mxu1 %v705_v11  ;;  %735 = vmatpush.bf16.msra.mxu3 %v705_v11 }
  0x27   : > { %436 = vmatpush.bf16.msra.mxu0 %v696_v12  ;;  %728 = vmatpush.bf16.msra.mxu2 %v696_v12 }
  0x28   : > { %455 = vmatpush.bf16.msra.mxu1 %v704_v13  ;;  %736 = vmatpush.bf16.msra.mxu3 %v704_v13 }
  0x2b   : > { %437 = vmatpush.bf16.msra.mxu0 %v695_v14  ;;  %729 = vmatpush.bf16.msra.mxu2 %v695_v14 }
  0x2c   : > { %456 = vmatpush.bf16.msra.mxu1 %v703_v15  ;;  %737 = vmatpush.bf16.msra.mxu3 %v703_v15 }
  0x2e   : > { %438 = vmatmul.bf16.vlgmr.msra.gmra.mxu0 %v611_v24  ;;  %443 = vmatmul.bf16.vlgmr.msra.gmra.mxu2 %v619_v25 }
  0x2f   : > { %457 = vmatmul.bf16.vlgmr.msra.gmra.mxu1 %v615_v26  ;;  %462 = vmatmul.bf16.vlgmr.msra.gmra.mxu3 %v623_v27 }
  0xab   : > { %v439_v28 = vpop.f32.mrf.mxu0 }
  0xac   : > { %v458_v30 = vpop.f32.mrf.mxu1  ;;  %v440_v31 = vadd.f32 %v773_v29, %v439_v28 }
  0xae   : > { %v459_v35 = vadd.f32 %v458_v30, %v440_v31 }
  0xb0   : > { %v468_v40 = vmax.f32 %v459_v35, 0.0 }
  0xb1   : > { %v444_v32 = vpop.f32.mrf.mxu2 }
  0xb2   : > { %v463_v33 = vpop.f32.mrf.mxu3  ;;  %v445_v38 = vadd.f32 %v773_v29, %v444_v32 }
  0xb3   : > { %v441_v34 = vpop.f32.mrf.mxu0 }
  0xb4   : > { %v442_v36 = vadd.f32 %v773_v29, %v441_v34  ;;  %v460_v37 = vpop.f32.mrf.mxu1  ;;  %v464_v43 = vadd.f32 %v463_v33, %v445_v38 }
  0xb6   : > { %v461_v39 = vadd.f32 %v460_v37, %v442_v36  ;;  %v470_v48 = vmax.f32 %v464_v43, 0.0 }
  0xb8   : > { %v469_v41 = vmax.f32 %v461_v39, 0.0 }
  0xb9   : > { %v446_v42 = vpop.f32.mrf.mxu2 }
  0xba   : > { %v714_v44 = vpack.c.bf16 %v469_v41, %v468_v40  ;;  %v447_v45 = vadd.f32 %v773_v29, %v446_v42  ;;  %v465_v46 = vpop.f32.mrf.mxu3 }
  0xbc   : > { %715 = vst [vmem:[%s272_s15] sm:$0xff] %v714_v44   ;;  %v466_v47 = vadd.f32 %v465_v46, %v447_v45 }
  0xbe   : > { %v471_v49 = vmax.f32 %v466_v47, 0.0 }
  0xc0   : > { %v719_v50 = vpack.c.bf16 %v471_v49, %v470_v48 }
  0xc2   : > { %721 = vst [vmem:[%s272_s15 + $0x8] sm:$0xff] %v719_v50  }
  0xc3 PF: > { %s14_s14 = sadd.s32 1, %s830_s14   ;;  %s949_s12 = smov %s826_s13 }
  0xc4   : > { %p11_p8 = scmp.ge.s32.totalorder %s14_s14, 4   ;;  %s950_s13 = smov %s952_s16 }
  0xc6   :  { %13 = sbr.rel (!%p11_p8) target bundleno = 2 (0x2), region = 71 }
  0xcb   :  { %508 = vsyncpa [#allocation4], 1 }
  0xcc   :  { %510 = vsyncpa [#allocation4 + $0x1], 1 }

// kernel: mil_forward.38
= control target key start
LH: loop header
LB: loop body
LE: loop exit
PB: predicated region body
PF: predicated region fallthrough
CT: control target
= control target key end

     0   :  { %8 = vsyncpa [#allocation5], 0  ;;  %s1470_s0 = inlined_call_operand.vmem [shape: bf16[16,256], index: 0, kind: input, shape index: {}]   ;;  %s1471_s1 = inlined_call_operand.vmem [shape: bf16[256,512], index: 1, kind: input, shape index: {}]   ;;  %s1472_s2 = inlined_call_operand.hbm [shape: f32[1,512], index: 2, kind: input, shape index: {}]   ;;  %s1473_s3 = inlined_call_operand.vmem [shape: bf16[16,512], index: 3, kind: output, shape index: {}]  }
   0x1   :  { %10 = vsyncpa [#allocation5 + $0x1], 0  ;;  %s1215_s12 = smov 0   ;;  %s1217_s13 = smov 0  }
   0x2   :  { %s1219_s14 = smov 0   ;;  %s1221_s15 = smov 0  }
   0x3   :  { %s1223_s16 = smov 0   ;;  %s1225_s17 = smov 0  }
   0x4 LB: > { %s874_s18 = sadd.s32 4294967295, %s1193_s17   ;;  %s31_s19 = sadd.s32 1, %s1189_s16  ;;  %s1193_s17 = sphi %s1225_s17, %s16_s17   ;;  %s1189_s16 = sphi %s1223_s16, %s1481_s16   ;;  %s1185_s15 = sphi %s1221_s15, %s1480_s15   ;;  %s1181_s14 = sphi %s1219_s14, %s1479_s14   ;;  %s1177_s13 = sphi %s1217_s13, %s1478_s13   ;;  %s1173_s12 = sphi %s1215_s12, %s1477_s12  }
   0x5   : > { %p33_p0 = scmp.ge.s32.totalorder %s31_s19, 2  ;;  %s72_s20 = sadd.s32 1, %s1181_s14 }
   0x6   : > { %p79_p1 = scmp.ne.s32.totalorder %s1181_s14, %s1177_s13  ;;  %p80_p2 = scmp.eq.s32.totalorder %s1193_s17, 0 }
   0x7   : > { %s1483_s19 = smov (%p33_p0, %s31_s19), 0  ;;  %p111_p4 = scmp.ne.s32.totalorder %s1177_s13, %s1173_s12 }
   0x8   : > { %p1251_p3 = por %p80_p2, %p79_p1  ;;  %s68_s22 = ssub.s32 %s1189_s16, %s1483_s19 }
   0x9   : > { %p112_p5 = scmp.eq.s32.totalorder %s874_s18, 0  ;;  %p70_p6 = scmp.eq.s32.totalorder %s68_s22, 0 }
   0xa   : > { %p137_p7 = scmp.eq.s32.totalorder %s874_s18, 1  ;;  %p878_p10 = scmp.ge.s32.totalorder %s1193_s17, 2 }
   0xb   : > { %p1258_p8 = por %p112_p5, %p111_p4 }
   0xc   : > { %s1263_s24 = scalar_select %p70_p6, %s1181_s14, %s72_s20  }
   0xd   : > { %p1265_p9 = por %p137_p7, %p79_p1  ;;  %174 = sbr.rel (%p878_p10) target bundleno = 59 (0x3b), region = 20 }
  0x12   : > { %177 = sbr.rel (!%p1251_p3) target bundleno = 54 (0x36), region = 24  ;;  %s179_s26 = sand.u32 (%p1251_p3), 1, %s1181_s14  }
  0x13   : > { %s1029_s27 = sshll.u32 (%p1251_p3), %s1189_s16, 3  ;;  %s879_s28 = sshll.u32 (%p1251_p3), %s179_s26, 8 }
  0x14   : > { %s1277_s4 = scalar_lea.vmem (%p1251_p3), %s1471_s1, %s1029_s27  ;;  %s1282_s5 = scalar_lea.vmem (%p1251_p3), [#allocation3], %s879_s28 }
  0x15   : > { %v278_v0 = vld [vmem:[%s1277_s4] sm:$0xff] (%p1251_p3)  ;;  %v280_v1 = vld [vmem:[%s1277_s4 + $0x10] sm:$0xff] (%p1251_p3) }
  0x16   : > { %v282_v2 = vld [vmem:[%s1277_s4 + $0x20] sm:$0xff] (%p1251_p3)  ;;  %279 = vst [vmem:[%s1282_s5] sm:$0xff] (%p1251_p3), %v278_v0  ;;  %v284_v3 = vld [vmem:[%s1277_s4 + $0x30] sm:$0xff] (%p1251_p3) }
  0x17   : > { %281 = vst [vmem:[%s1282_s5 + $0x8] sm:$0xff] %v280_v1  ;;  %v286_v4 = vld [vmem:[%s1277_s4 + $0x40] sm:$0xff]  ;;  %v288_v5 = vld [vmem:[%s1277_s4 + $0x50] sm:$0xff] }
  0x18   : > { %283 = vst [vmem:[%s1282_s5 + $0x10] sm:$0xff] %v282_v2  ;;  %v290_v6 = vld [vmem:[%s1277_s4 + $0x60] sm:$0xff]  ;;  %v292_v7 = vld [vmem:[%s1277_s4 + $0x70] sm:$0xff] }
  0x19   : > { %285 = vst [vmem:[%s1282_s5 + $0x18] sm:$0xff] %v284_v3  ;;  %v294_v8 = vld [vmem:[%s1277_s4 + $0x80] sm:$0xff]  ;;  %v296_v9 = vld [vmem:[%s1277_s4 + $0x90] sm:$0xff] }
  0x1a   : > { %287 = vst [vmem:[%s1282_s5 + $0x20] sm:$0xff] %v286_v4  ;;  %v298_v10 = vld [vmem:[%s1277_s4 + $0xa0] sm:$0xff]  ;;  %v300_v11 = vld [vmem:[%s1277_s4 + $0xb0] sm:$0xff] }
  0x1b   : > { %289 = vst [vmem:[%s1282_s5 + $0x28] sm:$0xff] %v288_v5  ;;  %v302_v12 = vld [vmem:[%s1277_s4 + $0xc0] sm:$0xff]  ;;  %v304_v13 = vld [vmem:[%s1277_s4 + $0xd0] sm:$0xff] }
  0x1c   : > { %291 = vst [vmem:[%s1282_s5 + $0x30] sm:$0xff] %v290_v6  ;;  %v306_v14 = vld [vmem:[%s1277_s4 + $0xe0] sm:$0xff]  ;;  %v308_v15 = vld [vmem:[%s1277_s4 + $0xf0] sm:$0xff] }
  0x1d   : > { %293 = vst [vmem:[%s1282_s5 + $0x38] sm:$0xff] %v292_v7  ;;  %v310_v16 = vld [vmem:[%s1277_s4 + $0x100] sm:$0xff]  ;;  %v312_v17 = vld [vmem:[%s1277_s4 + $0x110] sm:$0xff] }
  0x1e   : > { %295 = vst [vmem:[%s1282_s5 + $0x40] sm:$0xff] %v294_v8  ;;  %v314_v18 = vld [vmem:[%s1277_s4 + $0x120] sm:$0xff]  ;;  %v316_v19 = vld [vmem:[%s1277_s4 + $0x130] sm:$0xff] }
  0x1f   : > { %297 = vst [vmem:[%s1282_s5 + $0x48] sm:$0xff] %v296_v9  ;;  %v318_v20 = vld [vmem:[%s1277_s4 + $0x140] sm:$0xff]  ;;  %v320_v21 = vld [vmem:[%s1277_s4 + $0x150] sm:$0xff] }
  0x20   : > { %299 = vst [vmem:[%s1282_s5 + $0x50] sm:$0xff] %v298_v10  ;;  %v322_v22 = vld [vmem:[%s1277_s4 + $0x160] sm:$0xff]  ;;  %v324_v23 = vld [vmem:[%s1277_s4 + $0x170] sm:$0xff] }
  0x21   : > { %301 = vst [vmem:[%s1282_s5 + $0x58] sm:$0xff] %v300_v11  ;;  %v326_v24 = vld [vmem:[%s1277_s4 + $0x180] sm:$0xff]  ;;  %v328_v25 = vld [vmem:[%s1277_s4 + $0x190] sm:$0xff] }
  0x22   : > { %303 = vst [vmem:[%s1282_s5 + $0x60] sm:$0xff] %v302_v12  ;;  %v330_v26 = vld [vmem:[%s1277_s4 + $0x1a0] sm:$0xff]  ;;  %v332_v27 = vld [vmem:[%s1277_s4 + $0x1b0] sm:$0xff] }
  0x23   : > { %305 = vst [vmem:[%s1282_s5 + $0x68] sm:$0xff] %v304_v13  ;;  %v334_v28 = vld [vmem:[%s1277_s4 + $0x1c0] sm:$0xff]  ;;  %v336_v29 = vld [vmem:[%s1277_s4 + $0x1d0] sm:$0xff] }
  0x24   : > { %307 = vst [vmem:[%s1282_s5 + $0x70] sm:$0xff] %v306_v14  ;;  %v338_v30 = vld [vmem:[%s1277_s4 + $0x1e0] sm:$0xff]  ;;  %v340_v31 = vld [vmem:[%s1277_s4 + $0x1f0] sm:$0xff] }
  0x25   : > { %309 = vst [vmem:[%s1282_s5 + $0x78] sm:$0xff] %v308_v15 }
  0x26   : > { %311 = vst [vmem:[%s1282_s5 + $0x80] sm:$0xff] %v310_v16 }
  0x27   : > { %313 = vst [vmem:[%s1282_s5 + $0x88] sm:$0xff] %v312_v17 }
  0x28   : > { %315 = vst [vmem:[%s1282_s5 + $0x90] sm:$0xff] %v314_v18 }
  0x29   : > { %317 = vst [vmem:[%s1282_s5 + $0x98] sm:$0xff] %v316_v19 }
  0x2a   : > { %319 = vst [vmem:[%s1282_s5 + $0xa0] sm:$0xff] %v318_v20 }
  0x2b   : > { %321 = vst [vmem:[%s1282_s5 + $0xa8] sm:$0xff] %v320_v21 }
  0x2c   : > { %323 = vst [vmem:[%s1282_s5 + $0xb0] sm:$0xff] %v322_v22 }
  0x2d   : > { %325 = vst [vmem:[%s1282_s5 + $0xb8] sm:$0xff] %v324_v23 }
  0x2e   : > { %327 = vst [vmem:[%s1282_s5 + $0xc0] sm:$0xff] %v326_v24 }
  0x2f   : > { %329 = vst [vmem:[%s1282_s5 + $0xc8] sm:$0xff] %v328_v25 }
  0x30   : > { %331 = vst [vmem:[%s1282_s5 + $0xd0] sm:$0xff] %v330_v26 }
  0x31   : > { %333 = vst [vmem:[%s1282_s5 + $0xd8] sm:$0xff] %v332_v27 }
  0x32   : > { %335 = vst [vmem:[%s1282_s5 + $0xe0] sm:$0xff] %v334_v28 }
  0x33   : > { %337 = vst [vmem:[%s1282_s5 + $0xe8] sm:$0xff] %v336_v29 }
  0x34   : > { %339 = vst [vmem:[%s1282_s5 + $0xf0] sm:$0xff] %v338_v30 }
  0x35   : > { %341 = vst [vmem:[%s1282_s5 + $0xf8] sm:$0xff] %v340_v31 }
  0x36 PF: > { %s348_s6 = sand.u32 1, %s1181_s14   ;;  %s883_s7 = sshll.u32 %s1189_s16, 1 }
  0x37   : > { %s882_s8 = sshll.u32 %s348_s6, 1  ;;  %s356_s11 = scalar_lea.hbm %s1472_s2, %s883_s7 }
  0x38   : > { %s358_s12 = sshll.u32 %s356_s11, 4  ;;  %s352_s18 = scalar_lea.vmem [#allocation4], %s882_s8  ;;  %s359_s12 = int_to_ptr.hbm [resolvable:$true] %s358_s12 }
  0x39   : > { %s360_s20 = sshll.u32 %s352_s18, 4  ;;  %s349_s22 = scalar_lea.sflag [#allocation5], %s348_s6  ;;  %s361_s20 = int_to_ptr.vmem [resolvable:$true] %s360_s20 }
  0x3a   : > { %1065 = dma.hbm_to_vmem [thread:$0]  (%p1251_p3), %s359_s12, 32, %s361_s20, %s349_s22  }
  0x3b PF: > { %p884_p11 = scmp.ge.s32.totalorder %s1193_s17, 1  ;;  %p365_p12 = scmp.lt.s32.totalorder %s1193_s17, 3 }
  0x3d   : > { %p366_p13 = pnand %p884_p11, %p365_p12 }
  0x3e   : > { %s1355_s26 = sand.u32 (!%p366_p13), 1, %s1177_s13  }
  0x3f   : > { %369 = sbr.rel (%p366_p13) target bundleno = 260 (0x104), region = 66  ;;  %s885_s27 = sshll.u32 (!%p366_p13), %s1355_s26, 8 }
  0x40   : > { %s886_s28 = sshll.u32 (!%p366_p13), %s1355_s26, 1  ;;  %s1359_s29 = scalar_lea.vmem (!%p366_p13), [#allocation3], %s885_s27 }
  0x41   : > { %s379_s21 = scalar_lea.sflag (!%p366_p13), [#allocation5], %s1355_s26  ;;  %s1362_s30 = scalar_lea.vmem (!%p366_p13), [#allocation4], %s886_s28 }
  0x44   : > { %1168 = dma.done.wait (%p1258_p8), %s379_s21, 32  }
  0x45   : > { %1170 = vsyncadd (%p1258_p8), %s379_s21, 4294967264  ;;  %v954_v32 = vld [vmem:[%s1359_s29 + $0x70] sm:$0xf]  ;;  %v1047_v33 = vld [vmem:[%s1359_s29 + $0x74] sm:$0xf0]  ;;  %s887_s11 = sshll.u32 %s1355_s26, 4 }
  0x46   : > { %v1018_v34 = vld [vmem:[%s1359_s29 + $0xf0] sm:$0xf]  ;;  %v955_v35 = vor.u32 %v1047_v33, %v954_v32  ;;  %v1063_v36 = vld [vmem:[%s1359_s29 + $0xf4] sm:$0xf0]  ;;  %v1046_v37 = vld [vmem:[%s1359_s29 + $0x74] sm:$0xf] }
  0x47   : > { %v956_v38 = vld [vmem:[%s1359_s29 + $0x78] sm:$0xf0]  ;;  %v1019_v39 = vor.u32 %v1063_v36, %v1018_v34  ;;  %v1062_v41 = vld [vmem:[%s1359_s29 + $0xf4] sm:$0xf]  ;;  %v946_v43 = vld [vmem:[%s1359_s29 + $0x60] sm:$0xf] }
  0x48   : > { %v959_v40 = vor.u32 %v1046_v37, %v956_v38  ;;  %v1020_v42 = vld [vmem:[%s1359_s29 + $0xf8] sm:$0xf0]  ;;  %646 = vmatpush.bf16.msra.mxu0 %v955_v35  ;;  %v1045_v45 = vld [vmem:[%s1359_s29 + $0x64] sm:$0xf0]  ;;  %v1010_v46 = vld [vmem:[%s1359_s29 + $0xe0] sm:$0xf] }
  0x49   : > { %v1023_v44 = vor.u32 %v1062_v41, %v1020_v42  ;;  %v1061_v47 = vld [vmem:[%s1359_s29 + $0xe4] sm:$0xf0]  ;;  %660 = vmatpush.bf16.msra.mxu1 %v1019_v39  ;;  %v947_v48 = vor.u32 %v1045_v45, %v946_v43  ;;  %v1044_v50 = vld [vmem:[%s1359_s29 + $0x64] sm:$0xf]  ;;  %v948_v51 = vld [vmem:[%s1359_s29 + $0x68] sm:$0xf0] }
  0x4a   : > { %674 = vmatpush.bf16.msra.mxu2 %v959_v40  ;;  %v1011_v49 = vor.u32 %v1061_v47, %v1010_v46  ;;  %v1060_v52 = vld [vmem:[%s1359_s29 + $0xe4] sm:$0xf]  ;;  %v951_v53 = vor.u32 %v1044_v50, %v948_v51  ;;  %v1012_v54 = vld [vmem:[%s1359_s29 + $0xe8] sm:$0xf0]  ;;  %v938_v55 = vld [vmem:[%s1359_s29 + $0x50] sm:$0xf] }
  0x4b   : > { %688 = vmatpush.bf16.msra.mxu3 %v1023_v44  ;;  %v1043_v56 = vld [vmem:[%s1359_s29 + $0x54] sm:$0xf0]  ;;  %v1015_v57 = vor.u32 %v1060_v52, %v1012_v54  ;;  %v1002_v58 = vld [vmem:[%s1359_s29 + $0xd0] sm:$0xf]  ;;  %v1042_v60 = vld [vmem:[%s1359_s29 + $0x54] sm:$0xf] }
  0x4c   : > { %v1059_v59 = vld [vmem:[%s1359_s29 + $0xd4] sm:$0xf0]  ;;  %647 = vmatpush.bf16.msra.mxu0 %v947_v48  ;;  %v939_v61 = vor.u32 %v1043_v56, %v938_v55  ;;  %v940_v62 = vld [vmem:[%s1359_s29 + $0x58] sm:$0xf0]  ;;  %v1058_v63 = vld [vmem:[%s1359_s29 + $0xd4] sm:$0xf] }
  0x4d   : > { %v1004_v0 = vld [vmem:[%s1359_s29 + $0xd8] sm:$0xf0]  ;;  %661 = vmatpush.bf16.msra.mxu1 %v1011_v49  ;;  %v1003_v1 = vor.u32 %v1059_v59, %v1002_v58  ;;  %v943_v2 = vor.u32 %v1042_v60, %v940_v62  ;;  %v930_v3 = vld [vmem:[%s1359_s29 + $0x40] sm:$0xf]  ;;  %v1041_v4 = vld [vmem:[%s1359_s29 + $0x44] sm:$0xf0] }
  0x4e   : > { %675 = vmatpush.bf16.msra.mxu2 %v951_v53  ;;  %v994_v5 = vld [vmem:[%s1359_s29 + $0xc0] sm:$0xf]  ;;  %v1007_v6 = vor.u32 %v1058_v63, %v1004_v0  ;;  %v1057_v7 = vld [vmem:[%s1359_s29 + $0xc4] sm:$0xf0]  ;;  %v1040_v8 = vld [vmem:[%s1359_s29 + $0x44] sm:$0xf]  ;;  %v931_v12 = vor.u32 %v1041_v4, %v930_v3 }
  0x4f   : > { %689 = vmatpush.bf16.msra.mxu3 %v1015_v57  ;;  %v932_v9 = vld [vmem:[%s1359_s29 + $0x48] sm:$0xf0]  ;;  %v1056_v10 = vld [vmem:[%s1359_s29 + $0xc4] sm:$0xf]  ;;  %v995_v13 = vor.u32 %v1057_v7, %v994_v5  ;;  %v922_v15 = vld [vmem:[%s1359_s29 + $0x30] sm:$0xf] }
  0x50   : > { %v996_v11 = vld [vmem:[%s1359_s29 + $0xc8] sm:$0xf0]  ;;  %648 = vmatpush.bf16.msra.mxu0 %v939_v61  ;;  %v935_v14 = vor.u32 %v1040_v8, %v932_v9  ;;  %v1039_v16 = vld [vmem:[%s1359_s29 + $0x34] sm:$0xf0]  ;;  %v986_v17 = vld [vmem:[%s1359_s29 + $0xb0] sm:$0xf] }
  0x51   : > { %662 = vmatpush.bf16.msra.mxu1 %v1003_v1  ;;  %v999_v18 = vor.u32 %v1056_v10, %v996_v11  ;;  %v1055_v19 = vld [vmem:[%s1359_s29 + $0xb4] sm:$0xf0]  ;;  %v1038_v20 = vld [vmem:[%s1359_s29 + $0x34] sm:$0xf]  ;;  %v924_v21 = vld [vmem:[%s1359_s29 + $0x38] sm:$0xf0]  ;;  %v923_v24 = vor.u32 %v1039_v16, %v922_v15 }
  0x52   : > { %676 = vmatpush.bf16.msra.mxu2 %v943_v2  ;;  %v1054_v22 = vld [vmem:[%s1359_s29 + $0xb4] sm:$0xf]  ;;  %v988_v23 = vld [vmem:[%s1359_s29 + $0xb8] sm:$0xf0]  ;;  %v987_v25 = vor.u32 %v1055_v19, %v986_v17  ;;  %v927_v26 = vor.u32 %v1038_v20, %v924_v21  ;;  %v914_v27 = vld [vmem:[%s1359_s29 + $0x20] sm:$0xf] }
  0x53   : > { %690 = vmatpush.bf16.msra.mxu3 %v1007_v6  ;;  %v1037_v28 = vld [vmem:[%s1359_s29 + $0x24] sm:$0xf0]  ;;  %v978_v29 = vld [vmem:[%s1359_s29 + $0xa0] sm:$0xf]  ;;  %v991_v30 = vor.u32 %v1054_v22, %v988_v23  ;;  %v1036_v32 = vld [vmem:[%s1359_s29 + $0x24] sm:$0xf] }
  0x54   : > { %649 = vmatpush.bf16.msra.mxu0 %v931_v12  ;;  %v1053_v31 = vld [vmem:[%s1359_s29 + $0xa4] sm:$0xf0]  ;;  %v916_v33 = vld [vmem:[%s1359_s29 + $0x28] sm:$0xf0]  ;;  %v1052_v34 = vld [vmem:[%s1359_s29 + $0xa4] sm:$0xf]  ;;  %v915_v36 = vor.u32 %v1037_v28, %v914_v27 }
  0x55   : > { %663 = vmatpush.bf16.msra.mxu1 %v995_v13  ;;  %v980_v35 = vld [vmem:[%s1359_s29 + $0xa8] sm:$0xf0]  ;;  %v979_v37 = vor.u32 %v1053_v31, %v978_v29  ;;  %v919_v38 = vor.u32 %v1036_v32, %v916_v33  ;;  %v906_v39 = vld [vmem:[%s1359_s29 + $0x10] sm:$0xf]  ;;  %v1035_v40 = vld [vmem:[%s1359_s29 + $0x14] sm:$0xf0] }
  0x56   : > { %677 = vmatpush.bf16.msra.mxu2 %v935_v14  ;;  %v970_v41 = vld [vmem:[%s1359_s29 + $0x90] sm:$0xf]  ;;  %v983_v42 = vor.u32 %v1052_v34, %v980_v35  ;;  %v1051_v43 = vld [vmem:[%s1359_s29 + $0x94] sm:$0xf0]  ;;  %v1034_v44 = vld [vmem:[%s1359_s29 + $0x14] sm:$0xf]  ;;  %v907_v48 = vor.u32 %v1035_v40, %v906_v39 }
  0x57   : > { %691 = vmatpush.bf16.msra.mxu3 %v999_v18  ;;  %v908_v45 = vld [vmem:[%s1359_s29 + $0x18] sm:$0xf0]  ;;  %v1050_v46 = vld [vmem:[%s1359_s29 + $0x94] sm:$0xf]  ;;  %v971_v49 = vor.u32 %v1051_v43, %v970_v41  ;;  %v898_v51 = vld [vmem:[%s1359_s29] sm:$0xf] }
  0x58   : > { %650 = vmatpush.bf16.msra.mxu0 %v923_v24  ;;  %v972_v47 = vld [vmem:[%s1359_s29 + $0x98] sm:$0xf0]  ;;  %v911_v50 = vor.u32 %v1034_v44, %v908_v45  ;;  %v1033_v52 = vld [vmem:[%s1359_s29 + $0x4] sm:$0xf0]  ;;  %v962_v53 = vld [vmem:[%s1359_s29 + $0x80] sm:$0xf] }
  0x59   : > { %664 = vmatpush.bf16.msra.mxu1 %v987_v25  ;;  %v975_v54 = vor.u32 %v1050_v46, %v972_v47  ;;  %v1049_v55 = vld [vmem:[%s1359_s29 + $0x84] sm:$0xf0]  ;;  %v1032_v56 = vld [vmem:[%s1359_s29 + $0x4] sm:$0xf]  ;;  %v900_v57 = vld [vmem:[%s1359_s29 + $0x8] sm:$0xf0]  ;;  %v899_v60 = vor.u32 %v1033_v52, %v898_v51 }
  0x5a   : > { %678 = vmatpush.bf16.msra.mxu2 %v927_v26  ;;  %v1048_v58 = vld [vmem:[%s1359_s29 + $0x84] sm:$0xf]  ;;  %v964_v59 = vld [vmem:[%s1359_s29 + $0x88] sm:$0xf0]  ;;  %v890_v61 = vld [vmem:[%s1470_s0] sm:$0xf]  ;;  %v963_v63 = vor.u32 %v1049_v55, %v962_v53  ;;  %v903_v0 = vor.u32 %v1032_v56, %v900_v57 }
  0x5b   : > { %692 = vmatpush.bf16.msra.mxu3 %v991_v30  ;;  %v1031_v62 = vld [vmem:[%s1470_s0 + $0x4] sm:$0xf0]  ;;  %v1030_v1 = vld [vmem:[%s1470_s0 + $0x4] sm:$0xf]  ;;  %v892_v2 = vld [vmem:[%s1470_s0 + $0x8] sm:$0xf0]  ;;  %v967_v3 = vor.u32 %v1048_v58, %v964_v59 }
  0x5c   : > { %651 = vmatpush.bf16.msra.mxu0 %v915_v36  ;;  %v891_v4 = vor.u32 %v1031_v62, %v890_v61  ;;  %v895_v5 = vor.u32 %v1030_v1, %v892_v2  ;;  %v470_v6 = vld [vmem:[%s1362_s30] sm:$0x3]  ;;  %s418_s12 = scalar_lea.vmem [#allocation6], %s887_s11  ;;  %s1064_s18 = sshll.u32 (%p1265_p9), %s1185_s15, 3 }
  0x5d   : > { %665 = vmatpush.bf16.msra.mxu1 %v979_v37  ;;  %v472_v7 = vperm.slane %v470_v6, 0  ;;  %v473_v10 = vperm.slane %v470_v6, 1  ;;  %s718_s26 = scalar_lea.vmem (%p1265_p9), %s1473_s3, %s1064_s18 }
  0x5e   : > { %679 = vmatpush.bf16.msra.mxu2 %v919_v38 }
  0x5f   : > { %693 = vmatpush.bf16.msra.mxu3 %v983_v42 }
  0x60   : > { %652 = vmatpush.bf16.msra.mxu0 %v907_v48 }
  0x61   : > { %666 = vmatpush.bf16.msra.mxu1 %v971_v49 }
  0x62   : > { %680 = vmatpush.bf16.msra.mxu2 %v911_v50 }
  0x63   : > { %694 = vmatpush.bf16.msra.mxu3 %v975_v54 }
  0x64   : > { %653 = vmatpush.bf16.msra.mxu0 %v899_v60 }
  0x65   : > { %667 = vmatpush.bf16.msra.mxu1 %v963_v63 }
  0x66   : > { %681 = vmatpush.bf16.msra.mxu2 %v903_v0 }
  0x67   : > { %695 = vmatpush.bf16.msra.mxu3 %v967_v3  ;;  %654 = vmatmul.bf16.vlgmr.msra.gmra.mxu0 %v891_v4 }
  0x68   : > { %668 = vmatmul.bf16.vlgmr.msra.gmra.mxu1 %v895_v5 }
  0x69   : > { %682 = vmatmul.bf16.vlgmr.msra.gmra.mxu2 %v891_v4 }
  0x6a   : > { %696 = vmatmul.bf16.vlgmr.msra.gmra.mxu3 %v895_v5 }
  0xe4   : > { %v655_v8 = vpop.f32.mrf.mxu0 }
  0xe5   : > { %v656_v9 = vadd.f32 %v655_v8, %v472_v7  ;;  %v669_v11 = vpop.f32.mrf.mxu1 }
  0xe7   : > { %v670_v13 = vadd.f32 %v669_v11, %v656_v9 }
  0xec   : > { %v683_v12 = vpop.f32.mrf.mxu2  ;;  %v657_v17 = vpop.f32.mrf.mxu0 }
  0xed   : > { %v684_v14 = vadd.f32 %v683_v12, %v473_v10  ;;  %v697_v15 = vpop.f32.mrf.mxu3  ;;  %v658_v19 = vadd.f32 %v657_v17, %v472_v7  ;;  %v671_v22 = vpop.f32.mrf.mxu1 }
  0xef   : > { %v698_v16 = vadd.f32 %v697_v15, %v684_v14  ;;  %v672_v24 = vadd.f32 %v671_v22, %v658_v19 }
  0xf1   : > { %v702_v18 = vpack.c.bf16 %v698_v16, %v670_v13 }
  0xf3   : > { %704 = vst [vmem:[%s418_s12] sm:$0xff] %v702_v18 }
  0xf4   : > { %v685_v20 = vpop.f32.mrf.mxu2 }
  0xf5   : > { %v686_v21 = vadd.f32 %v685_v20, %v473_v10  ;;  %v699_v23 = vpop.f32.mrf.mxu3 }
  0xf7   : > { %v700_v25 = vadd.f32 %v699_v23, %v686_v21  ;;  %712 = sbr.rel (!%p1265_p9) target bundleno = 260 (0x104), region = 78 }
  0xf9   : > { %v703_v26 = vpack.c.bf16 %v700_v25, %v672_v24 }
  0xfa   : > { %v749_v27 = vld [vmem:[%s418_s12] sm:$0xff] (%p1265_p9) }
  0xfb   : > { %705 = vst [vmem:[%s418_s12 + $0x8] sm:$0xff] %v703_v26 }
  0xfc   : > { %750 = vst [vmem:[%s718_s26] sm:$0xff] %v749_v27 }
 0x102   : > { %v751_v28 = vld [vmem:[%s418_s12 + $0x8] sm:$0xff] }
 0x103   : > { %752 = vst [vmem:[%s718_s26 + $0x10] sm:$0xff] %v751_v28 }
 0x104 PF: > { %s16_s17 = sadd.s32 1, %s1193_s17   ;;  %s1477_s12 = smov %s1177_s13 }
 0x105   : > { %p13_p0 = scmp.ge.s32.totalorder %s16_s17, 4   ;;  %s1478_s13 = smov %s1181_s14 }
 0x106   : > { %s1479_s14 = smov %s1263_s24  ;;  %s1480_s15 = smov %s1189_s16 }
 0x107   : > { %s1481_s16 = smov %s1483_s19  ;;  %15 = sbr.rel (!%p13_p0) target bundleno = 4 (0x4), region = 159 }
 0x10c   :  { %768 = vsyncpa [#allocation5], 1 }
 0x10d   :  { %770 = vsyncpa [#allocation5 + $0x1], 1 }

// kernel: mil_forward.39
= control target key start
LH: loop header
LB: loop body
LE: loop exit
PB: predicated region body
PF: predicated region fallthrough
CT: control target
= control target key end

     0   :  { %9 = vsyncpa [#allocation5], 0  ;;  %s1236_s0 = inlined_call_operand.vmem [shape: bf16[16,128], index: 0, kind: input, shape index: {}]   ;;  %s1237_s1 = inlined_call_operand.vmem [shape: bf16[128,512], index: 1, kind: input, shape index: {}]   ;;  %s1238_s2 = inlined_call_operand.hbm [shape: f32[1,512], index: 2, kind: input, shape index: {}]   ;;  %s1239_s3 = inlined_call_operand.vmem [shape: bf16[16,512], index: 3, kind: input, shape index: {}]   ;;  %s1240_s4 = inlined_call_operand.vmem [shape: bf16[16,512], index: 4, kind: output, shape index: {}]  }
   0x1   :  { %11 = vsyncpa [#allocation5 + $0x1], 0  ;;  %s1066_s15 = smov 0   ;;  %s1068_s16 = smov 0  }
   0x2   :  { %s1070_s17 = smov 0   ;;  %s1072_s18 = smov 0  }
   0x3   :  { %s1074_s19 = smov 0   ;;  %s1076_s20 = smov 0  }
   0x4 LB: > { %s800_s21 = sadd.s32 4294967295, %s1039_s20   ;;  %s32_s22 = sadd.s32 1, %s1035_s19  ;;  %s1039_s20 = sphi %s1076_s20, %s17_s20   ;;  %s1035_s19 = sphi %s1074_s19, %s1248_s19   ;;  %s1031_s18 = sphi %s1072_s18, %s1247_s18   ;;  %s1027_s17 = sphi %s1070_s17, %s1246_s17   ;;  %s1023_s16 = sphi %s1068_s16, %s1245_s16   ;;  %s1019_s15 = sphi %s1066_s15, %s1244_s15  }
   0x5   : > { %p34_p0 = scmp.ge.s32.totalorder %s32_s22, 2  ;;  %s73_s23 = sadd.s32 1, %s1027_s17 }
   0x6   : > { %p80_p1 = scmp.ne.s32.totalorder %s1027_s17, %s1023_s16  ;;  %p81_p2 = scmp.eq.s32.totalorder %s1039_s20, 0 }
   0x7   : > { %s1250_s22 = smov (%p34_p0, %s32_s22), 0  ;;  %p112_p4 = scmp.ne.s32.totalorder %s1023_s16, %s1019_s15 }
   0x8   : > { %p1102_p3 = por %p81_p2, %p80_p1  ;;  %s69_s25 = ssub.s32 %s1035_s19, %s1250_s22 }
   0x9   : > { %p113_p5 = scmp.eq.s32.totalorder %s800_s21, 0  ;;  %p71_p6 = scmp.eq.s32.totalorder %s69_s25, 0 }
   0xa   : > { %p166_p7 = scmp.eq.s32.totalorder %s800_s21, 1  ;;  %p804_p10 = scmp.ge.s32.totalorder %s1039_s20, 2 }
   0xb   : > { %p1109_p8 = por %p113_p5, %p112_p4 }
   0xc   : > { %s1114_s27 = scalar_select %p71_p6, %s1027_s17, %s73_s23  }
   0xd   : > { %p1116_p9 = por %p166_p7, %p80_p1  ;;  %200 = sbr.rel (%p804_p10) target bundleno = 49 (0x31), region = 20 }
  0x12   : > { %203 = sbr.rel (!%p1102_p3) target bundleno = 38 (0x26), region = 24  ;;  %s205_s29 = sand.u32 (%p1102_p3), 1, %s1027_s17  }
  0x13   : > { %s891_s30 = sshll.u32 (%p1102_p3), %s1035_s19, 3  ;;  %s805_s5 = sshll.u32 (%p1102_p3), %s205_s29, 7 }
  0x14   : > { %s1128_s8 = scalar_lea.vmem (%p1102_p3), %s1237_s1, %s891_s30  ;;  %s207_s9 = scalar_lea.vmem (%p1102_p3), [#allocation3], %s805_s5 }
  0x15   : > { %v272_v0 = vld [vmem:[%s1128_s8] sm:$0xff] (%p1102_p3)  ;;  %v274_v1 = vld [vmem:[%s1128_s8 + $0x10] sm:$0xff] (%p1102_p3) }
  0x16   : > { %v276_v2 = vld [vmem:[%s1128_s8 + $0x20] sm:$0xff] (%p1102_p3)  ;;  %273 = vst [vmem:[%s207_s9] sm:$0xff] (%p1102_p3), %v272_v0  ;;  %v278_v3 = vld [vmem:[%s1128_s8 + $0x30] sm:$0xff] (%p1102_p3) }
  0x17   : > { %275 = vst [vmem:[%s207_s9 + $0x8] sm:$0xff] %v274_v1  ;;  %v280_v4 = vld [vmem:[%s1128_s8 + $0x40] sm:$0xff]  ;;  %v282_v5 = vld [vmem:[%s1128_s8 + $0x50] sm:$0xff] }
  0x18   : > { %277 = vst [vmem:[%s207_s9 + $0x10] sm:$0xff] %v276_v2  ;;  %v284_v6 = vld [vmem:[%s1128_s8 + $0x60] sm:$0xff]  ;;  %v286_v7 = vld [vmem:[%s1128_s8 + $0x70] sm:$0xff] }
  0x19   : > { %279 = vst [vmem:[%s207_s9 + $0x18] sm:$0xff] %v278_v3  ;;  %v288_v8 = vld [vmem:[%s1128_s8 + $0x80] sm:$0xff]  ;;  %v290_v9 = vld [vmem:[%s1128_s8 + $0x90] sm:$0xff] }
  0x1a   : > { %281 = vst [vmem:[%s207_s9 + $0x20] sm:$0xff] %v280_v4  ;;  %v292_v10 = vld [vmem:[%s1128_s8 + $0xa0] sm:$0xff]  ;;  %v294_v11 = vld [vmem:[%s1128_s8 + $0xb0] sm:$0xff] }
  0x1b   : > { %283 = vst [vmem:[%s207_s9 + $0x28] sm:$0xff] %v282_v5  ;;  %v296_v12 = vld [vmem:[%s1128_s8 + $0xc0] sm:$0xff]  ;;  %v298_v13 = vld [vmem:[%s1128_s8 + $0xd0] sm:$0xff] }
  0x1c   : > { %285 = vst [vmem:[%s207_s9 + $0x30] sm:$0xff] %v284_v6  ;;  %v300_v14 = vld [vmem:[%s1128_s8 + $0xe0] sm:$0xff]  ;;  %v302_v15 = vld [vmem:[%s1128_s8 + $0xf0] sm:$0xff] }
  0x1d   : > { %287 = vst [vmem:[%s207_s9 + $0x38] sm:$0xff] %v286_v7 }
  0x1e   : > { %289 = vst [vmem:[%s207_s9 + $0x40] sm:$0xff] %v288_v8 }
  0x1f   : > { %291 = vst [vmem:[%s207_s9 + $0x48] sm:$0xff] %v290_v9 }
  0x20   : > { %293 = vst [vmem:[%s207_s9 + $0x50] sm:$0xff] %v292_v10 }
  0x21   : > { %295 = vst [vmem:[%s207_s9 + $0x58] sm:$0xff] %v294_v11 }
  0x22   : > { %297 = vst [vmem:[%s207_s9 + $0x60] sm:$0xff] %v296_v12 }
  0x23   : > { %299 = vst [vmem:[%s207_s9 + $0x68] sm:$0xff] %v298_v13 }
  0x24   : > { %301 = vst [vmem:[%s207_s9 + $0x70] sm:$0xff] %v300_v14 }
  0x25   : > { %303 = vst [vmem:[%s207_s9 + $0x78] sm:$0xff] %v302_v15 }
  0x26 PF: > { %s310_s10 = sand.u32 1, %s1027_s17   ;;  %s809_s11 = sshll.u32 %s1035_s19, 1 }
  0x27   : > { %s808_s12 = sshll.u32 %s310_s10, 1  ;;  %s318_s15 = scalar_lea.hbm %s1238_s2, %s809_s11 }
  0x28   : > { %s320_s21 = sshll.u32 %s318_s15, 4  ;;  %s314_s23 = scalar_lea.vmem [#allocation4], %s808_s12  ;;  %s321_s21 = int_to_ptr.hbm [resolvable:$true] %s320_s21 }
  0x29   : > { %s322_s25 = sshll.u32 %s314_s23, 4  ;;  %s311_s29 = scalar_lea.sflag [#allocation5], %s310_s10  ;;  %s323_s25 = int_to_ptr.vmem [resolvable:$true] %s322_s25 }
  0x2a   : > { %911 = dma.hbm_to_vmem [thread:$0]  (%p1102_p3), %s321_s21, 32, %s323_s25, %s311_s29  }
  0x2b   : > { %328 = sbr.rel (!%p1102_p3) target bundleno = 49 (0x31), region = 66  ;;  %s810_s30 = sshll.u32 (%p1102_p3), %s310_s10, 4 }
  0x2c   : > { %s892_s5 = sshll.u32 (%p1102_p3), %s1035_s19, 3  ;;  %s332_s9 = scalar_lea.vmem (%p1102_p3), [#allocation6], %s810_s30 }
  0x2d   : > { %s338_s8 = scalar_lea.vmem (%p1102_p3), %s1239_s3, %s892_s5 }
  0x2e   : > { %v369_v16 = vld [vmem:[%s338_s8] sm:$0xff] (%p1102_p3)  ;;  %v371_v17 = vld [vmem:[%s338_s8 + $0x10] sm:$0xff] (%p1102_p3) }
  0x2f   : > { %370 = vst [vmem:[%s332_s9] sm:$0xff] (%p1102_p3), %v369_v16 }
  0x30   : > { %372 = vst [vmem:[%s332_s9 + $0x8] sm:$0xff] %v371_v17 }
  0x31 PF: > { %p813_p11 = scmp.ge.s32.totalorder %s1039_s20, 1  ;;  %p377_p12 = scmp.lt.s32.totalorder %s1039_s20, 3 }
  0x33   : > { %p378_p13 = pnand %p813_p11, %p377_p12 }
  0x34   : > { %s1162_s24 = sand.u32 (!%p378_p13), 1, %s1023_s16  }
  0x35   : > { %381 = sbr.rel (%p378_p13) target bundleno = 245 (0xf5), region = 104  ;;  %s814_s10 = sshll.u32 (!%p378_p13), %s1162_s24, 7 }
  0x36   : > { %s815_s11 = sshll.u32 (!%p378_p13), %s1162_s24, 1  ;;  %s1166_s12 = scalar_lea.vmem (!%p378_p13), [#allocation3], %s814_s10 }
  0x37   : > { %s391_s13 = scalar_lea.sflag (!%p378_p13), [#allocation5], %s1162_s24  ;;  %s1169_s14 = scalar_lea.vmem (!%p378_p13), [#allocation4], %s815_s11 }
  0x3a   : > { %1014 = dma.done.wait (%p1109_p8), %s391_s13, 32  }
  0x3b   : > { %1016 = vsyncadd (%p1109_p8), %s391_s13, 4294967264  ;;  %v880_v18 = vld [vmem:[%s1166_s12 + $0x70] sm:$0xf]  ;;  %v909_v19 = vld [vmem:[%s1166_s12 + $0x74] sm:$0xf0]  ;;  %s816_s21 = sshll.u32 %s1162_s24, 4 }
  0x3c   : > { %v908_v20 = vld [vmem:[%s1166_s12 + $0x74] sm:$0xf]  ;;  %v881_v21 = vor.u32 %v909_v19, %v880_v18  ;;  %v882_v22 = vld [vmem:[%s1166_s12 + $0x78] sm:$0xf0]  ;;  %v872_v23 = vld [vmem:[%s1166_s12 + $0x60] sm:$0xf] }
  0x3d   : > { %v907_v24 = vld [vmem:[%s1166_s12 + $0x64] sm:$0xf0]  ;;  %v885_v25 = vor.u32 %v908_v20, %v882_v22  ;;  %v906_v26 = vld [vmem:[%s1166_s12 + $0x64] sm:$0xf]  ;;  %v874_v27 = vld [vmem:[%s1166_s12 + $0x68] sm:$0xf0] }
  0x3e   : > { %568 = vmatpush.bf16.msra.mxu0 %v881_v21  ;;  %v873_v28 = vor.u32 %v907_v24, %v872_v23  ;;  %v877_v29 = vor.u32 %v906_v26, %v874_v27  ;;  %v864_v30 = vld [vmem:[%s1166_s12 + $0x50] sm:$0xf]  ;;  %v905_v31 = vld [vmem:[%s1166_s12 + $0x54] sm:$0xf0]  ;;  %v904_v32 = vld [vmem:[%s1166_s12 + $0x54] sm:$0xf] }
  0x3f   : > { %582 = vmatpush.bf16.msra.mxu1 %v885_v25  ;;  %v866_v33 = vld [vmem:[%s1166_s12 + $0x58] sm:$0xf0]  ;;  %v865_v34 = vor.u32 %v905_v31, %v864_v30  ;;  %v856_v36 = vld [vmem:[%s1166_s12 + $0x40] sm:$0xf]  ;;  %v903_v37 = vld [vmem:[%s1166_s12 + $0x44] sm:$0xf0] }
  0x40   : > { %v869_v35 = vor.u32 %v904_v32, %v866_v33  ;;  %v902_v38 = vld [vmem:[%s1166_s12 + $0x44] sm:$0xf]  ;;  %v858_v39 = vld [vmem:[%s1166_s12 + $0x48] sm:$0xf0]  ;;  %v857_v40 = vor.u32 %v903_v37, %v856_v36  ;;  %v848_v42 = vld [vmem:[%s1166_s12 + $0x30] sm:$0xf] }
  0x41   : > { %v861_v41 = vor.u32 %v902_v38, %v858_v39  ;;  %v901_v43 = vld [vmem:[%s1166_s12 + $0x34] sm:$0xf0]  ;;  %v900_v44 = vld [vmem:[%s1166_s12 + $0x34] sm:$0xf]  ;;  %v850_v45 = vld [vmem:[%s1166_s12 + $0x38] sm:$0xf0] }
  0x42   : > { %569 = vmatpush.bf16.msra.mxu0 %v873_v28  ;;  %v849_v46 = vor.u32 %v901_v43, %v848_v42  ;;  %v853_v47 = vor.u32 %v900_v44, %v850_v45  ;;  %v840_v48 = vld [vmem:[%s1166_s12 + $0x20] sm:$0xf]  ;;  %v899_v49 = vld [vmem:[%s1166_s12 + $0x24] sm:$0xf0]  ;;  %v898_v50 = vld [vmem:[%s1166_s12 + $0x24] sm:$0xf] }
  0x43   : > { %583 = vmatpush.bf16.msra.mxu1 %v877_v29  ;;  %v842_v51 = vld [vmem:[%s1166_s12 + $0x28] sm:$0xf0]  ;;  %v841_v52 = vor.u32 %v899_v49, %v840_v48  ;;  %v832_v54 = vld [vmem:[%s1166_s12 + $0x10] sm:$0xf]  ;;  %v897_v55 = vld [vmem:[%s1166_s12 + $0x14] sm:$0xf0] }
  0x44   : > { %v845_v53 = vor.u32 %v898_v50, %v842_v51  ;;  %v896_v56 = vld [vmem:[%s1166_s12 + $0x14] sm:$0xf]  ;;  %v834_v57 = vld [vmem:[%s1166_s12 + $0x18] sm:$0xf0]  ;;  %v833_v58 = vor.u32 %v897_v55, %v832_v54  ;;  %v824_v60 = vld [vmem:[%s1166_s12] sm:$0xf] }
  0x45   : > { %v837_v59 = vor.u32 %v896_v56, %v834_v57  ;;  %v895_v61 = vld [vmem:[%s1166_s12 + $0x4] sm:$0xf0]  ;;  %v894_v62 = vld [vmem:[%s1166_s12 + $0x4] sm:$0xf]  ;;  %v826_v63 = vld [vmem:[%s1166_s12 + $0x8] sm:$0xf0] }
  0x46   : > { %570 = vmatpush.bf16.msra.mxu0 %v865_v34  ;;  %v825_v0 = vor.u32 %v895_v61, %v824_v60  ;;  %v829_v1 = vor.u32 %v894_v62, %v826_v63  ;;  %v893_v2 = vld [vmem:[%s1236_s0] sm:$0xff]  ;;  %s403_s23 = scalar_lea.vmem [#allocation6], %s816_s21  ;;  %s441_s25 = scalar_lea.vmem [#allocation7], %s816_s21 }
  0x47   : > { %584 = vmatpush.bf16.msra.mxu1 %v869_v35  ;;  %v476_v3 = vld [vmem:[%s1169_s14] sm:$0x3]  ;;  %v596_v4 = vld [vmem:[%s403_s23] sm:$0xff]  ;;  %s910_s29 = sshll.u32 (%p1116_p9), %s1031_s18, 3 }
  0x48   : > { %v478_v5 = vperm.slane %v476_v3, 0  ;;  %v479_v6 = vperm.slane %v476_v3, 1  ;;  %v598_v7 = vunpack.c.l.bf16 %v596_v4  ;;  %v599_v9 = vunpack.c.h.bf16 %v596_v4  ;;  %v597_v15 = vld [vmem:[%s403_s23 + $0x8] sm:$0xff]  ;;  %s626_s6 = scalar_lea.vmem (%p1116_p9), %s1240_s4, %s910_s29 }
  0x49   : > { %v600_v18 = vunpack.c.l.bf16 %v597_v15  ;;  %v601_v21 = vunpack.c.h.bf16 %v597_v15 }
  0x4a   : > { %571 = vmatpush.bf16.msra.mxu0 %v857_v40 }
  0x4b   : > { %585 = vmatpush.bf16.msra.mxu1 %v861_v41 }
  0x4e   : > { %572 = vmatpush.bf16.msra.mxu0 %v849_v46 }
  0x4f   : > { %586 = vmatpush.bf16.msra.mxu1 %v853_v47 }
  0x52   : > { %573 = vmatpush.bf16.msra.mxu0 %v841_v52 }
  0x53   : > { %587 = vmatpush.bf16.msra.mxu1 %v845_v53 }
  0x56   : > { %574 = vmatpush.bf16.msra.mxu0 %v833_v58 }
  0x57   : > { %588 = vmatpush.bf16.msra.mxu1 %v837_v59 }
  0x5a   : > { %575 = vmatpush.bf16.msra.mxu0 %v825_v0 }
  0x5b   : > { %589 = vmatpush.bf16.msra.mxu1 %v829_v1 }
  0x5d   : > { %576 = vmatmul.bf16.vlgmr.msra.gmra.mxu0 %v893_v2 }
  0x5e   : > { %590 = vmatmul.bf16.vlgmr.msra.gmra.mxu1 %v893_v2 }
  0xda   : > { %v577_v8 = vpop.f32.mrf.mxu0 }
  0xdb   : > { %v578_v10 = vadd.f32 %v577_v8, %v478_v5  ;;  %v591_v11 = vpop.f32.mrf.mxu1 }
  0xdc   : > { %v592_v12 = vadd.f32 %v591_v11, %v479_v6 }
  0xdd   : > { %v602_v13 = vadd.f32 %v598_v7, %v578_v10 }
  0xde   : > { %v603_v14 = vadd.f32 %v599_v9, %v592_v12 }
  0xdf   : > { %v606_v16 = vmax.f32 %v602_v13, 0.0 }
  0xe0   : > { %v607_v17 = vmax.f32 %v603_v14, 0.0 }
  0xe2   : > { %v610_v19 = vpack.c.bf16 %v607_v17, %v606_v16  ;;  %v579_v20 = vpop.f32.mrf.mxu0 }
  0xe3   : > { %v580_v22 = vadd.f32 %v579_v20, %v478_v5  ;;  %v593_v23 = vpop.f32.mrf.mxu1 }
  0xe4   : > { %612 = vst [vmem:[%s441_s25] sm:$0xff] %v610_v19  ;;  %v594_v24 = vadd.f32 %v593_v23, %v479_v6 }
  0xe5   : > { %v604_v25 = vadd.f32 %v600_v18, %v580_v22 }
  0xe6   : > { %v605_v26 = vadd.f32 %v601_v21, %v594_v24 }
  0xe7   : > { %v608_v27 = vmax.f32 %v604_v25, 0.0 }
  0xe8   : > { %v609_v28 = vmax.f32 %v605_v26, 0.0  ;;  %620 = sbr.rel (!%p1116_p9) target bundleno = 245 (0xf5), region = 120 }
  0xea   : > { %v611_v29 = vpack.c.bf16 %v609_v28, %v608_v27 }
  0xeb   : > { %v657_v30 = vld [vmem:[%s441_s25] sm:$0xff] (%p1116_p9) }
  0xec   : > { %613 = vst [vmem:[%s441_s25 + $0x8] sm:$0xff] %v611_v29 }
  0xed   : > { %658 = vst [vmem:[%s626_s6] sm:$0xff] %v657_v30 }
  0xf3   : > { %v659_v31 = vld [vmem:[%s441_s25 + $0x8] sm:$0xff] }
  0xf4   : > { %660 = vst [vmem:[%s626_s6 + $0x10] sm:$0xff] %v659_v31 }
  0xf5 PF: > { %s17_s20 = sadd.s32 1, %s1039_s20   ;;  %s1244_s15 = smov %s1023_s16 }
  0xf6   : > { %p14_p0 = scmp.ge.s32.totalorder %s17_s20, 4   ;;  %s1245_s16 = smov %s1027_s17 }
  0xf7   : > { %s1246_s17 = smov %s1114_s27  ;;  %s1247_s18 = smov %s1035_s19 }
  0xf8   : > { %s1248_s19 = smov %s1250_s22  ;;  %16 = sbr.rel (!%p14_p0) target bundleno = 4 (0x4), region = 209 }
  0xfd   :  { %676 = vsyncpa [#allocation5], 1 }
  0xfe   :  { %678 = vsyncpa [#allocation5 + $0x1], 1 }

// kernel: mil_forward.37
= control target key start
LH: loop header
LB: loop body
LE: loop exit
PB: predicated region body
PF: predicated region fallthrough
CT: control target
= control target key end

     0   :  { %8 = vsyncpa [#allocation5], 0  ;;  %s1798_s12 = smov 0   ;;  %s1800_s13 = smov 0   ;;  %s1992_s0 = inlined_call_operand.vmem [shape: bf16[16,3456], index: 0, kind: input, shape index: {}]   ;;  %s1993_s1 = inlined_call_operand.vmem [shape: bf16[3456,128], index: 1, kind: input, shape index: {}]   ;;  %s1994_s2 = inlined_call_operand.hbm [shape: f32[1,128], index: 2, kind: input, shape index: {}]   ;;  %s1995_s3 = inlined_call_operand.vmem [shape: bf16[16,128], index: 3, kind: output, shape index: {}]  }
   0x1   :  { %s1802_s14 = smov 0   ;;  %s1804_s15 = smov 0  }
   0x2   :  { %s1806_s16 = smov 0  }
   0x3 LB: > { %s1220_s17 = sadd.s32 4294967295, %s1775_s16   ;;  %s26_s18 = sadd.s32 1, %s1771_s15  ;;  %s1775_s16 = sphi %s1806_s16, %s14_s16   ;;  %s1771_s15 = sphi %s1804_s15, %s2002_s15   ;;  %s1767_s14 = sphi %s1802_s14, %s2001_s14   ;;  %s1763_s13 = sphi %s1800_s13, %s2000_s13   ;;  %s1759_s12 = sphi %s1798_s12, %s1999_s12  }
   0x4   : > { %p27_p0 = scmp.ge.s32.totalorder %s26_s18, 3  ;;  %s42_s19 = sadd.s32 1, %s1763_s13 }
   0x5   : > { %p49_p1 = scmp.ne.s32.totalorder %s1763_s13, %s1759_s12  ;;  %p50_p2 = scmp.eq.s32.totalorder %s1775_s16, 0 }
   0x6   : > { %s2004_s18 = smov (%p27_p0, %s26_s18), 0  ;;  %p1221_p4 = scmp.ge.s32.totalorder %s1775_s16, 1 }
   0x7   : > { %p1831_p3 = por %p50_p2, %p49_p1  ;;  %s38_s21 = ssub.s32 %s1771_s15, %s2004_s18 }
   0x8   : > { %p148_p5 = scmp.lt.s32.totalorder %s1775_s16, 4  ;;  %p40_p6 = scmp.eq.s32.totalorder %s38_s21, 0 }
   0x9   : > { %p1843_p8 = scmp.eq.s32.totalorder %s1220_s17, 0  ;;  %s161_s27 = sshll.u32 %s1994_s2, 4  ;;  %s162_s27 = int_to_ptr.hbm [resolvable:$true] %s161_s27 }
   0xa   : > { %p1839_p7 = pnand %p1221_p4, %p148_p5  ;;  %s1777_s28 = smov [#allocation4]  }
   0xb   : > { %s1848_s24 = scalar_select %p40_p6, %s1763_s13, %s42_s19  }
   0xc   : > { %p1655_p9 = pneg %p1839_p7  ;;  %s163_s29 = sshll.u32 %s1777_s28, 4  ;;  %s164_s29 = int_to_ptr.vmem [resolvable:$true] %s163_s29 }
   0xd   : > { %p1223_p11 = scmp.ge.s32.totalorder %s1775_s16, 3 }
   0xe   : > { %p1656_p10 = pnand %p1843_p8, %p1655_p9 }
   0xf   : > { %170 = sbr.rel (%p1223_p11) target bundleno = 35 (0x23), region = 20 }
  0x10   : > { %1658 = dma.hbm_to_vmem [thread:$0]  (!%p1656_p10), %s162_s27, 16, %s164_s29, [#allocation5]  }
  0x14   : > { %173 = sbr.rel (!%p1831_p3) target bundleno = 35 (0x23), region = 24  ;;  %s175_s30 = sand.u32 (%p1831_p3), 1, %s1763_s13  }
  0x15   : > { %s1562_s4 = smul.u32 (%p1831_p3), 36, %s1771_s15 }
  0x16   : > { %s1649_s5 = smul.u32 (%p1831_p3), 72, %s175_s30 }
  0x17   : > { %s183_s8 = scalar_lea.vmem (%p1831_p3), %s1992_s0, %s1562_s4 }
  0x18   : > { %v198_v0 = vld [vmem:[%s183_s8] sm:$0xff] (%p1831_p3)  ;;  %v200_v1 = vld [vmem:[%s183_s8 + $0x8] sm:$0xff] (%p1831_p3)  ;;  %v202_v2 = vld [vmem:[%s183_s8 + $0x10] sm:$0xff] (%p1831_p3)  ;;  %s177_s9 = scalar_lea.vmem (%p1831_p3), [#allocation3], %s1649_s5 }
  0x19   : > { %199 = vst [vmem:[%s177_s9] sm:$0xff] %v198_v0  ;;  %v204_v3 = vld [vmem:[%s183_s8 + $0x18] sm:$0xff]  ;;  %v206_v4 = vld [vmem:[%s183_s8 + $0x6c] sm:$0xff]  ;;  %v212_v7 = vld [vmem:[%s183_s8 + $0x84] sm:$0xff] }
  0x1a   : > { %201 = vst [vmem:[%s177_s9 + $0x8] sm:$0xff] %v200_v1  ;;  %v208_v5 = vld [vmem:[%s183_s8 + $0x74] sm:$0xff]  ;;  %v210_v6 = vld [vmem:[%s183_s8 + $0x7c] sm:$0xff]  ;;  %v1227_v9 = vld [vmem:[%s183_s8 + $0x8c] sm:$0xf] }
  0x1b   : > { %203 = vst [vmem:[%s177_s9 + $0x10] sm:$0xff] %v202_v2  ;;  %v1225_v8 = vld [vmem:[%s183_s8 + $0x20] sm:$0xf] }
  0x1c   : > { %205 = vst [vmem:[%s177_s9 + $0x18] sm:$0xff] %v204_v3 }
  0x1d   : > { %207 = vst [vmem:[%s177_s9 + $0x24] sm:$0xff] %v206_v4 }
  0x1e   : > { %209 = vst [vmem:[%s177_s9 + $0x2c] sm:$0xff] %v208_v5 }
  0x1f   : > { %211 = vst [vmem:[%s177_s9 + $0x34] sm:$0xff] %v210_v6 }
  0x20   : > { %213 = vst [vmem:[%s177_s9 + $0x3c] sm:$0xff] %v212_v7 }
  0x21   : > { %1226 = vst [vmem:[%s177_s9 + $0x20] sm:$0xf] %v1225_v8 }
  0x22   : > { %1228 = vst [vmem:[%s177_s9 + $0x44] sm:$0xf] %v1227_v9 }
  0x23 PF: > { %246 = sbr.rel (%p1839_p7) target bundleno = 312 (0x138), region = 54  ;;  %s249_s10 = sand.u32 (!%p1839_p7), 1, %s1759_s12  }
  0x24   : > { %s1650_s11 = smul.u32 (!%p1839_p7), 72, %s249_s10 }
  0x26   : > { %s1868_s17 = scalar_lea.vmem (!%p1839_p7), [#allocation3], %s1650_s11 }
  0x28   : > { %1754 = dma.done.wait (%p1843_p8), [#allocation5], 16  }
  0x29   : > { %1756 = vsyncadd (%p1843_p8), [#allocation5], 4294967280  ;;  %s290_s19 = smul.u32 144, %s1767_s14  ;;  %v1234_v44 = vld [vmem:[%s1868_s17] sm:$0xf]  ;;  %p1556_p13 = scmp.ne.s32.totalorder %s1767_s14, 0 }
  0x2a   : > { %v1567_v45 = vld [vmem:[%s1868_s17 + $0x20] sm:$0xf0]  ;;  %v1242_v46 = vld [vmem:[%s1868_s17 + $0x8] sm:$0xf]  ;;  %v1568_v47 = vld [vmem:[%s1868_s17 + $0x28] sm:$0xf0] }
  0x2b   : > { %p291_p12 = scmp.lt.s32.totalorder %s290_s19, 431  ;;  %v1563_v50 = vld [vmem:[%s1868_s17 + $0x4] sm:$0xf]  ;;  %v1236_v51 = vld [vmem:[%s1868_s17 + $0x24] sm:$0xf0]  ;;  %v1235_v54 = vor.u32 %v1567_v45, %v1234_v44  ;;  %v1243_v55 = vor.u32 %v1568_v47, %v1242_v46 }
  0x2c   : > { %v1564_v52 = vld [vmem:[%s1868_s17 + $0xc] sm:$0xf]  ;;  %v1244_v53 = vld [vmem:[%s1868_s17 + $0x2c] sm:$0xf0]  ;;  %v1239_v58 = vor.u32 %v1563_v50, %v1236_v51 }
  0x2d   : > { %s2006_s19 = smov (!%p291_p12, %s290_s19), 431  ;;  %v1247_v59 = vor.u32 %v1564_v52, %v1244_v53 }
  0x2e   : > { %s1231_s20 = sshll.u32 %s2006_s19, 2 }
  0x2f   : > { %s1878_s22 = scalar_lea.vmem %s1993_s1, %s1231_s20 }
  0x30   : > { %v1579_v10 = vld [vmem:[%s1878_s22 + $0x38] sm:$0xff]  ;;  %v1578_v14 = vld [vmem:[%s1878_s22 + $0x30] sm:$0xff]  ;;  %v1577_v18 = vld [vmem:[%s1878_s22 + $0x28] sm:$0xff] }
  0x31   : > { %v1595_v11 = vld [vmem:[%s1878_s22 + $0xb8] sm:$0xff]  ;;  %940 = vmatpush.bf16.msra.mxu0 %v1579_v10  ;;  %v1594_v15 = vld [vmem:[%s1878_s22 + $0xb0] sm:$0xff]  ;;  %v1593_v19 = vld [vmem:[%s1878_s22 + $0xa8] sm:$0xff] }
  0x32   : > { %v1587_v12 = vld [vmem:[%s1878_s22 + $0x78] sm:$0xff]  ;;  %968 = vmatpush.bf16.msra.mxu2 %v1595_v11  ;;  %v1586_v16 = vld [vmem:[%s1878_s22 + $0x70] sm:$0xff]  ;;  %v1585_v20 = vld [vmem:[%s1878_s22 + $0x68] sm:$0xff] }
  0x33   : > { %v1603_v13 = vld [vmem:[%s1878_s22 + $0xf8] sm:$0xff]  ;;  %954 = vmatpush.bf16.msra.mxu1 %v1587_v12  ;;  %v1602_v17 = vld [vmem:[%s1878_s22 + $0xf0] sm:$0xff]  ;;  %v1601_v21 = vld [vmem:[%s1878_s22 + $0xe8] sm:$0xff] }
  0x34   : > { %982 = vmatpush.bf16.msra.mxu3 %v1603_v13  ;;  %v1576_v22 = vld [vmem:[%s1878_s22 + $0x20] sm:$0xff]  ;;  %v1575_v26 = vld [vmem:[%s1878_s22 + $0x18] sm:$0xff]  ;;  %v1574_v30 = vld [vmem:[%s1878_s22 + $0x10] sm:$0xff] }
  0x35   : > { %941 = vmatpush.bf16.msra.mxu0 %v1578_v14  ;;  %v1592_v23 = vld [vmem:[%s1878_s22 + $0xa0] sm:$0xff]  ;;  %v1591_v27 = vld [vmem:[%s1878_s22 + $0x98] sm:$0xff]  ;;  %v1590_v31 = vld [vmem:[%s1878_s22 + $0x90] sm:$0xff] }
  0x36   : > { %969 = vmatpush.bf16.msra.mxu2 %v1594_v15  ;;  %v1584_v24 = vld [vmem:[%s1878_s22 + $0x60] sm:$0xff]  ;;  %v1583_v28 = vld [vmem:[%s1878_s22 + $0x58] sm:$0xff]  ;;  %v1582_v32 = vld [vmem:[%s1878_s22 + $0x50] sm:$0xff] }
  0x37   : > { %955 = vmatpush.bf16.msra.mxu1 %v1586_v16  ;;  %v1600_v25 = vld [vmem:[%s1878_s22 + $0xe0] sm:$0xff]  ;;  %v1599_v29 = vld [vmem:[%s1878_s22 + $0xd8] sm:$0xff]  ;;  %v1598_v33 = vld [vmem:[%s1878_s22 + $0xd0] sm:$0xff] }
  0x38   : > { %983 = vmatpush.bf16.msra.mxu3 %v1602_v17  ;;  %v1573_v34 = vld [vmem:[%s1878_s22 + $0x8] sm:$0xff]  ;;  %v1572_v38 = vld [vmem:[%s1878_s22] sm:$0xff]  ;;  %v1611_v40 = vld [vmem:[%s1878_s22 + $0x138] sm:$0xff] }
  0x39   : > { %942 = vmatpush.bf16.msra.mxu0 %v1577_v18  ;;  %v1589_v35 = vld [vmem:[%s1878_s22 + $0x88] sm:$0xff]  ;;  %v1588_v39 = vld [vmem:[%s1878_s22 + $0x80] sm:$0xff]  ;;  %v1627_v41 = vld [vmem:[%s1878_s22 + $0x1b8] sm:$0xff] }
  0x3a   : > { %970 = vmatpush.bf16.msra.mxu2 %v1593_v19  ;;  %v1581_v36 = vld [vmem:[%s1878_s22 + $0x48] sm:$0xff]  ;;  %v1580_v42 = vld [vmem:[%s1878_s22 + $0x40] sm:$0xff]  ;;  %v1619_v48 = vld [vmem:[%s1878_s22 + $0x178] sm:$0xff] }
  0x3b   : > { %956 = vmatpush.bf16.msra.mxu1 %v1585_v20  ;;  %v1597_v37 = vld [vmem:[%s1878_s22 + $0xc8] sm:$0xff]  ;;  %v1596_v43 = vld [vmem:[%s1878_s22 + $0xc0] sm:$0xff]  ;;  %v1635_v49 = vld [vmem:[%s1878_s22 + $0x1f8] sm:$0xff] }
  0x3c   : > { %984 = vmatpush.bf16.msra.mxu3 %v1601_v21  ;;  %v1610_v56 = vld [vmem:[%s1878_s22 + $0x130] sm:$0xff]  ;;  %v1609_v62 = vld [vmem:[%s1878_s22 + $0x128] sm:$0xff]  ;;  %v1608_v2 = vld [vmem:[%s1878_s22 + $0x120] sm:$0xff] }
  0x3d   : > { %943 = vmatpush.bf16.msra.mxu0 %v1576_v22  ;;  %v1626_v57 = vld [vmem:[%s1878_s22 + $0x1b0] sm:$0xff]  ;;  %v1625_v63 = vld [vmem:[%s1878_s22 + $0x1a8] sm:$0xff]  ;;  %v1624_v3 = vld [vmem:[%s1878_s22 + $0x1a0] sm:$0xff] }
  0x3e   : > { %971 = vmatpush.bf16.msra.mxu2 %v1592_v23  ;;  %v1618_v60 = vld [vmem:[%s1878_s22 + $0x170] sm:$0xff]  ;;  %v1617_v0 = vld [vmem:[%s1878_s22 + $0x168] sm:$0xff]  ;;  %v1616_v4 = vld [vmem:[%s1878_s22 + $0x160] sm:$0xff] }
  0x3f   : > { %957 = vmatpush.bf16.msra.mxu1 %v1584_v24  ;;  %v1634_v61 = vld [vmem:[%s1878_s22 + $0x1f0] sm:$0xff]  ;;  %v1633_v1 = vld [vmem:[%s1878_s22 + $0x1e8] sm:$0xff]  ;;  %v1632_v5 = vld [vmem:[%s1878_s22 + $0x1e0] sm:$0xff] }
  0x40   : > { %985 = vmatpush.bf16.msra.mxu3 %v1600_v25  ;;  %v1607_v6 = vld [vmem:[%s1878_s22 + $0x118] sm:$0xff]  ;;  %v1606_v10 = vld [vmem:[%s1878_s22 + $0x110] sm:$0xff]  ;;  %v1605_v14 = vld [vmem:[%s1878_s22 + $0x108] sm:$0xff] }
  0x41   : > { %944 = vmatpush.bf16.msra.mxu0 %v1575_v26  ;;  %v1623_v7 = vld [vmem:[%s1878_s22 + $0x198] sm:$0xff]  ;;  %v1622_v11 = vld [vmem:[%s1878_s22 + $0x190] sm:$0xff]  ;;  %v1621_v15 = vld [vmem:[%s1878_s22 + $0x188] sm:$0xff] }
  0x42   : > { %972 = vmatpush.bf16.msra.mxu2 %v1591_v27  ;;  %v1615_v8 = vld [vmem:[%s1878_s22 + $0x158] sm:$0xff]  ;;  %v1614_v12 = vld [vmem:[%s1878_s22 + $0x150] sm:$0xff]  ;;  %v1613_v16 = vld [vmem:[%s1878_s22 + $0x148] sm:$0xff] }
  0x43   : > { %958 = vmatpush.bf16.msra.mxu1 %v1583_v28  ;;  %v1631_v9 = vld [vmem:[%s1878_s22 + $0x1d8] sm:$0xff]  ;;  %v1630_v13 = vld [vmem:[%s1878_s22 + $0x1d0] sm:$0xff]  ;;  %v1629_v17 = vld [vmem:[%s1878_s22 + $0x1c8] sm:$0xff] }
  0x44   : > { %986 = vmatpush.bf16.msra.mxu3 %v1599_v29  ;;  %v1604_v18 = vld [vmem:[%s1878_s22 + $0x100] sm:$0xff]  ;;  %v1643_v20 = vld [vmem:[%s1878_s22 + $0x238] sm:$0xff]  ;;  %v1258_v23 = vld [vmem:[%s1868_s17 + $0x18] sm:$0xf] }
  0x45   : > { %945 = vmatpush.bf16.msra.mxu0 %v1574_v30  ;;  %v1620_v19 = vld [vmem:[%s1878_s22 + $0x180] sm:$0xff]  ;;  %v1570_v24 = vld [vmem:[%s1868_s17 + $0x38] sm:$0xf0]  ;;  %v1252_v28 = vld [vmem:[%s1868_s17 + $0x34] sm:$0xf0] }
  0x46   : > { %973 = vmatpush.bf16.msra.mxu2 %v1590_v31  ;;  %v1250_v21 = vld [vmem:[%s1868_s17 + $0x10] sm:$0xf]  ;;  %v1569_v22 = vld [vmem:[%s1868_s17 + $0x30] sm:$0xf0]  ;;  %v1566_v29 = vld [vmem:[%s1868_s17 + $0x1c] sm:$0xf] }
  0x47   : > { %959 = vmatpush.bf16.msra.mxu1 %v1582_v32  ;;  %v1612_v25 = vld [vmem:[%s1878_s22 + $0x140] sm:$0xff]  ;;  %v1260_v30 = vld [vmem:[%s1868_s17 + $0x3c] sm:$0xf0]  ;;  %v1251_v31 = vor.u32 %v1569_v22, %v1250_v21  ;;  %v1259_v32 = vor.u32 %v1570_v24, %v1258_v23 }
  0x48   : > { %987 = vmatpush.bf16.msra.mxu3 %v1598_v33  ;;  %v1628_v26 = vld [vmem:[%s1878_s22 + $0x1c0] sm:$0xff] }
  0x49   : > { %946 = vmatpush.bf16.msra.mxu0 %v1573_v34  ;;  %v1565_v27 = vld [vmem:[%s1868_s17 + $0x14] sm:$0xf]  ;;  %v1263_v34 = vor.u32 %v1566_v29, %v1260_v30 }
  0x4a   : > { %974 = vmatpush.bf16.msra.mxu2 %v1589_v35  ;;  %v1255_v33 = vor.u32 %v1565_v27, %v1252_v28  ;;  %v1642_v35 = vld [vmem:[%s1878_s22 + $0x230] sm:$0xff] }
  0x4b   : > { %960 = vmatpush.bf16.msra.mxu1 %v1581_v36  ;;  %v1641_v36 = vld [vmem:[%s1878_s22 + $0x228] sm:$0xff] }
  0x4c   : > { %988 = vmatpush.bf16.msra.mxu3 %v1597_v37  ;;  %v1640_v37 = vld [vmem:[%s1878_s22 + $0x220] sm:$0xff] }
  0x4d   : > { %947 = vmatpush.bf16.msra.mxu0 %v1572_v38  ;;  %v1639_v38 = vld [vmem:[%s1878_s22 + $0x218] sm:$0xff] }
  0x4e   : > { %975 = vmatpush.bf16.msra.mxu2 %v1588_v39  ;;  %v1638_v39 = vld [vmem:[%s1878_s22 + $0x210] sm:$0xff] }
  0x4f   : > { %961 = vmatpush.bf16.msra.mxu1 %v1580_v42  ;;  %v1266_v42 = vld [vmem:[%s1868_s17 + $0x20] sm:$0xf] }
  0x50   : > { %989 = vmatpush.bf16.msra.mxu3 %v1596_v43  ;;  %948 = vmatmul.bf16.vlgmr.msra.gmra.mxu0 %v1235_v54  ;;  %v1571_v43 = vld [vmem:[%s1868_s17 + $0x40] sm:$0xf0] }
  0x51   : > { %996 = vmatpush.bf16.msrb.mxu0 %v1611_v40  ;;  %976 = vmatmul.bf16.vlgmr.msra.gmra.mxu2 %v1243_v55  ;;  %v1637_v40 = vld [vmem:[%s1878_s22 + $0x208] sm:$0xff]  ;;  %v1267_v44 = vor.u32 %v1571_v43, %v1266_v42 }
  0x52   : > { %1024 = vmatpush.bf16.msrb.mxu2 %v1627_v41  ;;  %962 = vmatmul.bf16.vlgmr.msra.gmra.mxu1 %v1239_v58  ;;  %v1636_v41 = vld [vmem:[%s1878_s22 + $0x200] sm:$0xff] }
  0x53   : > { %1010 = vmatpush.bf16.msrb.mxu1 %v1619_v48  ;;  %990 = vmatmul.bf16.vlgmr.msra.gmra.mxu3 %v1247_v59 }
  0x54   : > { %1038 = vmatpush.bf16.msrb.mxu3 %v1635_v49 }
  0x55   : > { %997 = vmatpush.bf16.msrb.mxu0 %v1610_v56 }
  0x56   : > { %1025 = vmatpush.bf16.msrb.mxu2 %v1626_v57 }
  0x57   : > { %1011 = vmatpush.bf16.msrb.mxu1 %v1618_v60 }
  0x58   : > { %1039 = vmatpush.bf16.msrb.mxu3 %v1634_v61 }
  0x59   : > { %998 = vmatpush.bf16.msrb.mxu0 %v1609_v62 }
  0x5a   : > { %1026 = vmatpush.bf16.msrb.mxu2 %v1625_v63 }
  0x5b   : > { %1012 = vmatpush.bf16.msrb.mxu1 %v1617_v0 }
  0x5c   : > { %1040 = vmatpush.bf16.msrb.mxu3 %v1633_v1 }
  0x5d   : > { %999 = vmatpush.bf16.msrb.mxu0 %v1608_v2 }
  0x5e   : > { %1027 = vmatpush.bf16.msrb.mxu2 %v1624_v3 }
  0x5f   : > { %1013 = vmatpush.bf16.msrb.mxu1 %v1616_v4 }
  0x60   : > { %1041 = vmatpush.bf16.msrb.mxu3 %v1632_v5 }
  0x61   : > { %1000 = vmatpush.bf16.msrb.mxu0 %v1607_v6 }
  0x62   : > { %1028 = vmatpush.bf16.msrb.mxu2 %v1623_v7 }
  0x63   : > { %1014 = vmatpush.bf16.msrb.mxu1 %v1615_v8 }
  0x64   : > { %1042 = vmatpush.bf16.msrb.mxu3 %v1631_v9 }
  0x65   : > { %1001 = vmatpush.bf16.msrb.mxu0 %v1606_v10 }
  0x66   : > { %1029 = vmatpush.bf16.msrb.mxu2 %v1622_v11 }
  0x67   : > { %1015 = vmatpush.bf16.msrb.mxu1 %v1614_v12 }
  0x68   : > { %1043 = vmatpush.bf16.msrb.mxu3 %v1630_v13 }
  0x69   : > { %1002 = vmatpush.bf16.msrb.mxu0 %v1605_v14 }
  0x6a   : > { %1030 = vmatpush.bf16.msrb.mxu2 %v1621_v15 }
  0x6b   : > { %1016 = vmatpush.bf16.msrb.mxu1 %v1613_v16 }
  0x6c   : > { %1044 = vmatpush.bf16.msrb.mxu3 %v1629_v17 }
  0x6d   : > { %1003 = vmatpush.bf16.msrb.mxu0 %v1604_v18 }
  0x6e   : > { %1031 = vmatpush.bf16.msrb.mxu2 %v1620_v19 }
  0x6f   : > { %1017 = vmatpush.bf16.msrb.mxu1 %v1612_v25 }
  0x70   : > { %1045 = vmatpush.bf16.msrb.mxu3 %v1628_v26  ;;  %1004 = vmatmul.bf16.vlgmr.msrb.gmra.mxu0 %v1251_v31 }
  0x71   : > { %1052 = vmatpush.bf16.msra.mxu0 %v1643_v20  ;;  %1032 = vmatmul.bf16.vlgmr.msrb.gmra.mxu2 %v1259_v32 }
  0x72   : > { %1018 = vmatmul.bf16.vlgmr.msrb.gmra.mxu1 %v1255_v33 }
  0x73   : > { %1046 = vmatmul.bf16.vlgmr.msrb.gmra.mxu3 %v1263_v34 }
  0x75   : > { %1053 = vmatpush.bf16.msra.mxu0 %v1642_v35 }
  0x79   : > { %1054 = vmatpush.bf16.msra.mxu0 %v1641_v36 }
  0x7d   : > { %1055 = vmatpush.bf16.msra.mxu0 %v1640_v37 }
  0x81   : > { %1056 = vmatpush.bf16.msra.mxu0 %v1639_v38 }
  0x85   : > { %1057 = vmatpush.bf16.msra.mxu0 %v1638_v39 }
  0x89   : > { %1058 = vmatpush.bf16.msra.mxu0 %v1637_v40 }
  0x8d   : > { %1059 = vmatpush.bf16.msra.mxu0 %v1636_v41 }
  0x90   : > { %1060 = vmatmul.bf16.vlgmr.msra.gmra.mxu0 %v1267_v44 }
  0xcd   : > { %v949_v45 = vpop.f32.mrf.mxu0 }
  0xcf   : > { %v963_v46 = vpop.f32.mrf.mxu1 }
  0xd0   : > { %v964_v50 = vadd.f32 %v963_v46, %v949_v45 }
  0xd4   : > { %v977_v47 = vpop.f32.mrf.mxu2 }
  0xd5   : > { %v951_v48 = vpop.f32.mrf.mxu0  ;;  %v978_v52 = vadd.f32 %v977_v47, %v964_v50 }
  0xd6   : > { %v991_v49 = vpop.f32.mrf.mxu3 }
  0xd7   : > { %v965_v51 = vpop.f32.mrf.mxu1  ;;  %v992_v55 = vadd.f32 %v991_v49, %v978_v52 }
  0xd8   : > { %v966_v57 = vadd.f32 %v965_v51, %v951_v48 }
  0xdc   : > { %v979_v53 = vpop.f32.mrf.mxu2 }
  0xdd   : > { %v980_v61 = vadd.f32 %v979_v53, %v966_v57 }
  0xde   : > { %v993_v56 = vpop.f32.mrf.mxu3 }
  0xdf   : > { %v994_v1 = vadd.f32 %v993_v56, %v980_v61 }
  0xed   : > { %v1005_v54 = vpop.f32.mrf.mxu0 }
  0xee   : > { %v1006_v58 = vadd.f32 %v1005_v54, %v992_v55 }
  0xef   : > { %v1019_v59 = vpop.f32.mrf.mxu1 }
  0xf0   : > { %v1020_v62 = vadd.f32 %v1019_v59, %v1006_v58 }
  0xf4   : > { %v1033_v60 = vpop.f32.mrf.mxu2 }
  0xf5   : > { %v1007_v63 = vpop.f32.mrf.mxu0  ;;  %v1034_v2 = vadd.f32 %v1033_v60, %v1020_v62 }
  0xf6   : > { %v1047_v0 = vpop.f32.mrf.mxu3  ;;  %v1008_v3 = vadd.f32 %v1007_v63, %v994_v1 }
  0xf7   : > { %v1021_v4 = vpop.f32.mrf.mxu1  ;;  %v1048_v5 = vadd.f32 %v1047_v0, %v1034_v2 }
  0xf8   : > { %v1022_v8 = vadd.f32 %v1021_v4, %v1008_v3 }
  0xfc   : > { %v1035_v6 = vpop.f32.mrf.mxu2 }
  0xfd   : > { %v1036_v10 = vadd.f32 %v1035_v6, %v1022_v8 }
  0xfe   : > { %v1049_v11 = vpop.f32.mrf.mxu3 }
  0xff   : > { %v1050_v12 = vadd.f32 %v1049_v11, %v1036_v10 }
 0x10d   : > { %v1061_v7 = vpop.f32.mrf.mxu0 }
 0x10e   : > { %v1062_v9 = vadd.f32 %v1061_v7, %v1048_v5 }
 0x112   : > { %1069 = sbr.rel (%p1556_p13) target bundleno = 281 (0x119), region = 66 }
 0x115   : > { %v1063_v13 = vpop.f32.mrf.mxu0 }
 0x116   : > { %v1064_v14 = vadd.f32 %v1063_v13, %v1050_v12 }
 0x117   : > { %1070 = vst [vmem:[#allocation2] sm:$0xff] %v1062_v9 }
 0x118   : > { %1071 = vst [vmem:[#allocation2 + $0x8] sm:$0xff] %v1064_v14 }
 0x119 PF: > { %p1072_p0 = scmp.gt.s32.totalorder %s1767_s14, 0  ;;  %p1073_p1 = scmp.lt.s32.totalorder %s1767_s14, 2 }
 0x11b   : > { %p1074_p2 = pnand %p1073_p1, %p1072_p0 }
 0x11d   : > { %1077 = sbr.rel (%p1074_p2) target bundleno = 295 (0x127), region = 70 }
 0x122   : > { %v1078_v15 = vld [vmem:[#allocation2] sm:$0xff]  ;;  %v1079_v16 = vld [vmem:[#allocation2 + $0x8] sm:$0xff] }
 0x123   : > { %v1080_v17 = vadd.f32 %v1078_v15, %v1062_v9  ;;  %v1081_v18 = vadd.f32 %v1079_v16, %v1064_v14 }
 0x125   : > { %1082 = vst [vmem:[#allocation2] sm:$0xff] %v1080_v17 }
 0x126   : > { %1083 = vst [vmem:[#allocation2 + $0x8] sm:$0xff] %v1081_v18 }
 0x127 PF: > { %p1557_p3 = scmp.ne.s32.totalorder %s1767_s14, 2 }
 0x129   : > { %1087 = sbr.rel (%p1557_p3) target bundleno = 312 (0x138), region = 74 }
 0x12e   : > { %v1088_v19 = vld [vmem:[#allocation2] sm:$0xff]  ;;  %v1089_v20 = vld [vmem:[#allocation2 + $0x8] sm:$0xff] }
 0x12f   : > { %v1090_v21 = vadd.f32 %v1088_v19, %v1062_v9  ;;  %v1091_v22 = vadd.f32 %v1089_v20, %v1064_v14  ;;  %v1702_v23 = vld [vmem:[#allocation4] ss:$0 sm:$0xff] }
 0x131   : > { %v1096_v24 = vadd.f32 %v1702_v23, %v1090_v21  ;;  %v1097_v25 = vadd.f32 %v1702_v23, %v1091_v22 }
 0x133   : > { %v1098_v26 = vmax.f32 %v1096_v24, 0.0  ;;  %v1099_v27 = vmax.f32 %v1097_v25, 0.0 }
 0x135   : > { %v1647_v28 = vpack.c.bf16 %v1099_v27, %v1098_v26 }
 0x137   : > { %1648 = vst [vmem:[%s1995_s3] sm:$0xff] %v1647_v28  }
 0x138 PF: > { %s14_s16 = sadd.s32 1, %s1775_s16   ;;  %s1999_s12 = smov %s1763_s13 }
 0x139   : > { %p11_p4 = scmp.ge.s32.totalorder %s14_s16, 5   ;;  %s2000_s13 = smov %s1848_s24 }
 0x13a   : > { %s2001_s14 = smov %s1771_s15  ;;  %s2002_s15 = smov %s2004_s18 }
 0x13b   :  { %13 = sbr.rel (!%p11_p4) target bundleno = 3 (0x3), region = 120 }
 0x140   :  { %1132 = vsyncpa [#allocation5], 1 }
 0x141   :  { %1134 = vsyncpa [#allocation5 + $0x1], 1 }

// kernel: mil_forward.40
= control target key start
LH: loop header
LB: loop body
LE: loop exit
PB: predicated region body
PF: predicated region fallthrough
CT: control target
= control target key end

     0   :  { %8 = vsyncpa [#allocation4], 0  ;;  %s592_s15 = smov [#allocation3]   ;;  %s739_s0 = inlined_call_operand.vmem [shape: bf16[16,512], index: 0, kind: input, shape index: {}]   ;;  %s740_s1 = inlined_call_operand.vmem [shape: bf16[512,128], index: 1, kind: input, shape index: {}]   ;;  %s741_s2 = inlined_call_operand.hbm [shape: f32[1,128], index: 2, kind: input, shape index: {}]   ;;  %s742_s3 = inlined_call_operand.vmem [shape: bf16[16,128], index: 3, kind: output, shape index: {}]  }
   0x1   :  { %s18_s14 = sshll.u32 %s741_s2, 4  ;;  %s20_s16 = sshll.u32 %s592_s15, 4  ;;  %s19_s14 = int_to_ptr.hbm [resolvable:$true] %s18_s14  ;;  %s21_s16 = int_to_ptr.vmem [resolvable:$true] %s20_s16 }
   0x2   :  { %23 = dma.hbm_to_vmem [thread:$0]  %s19_s14, 16, %s21_s16, [#allocation4]  }
   0x3   :  { %590 = dma.done.wait [#allocation4], 16  }
   0x4   :  { %591 = vsyncadd [#allocation4], 4294967280  ;;  %v534_v0 = vld [vmem:[%s740_s1 + $0x38] sm:$0xff]  ;;  %v533_v4 = vld [vmem:[%s740_s1 + $0x30] sm:$0xff] }
   0x5   :  { %v542_v1 = vld [vmem:[%s740_s1 + $0x78] sm:$0xff]  ;;  %312 = vmatpush.bf16.msra.mxu0 %v534_v0  ;;  %v541_v5 = vld [vmem:[%s740_s1 + $0x70] sm:$0xff]  ;;  %v532_v8 = vld [vmem:[%s740_s1 + $0x28] sm:$0xff] }
   0x6   :  { %v550_v2 = vld [vmem:[%s740_s1 + $0xb8] sm:$0xff]  ;;  %326 = vmatpush.bf16.msra.mxu1 %v542_v1  ;;  %v549_v6 = vld [vmem:[%s740_s1 + $0xb0] sm:$0xff]  ;;  %v540_v9 = vld [vmem:[%s740_s1 + $0x68] sm:$0xff] }
   0x7   :  { %v558_v3 = vld [vmem:[%s740_s1 + $0xf8] sm:$0xff]  ;;  %340 = vmatpush.bf16.msra.mxu2 %v550_v2  ;;  %v557_v7 = vld [vmem:[%s740_s1 + $0xf0] sm:$0xff]  ;;  %v548_v10 = vld [vmem:[%s740_s1 + $0xa8] sm:$0xff] }
   0x8   :  { %354 = vmatpush.bf16.msra.mxu3 %v558_v3  ;;  %v556_v11 = vld [vmem:[%s740_s1 + $0xe8] sm:$0xff]  ;;  %v531_v12 = vld [vmem:[%s740_s1 + $0x20] sm:$0xff]  ;;  %v530_v16 = vld [vmem:[%s740_s1 + $0x18] sm:$0xff] }
   0x9   :  { %313 = vmatpush.bf16.msra.mxu0 %v533_v4  ;;  %v539_v13 = vld [vmem:[%s740_s1 + $0x60] sm:$0xff]  ;;  %v538_v17 = vld [vmem:[%s740_s1 + $0x58] sm:$0xff]  ;;  %v529_v20 = vld [vmem:[%s740_s1 + $0x10] sm:$0xff] }
   0xa   :  { %327 = vmatpush.bf16.msra.mxu1 %v541_v5  ;;  %v547_v14 = vld [vmem:[%s740_s1 + $0xa0] sm:$0xff]  ;;  %v546_v18 = vld [vmem:[%s740_s1 + $0x98] sm:$0xff]  ;;  %v537_v21 = vld [vmem:[%s740_s1 + $0x50] sm:$0xff] }
   0xb   :  { %341 = vmatpush.bf16.msra.mxu2 %v549_v6  ;;  %v555_v15 = vld [vmem:[%s740_s1 + $0xe0] sm:$0xff]  ;;  %v554_v19 = vld [vmem:[%s740_s1 + $0xd8] sm:$0xff]  ;;  %v545_v22 = vld [vmem:[%s740_s1 + $0x90] sm:$0xff] }
   0xc   :  { %355 = vmatpush.bf16.msra.mxu3 %v557_v7  ;;  %v553_v23 = vld [vmem:[%s740_s1 + $0xd0] sm:$0xff]  ;;  %v528_v24 = vld [vmem:[%s740_s1 + $0x8] sm:$0xff]  ;;  %v527_v28 = vld [vmem:[%s740_s1] sm:$0xff] }
   0xd   :  { %314 = vmatpush.bf16.msra.mxu0 %v532_v8  ;;  %v536_v25 = vld [vmem:[%s740_s1 + $0x48] sm:$0xff]  ;;  %v535_v29 = vld [vmem:[%s740_s1 + $0x40] sm:$0xff]  ;;  %v525_v33 = vld [vmem:[%s739_s0 + $0xc] sm:$0xf0] }
   0xe   :  { %328 = vmatpush.bf16.msra.mxu1 %v540_v9  ;;  %v544_v26 = vld [vmem:[%s740_s1 + $0x88] sm:$0xff]  ;;  %v543_v30 = vld [vmem:[%s740_s1 + $0x80] sm:$0xff]  ;;  %v383_v35 = vld [vmem:[%s739_s0 + $0x10] sm:$0xf0] }
   0xf   :  { %342 = vmatpush.bf16.msra.mxu2 %v548_v10  ;;  %v552_v27 = vld [vmem:[%s740_s1 + $0xc8] sm:$0xff]  ;;  %v551_v31 = vld [vmem:[%s740_s1 + $0xc0] sm:$0xff]  ;;  %v526_v37 = vld [vmem:[%s739_s0 + $0x14] sm:$0xf0] }
  0x10   :  { %356 = vmatpush.bf16.msra.mxu3 %v556_v11  ;;  %v381_v32 = vld [vmem:[%s739_s0] sm:$0xf]  ;;  %v523_v34 = vld [vmem:[%s739_s0 + $0x4] sm:$0xf]  ;;  %v389_v36 = vld [vmem:[%s739_s0 + $0x8] sm:$0xf] }
  0x11   :  { %315 = vmatpush.bf16.msra.mxu0 %v531_v12  ;;  %v524_v38 = vld [vmem:[%s739_s0 + $0xc] sm:$0xf]  ;;  %v391_v39 = vld [vmem:[%s739_s0 + $0x18] sm:$0xf0]  ;;  %v382_v40 = vor.u32 %v525_v33, %v381_v32  ;;  %v386_v41 = vor.u32 %v523_v34, %v383_v35  ;;  %v390_v42 = vor.u32 %v526_v37, %v389_v36  ;;  %v565_v44 = vld [vmem:[#allocation3] ss:$0 sm:$0xff] }
  0x12   :  { %329 = vmatpush.bf16.msra.mxu1 %v539_v13  ;;  %v394_v43 = vor.u32 %v524_v38, %v391_v39 }
  0x13   :  { %343 = vmatpush.bf16.msra.mxu2 %v547_v14 }
  0x14   :  { %357 = vmatpush.bf16.msra.mxu3 %v555_v15 }
  0x15   :  { %316 = vmatpush.bf16.msra.mxu0 %v530_v16 }
  0x16   :  { %330 = vmatpush.bf16.msra.mxu1 %v538_v17 }
  0x17   :  { %344 = vmatpush.bf16.msra.mxu2 %v546_v18 }
  0x18   :  { %358 = vmatpush.bf16.msra.mxu3 %v554_v19 }
  0x19   :  { %317 = vmatpush.bf16.msra.mxu0 %v529_v20 }
  0x1a   :  { %331 = vmatpush.bf16.msra.mxu1 %v537_v21 }
  0x1b   :  { %345 = vmatpush.bf16.msra.mxu2 %v545_v22 }
  0x1c   :  { %359 = vmatpush.bf16.msra.mxu3 %v553_v23 }
  0x1d   :  { %318 = vmatpush.bf16.msra.mxu0 %v528_v24 }
  0x1e   :  { %332 = vmatpush.bf16.msra.mxu1 %v536_v25 }
  0x1f   :  { %346 = vmatpush.bf16.msra.mxu2 %v544_v26 }
  0x20   :  { %360 = vmatpush.bf16.msra.mxu3 %v552_v27 }
  0x21   :  { %319 = vmatpush.bf16.msra.mxu0 %v527_v28 }
  0x22   :  { %333 = vmatpush.bf16.msra.mxu1 %v535_v29 }
  0x23   :  { %347 = vmatpush.bf16.msra.mxu2 %v543_v30 }
  0x24   :  { %361 = vmatpush.bf16.msra.mxu3 %v551_v31  ;;  %320 = vmatmul.bf16.vlgmr.msra.gmra.mxu0 %v382_v40 }
  0x25   :  { %334 = vmatmul.bf16.vlgmr.msra.gmra.mxu1 %v386_v41 }
  0x26   :  { %348 = vmatmul.bf16.vlgmr.msra.gmra.mxu2 %v390_v42 }
  0x27   :  { %362 = vmatmul.bf16.vlgmr.msra.gmra.mxu3 %v394_v43 }
  0xa1   :  { %v321_v45 = vpop.f32.mrf.mxu0 }
  0xa2   :  { %v335_v46 = vpop.f32.mrf.mxu1  ;;  %v322_v47 = vadd.f32 %v565_v44, %v321_v45 }
  0xa4   :  { %v336_v50 = vadd.f32 %v335_v46, %v322_v47 }
  0xa9   :  { %v349_v48 = vpop.f32.mrf.mxu2  ;;  %v323_v51 = vpop.f32.mrf.mxu0 }
  0xaa   :  { %v363_v49 = vpop.f32.mrf.mxu3  ;;  %v324_v52 = vadd.f32 %v565_v44, %v323_v51  ;;  %v350_v53 = vadd.f32 %v349_v48, %v336_v50  ;;  %v337_v54 = vpop.f32.mrf.mxu1 }
  0xac   :  { %v338_v55 = vadd.f32 %v337_v54, %v324_v52  ;;  %v364_v57 = vadd.f32 %v363_v49, %v350_v53 }
  0xae   :  { %v368_v61 = vmax.f32 %v364_v57, 0.0 }
  0xb1   :  { %v351_v56 = vpop.f32.mrf.mxu2 }
  0xb2   :  { %v352_v58 = vadd.f32 %v351_v56, %v338_v55  ;;  %v365_v59 = vpop.f32.mrf.mxu3 }
  0xb4   :  { %v366_v60 = vadd.f32 %v365_v59, %v352_v58 }
  0xb6   :  { %v369_v62 = vmax.f32 %v366_v60, 0.0 }
  0xb8   :  { %v562_v63 = vpack.c.bf16 %v369_v62, %v368_v61 }
  0xba   :  { %563 = vst [vmem:[%s742_s3] sm:$0xff] %v562_v63  }
  0xbb   :  { %378 = vsyncpa [#allocation4], 1 }

// kernel: mil_forward.49
= control target key start
LH: loop header
LB: loop body
LE: loop exit
PB: predicated region body
PF: predicated region fallthrough
CT: control target
= control target key end

     0   :  { %8 = vsyncpa [#allocation5], 0  ;;  %s1727_s0 = inlined_call_operand.vmem [shape: bf16[16,512], index: 0, kind: input, shape index: {}]   ;;  %s1728_s1 = inlined_call_operand.vmem [shape: bf16[512,256], index: 1, kind: input, shape index: {}]   ;;  %s1729_s2 = inlined_call_operand.hbm [shape: f32[1,256], index: 2, kind: input, shape index: {}]   ;;  %s1730_s3 = inlined_call_operand.vmem [shape: bf16[16,256], index: 3, kind: output, shape index: {}]  }
   0x1   :  { %10 = vsyncpa [#allocation5 + $0x1], 0  ;;  %s1429_s12 = smov 0   ;;  %s1431_s13 = smov 0  }
   0x2   :  { %s1433_s14 = smov 0   ;;  %s1435_s15 = smov 0  }
   0x3   :  { %s1437_s16 = smov 0   ;;  %s1439_s17 = smov 0  }
   0x4 LB: > { %s1079_s18 = sadd.s32 4294967295, %s1407_s17   ;;  %s31_s19 = sadd.s32 1, %s1403_s16  ;;  %s1407_s17 = sphi %s1439_s17, %s16_s17   ;;  %s1403_s16 = sphi %s1437_s16, %s1738_s16   ;;  %s1399_s15 = sphi %s1435_s15, %s1737_s15   ;;  %s1395_s14 = sphi %s1433_s14, %s1736_s14   ;;  %s1391_s13 = sphi %s1431_s13, %s1735_s13   ;;  %s1387_s12 = sphi %s1429_s12, %s1734_s12  }
   0x5   : > { %p33_p0 = scmp.ge.s32.totalorder %s31_s19, 2  ;;  %s72_s20 = sadd.s32 1, %s1395_s14 }
   0x6   : > { %p79_p1 = scmp.ne.s32.totalorder %s1395_s14, %s1391_s13  ;;  %p80_p2 = scmp.eq.s32.totalorder %s1407_s17, 0 }
   0x7   : > { %s1740_s19 = smov (%p33_p0, %s31_s19), 0  ;;  %p111_p4 = scmp.ne.s32.totalorder %s1391_s13, %s1387_s12 }
   0x8   : > { %p1465_p3 = por %p80_p2, %p79_p1  ;;  %s68_s22 = ssub.s32 %s1403_s16, %s1740_s19 }
   0x9   : > { %p112_p5 = scmp.eq.s32.totalorder %s1079_s18, 0  ;;  %p70_p6 = scmp.eq.s32.totalorder %s68_s22, 0 }
   0xa   : > { %p137_p7 = scmp.eq.s32.totalorder %s1079_s18, 1  ;;  %p1083_p10 = scmp.ge.s32.totalorder %s1407_s17, 2 }
   0xb   : > { %p1472_p8 = por %p112_p5, %p111_p4 }
   0xc   : > { %s1477_s24 = scalar_select %p70_p6, %s1395_s14, %s72_s20  }
   0xd   : > { %p1479_p9 = por %p137_p7, %p79_p1  ;;  %174 = sbr.rel (%p1083_p10) target bundleno = 90 (0x5a), region = 20 }
  0x12   : > { %177 = sbr.rel (!%p1465_p3) target bundleno = 86 (0x56), region = 24  ;;  %s179_s26 = sand.u32 (%p1465_p3), 1, %s1395_s14  }
  0x13   : > { %s1085_s27 = sshll.u32 (%p1465_p3), %s1403_s16, 2  ;;  %s1084_s28 = sshll.u32 (%p1465_p3), %s179_s26, 8 }
  0x14   : > { %s1491_s4 = scalar_lea.vmem (%p1465_p3), %s1728_s1, %s1085_s27  ;;  %s1495_s5 = scalar_lea.vmem (%p1465_p3), [#allocation3], %s1084_s28 }
  0x15   : > { %v203_v0 = vld [vmem:[%s1491_s4] sm:$0xf] (%p1465_p3)  ;;  %v205_v1 = vld [vmem:[%s1491_s4 + $0x8] sm:$0xf] (%p1465_p3)  ;;  %v207_v2 = vld [vmem:[%s1491_s4 + $0x10] sm:$0xf] (%p1465_p3) }
  0x16   : > { %204 = vst [vmem:[%s1495_s5] sm:$0xf] (%p1465_p3), %v203_v0  ;;  %v209_v3 = vld [vmem:[%s1491_s4 + $0x18] sm:$0xf] (%p1465_p3)  ;;  %v211_v4 = vld [vmem:[%s1491_s4 + $0x20] sm:$0xf] (%p1465_p3) }
  0x17   : > { %206 = vst [vmem:[%s1495_s5 + $0x4] sm:$0xf] %v205_v1  ;;  %v213_v5 = vld [vmem:[%s1491_s4 + $0x28] sm:$0xf]  ;;  %v215_v6 = vld [vmem:[%s1491_s4 + $0x30] sm:$0xf] }
  0x18   : > { %208 = vst [vmem:[%s1495_s5 + $0x8] sm:$0xf] %v207_v2  ;;  %v217_v7 = vld [vmem:[%s1491_s4 + $0x38] sm:$0xf]  ;;  %v219_v8 = vld [vmem:[%s1491_s4 + $0x40] sm:$0xf] }
  0x19   : > { %210 = vst [vmem:[%s1495_s5 + $0xc] sm:$0xf] %v209_v3  ;;  %v221_v9 = vld [vmem:[%s1491_s4 + $0x48] sm:$0xf]  ;;  %v223_v10 = vld [vmem:[%s1491_s4 + $0x50] sm:$0xf] }
  0x1a   : > { %212 = vst [vmem:[%s1495_s5 + $0x10] sm:$0xf] %v211_v4  ;;  %v225_v11 = vld [vmem:[%s1491_s4 + $0x58] sm:$0xf]  ;;  %v227_v12 = vld [vmem:[%s1491_s4 + $0x60] sm:$0xf] }
  0x1b   : > { %214 = vst [vmem:[%s1495_s5 + $0x14] sm:$0xf] %v213_v5  ;;  %v229_v13 = vld [vmem:[%s1491_s4 + $0x68] sm:$0xf]  ;;  %v231_v14 = vld [vmem:[%s1491_s4 + $0x70] sm:$0xf] }
  0x1c   : > { %216 = vst [vmem:[%s1495_s5 + $0x18] sm:$0xf] %v215_v6  ;;  %v233_v15 = vld [vmem:[%s1491_s4 + $0x78] sm:$0xf]  ;;  %v235_v16 = vld [vmem:[%s1491_s4 + $0x80] sm:$0xf] }
  0x1d   : > { %218 = vst [vmem:[%s1495_s5 + $0x1c] sm:$0xf] %v217_v7  ;;  %v237_v17 = vld [vmem:[%s1491_s4 + $0x88] sm:$0xf]  ;;  %v239_v18 = vld [vmem:[%s1491_s4 + $0x90] sm:$0xf] }
  0x1e   : > { %220 = vst [vmem:[%s1495_s5 + $0x20] sm:$0xf] %v219_v8  ;;  %v241_v19 = vld [vmem:[%s1491_s4 + $0x98] sm:$0xf]  ;;  %v243_v20 = vld [vmem:[%s1491_s4 + $0xa0] sm:$0xf] }
  0x1f   : > { %222 = vst [vmem:[%s1495_s5 + $0x24] sm:$0xf] %v221_v9  ;;  %v245_v21 = vld [vmem:[%s1491_s4 + $0xa8] sm:$0xf]  ;;  %v247_v22 = vld [vmem:[%s1491_s4 + $0xb0] sm:$0xf] }
  0x20   : > { %224 = vst [vmem:[%s1495_s5 + $0x28] sm:$0xf] %v223_v10  ;;  %v249_v23 = vld [vmem:[%s1491_s4 + $0xb8] sm:$0xf]  ;;  %v251_v24 = vld [vmem:[%s1491_s4 + $0xc0] sm:$0xf] }
  0x21   : > { %226 = vst [vmem:[%s1495_s5 + $0x2c] sm:$0xf] %v225_v11  ;;  %v253_v25 = vld [vmem:[%s1491_s4 + $0xc8] sm:$0xf]  ;;  %v255_v26 = vld [vmem:[%s1491_s4 + $0xd0] sm:$0xf] }
  0x22   : > { %228 = vst [vmem:[%s1495_s5 + $0x30] sm:$0xf] %v227_v12  ;;  %v257_v27 = vld [vmem:[%s1491_s4 + $0xd8] sm:$0xf]  ;;  %v259_v28 = vld [vmem:[%s1491_s4 + $0xe0] sm:$0xf] }
  0x23   : > { %230 = vst [vmem:[%s1495_s5 + $0x34] sm:$0xf] %v229_v13  ;;  %v261_v29 = vld [vmem:[%s1491_s4 + $0xe8] sm:$0xf]  ;;  %v263_v30 = vld [vmem:[%s1491_s4 + $0xf0] sm:$0xf] }
  0x24   : > { %232 = vst [vmem:[%s1495_s5 + $0x38] sm:$0xf] %v231_v14  ;;  %v265_v31 = vld [vmem:[%s1491_s4 + $0xf8] sm:$0xf]  ;;  %v267_v32 = vld [vmem:[%s1491_s4 + $0x100] sm:$0xf] }
  0x25   : > { %234 = vst [vmem:[%s1495_s5 + $0x3c] sm:$0xf] %v233_v15  ;;  %v269_v33 = vld [vmem:[%s1491_s4 + $0x108] sm:$0xf]  ;;  %v271_v34 = vld [vmem:[%s1491_s4 + $0x110] sm:$0xf] }
  0x26   : > { %236 = vst [vmem:[%s1495_s5 + $0x40] sm:$0xf] %v235_v16  ;;  %v273_v35 = vld [vmem:[%s1491_s4 + $0x118] sm:$0xf]  ;;  %v275_v36 = vld [vmem:[%s1491_s4 + $0x120] sm:$0xf] }
  0x27   : > { %238 = vst [vmem:[%s1495_s5 + $0x44] sm:$0xf] %v237_v17  ;;  %v277_v37 = vld [vmem:[%s1491_s4 + $0x128] sm:$0xf]  ;;  %v279_v38 = vld [vmem:[%s1491_s4 + $0x130] sm:$0xf] }
  0x28   : > { %240 = vst [vmem:[%s1495_s5 + $0x48] sm:$0xf] %v239_v18  ;;  %v281_v39 = vld [vmem:[%s1491_s4 + $0x138] sm:$0xf]  ;;  %v283_v40 = vld [vmem:[%s1491_s4 + $0x140] sm:$0xf] }
  0x29   : > { %242 = vst [vmem:[%s1495_s5 + $0x4c] sm:$0xf] %v241_v19  ;;  %v285_v41 = vld [vmem:[%s1491_s4 + $0x148] sm:$0xf]  ;;  %v287_v42 = vld [vmem:[%s1491_s4 + $0x150] sm:$0xf] }
  0x2a   : > { %244 = vst [vmem:[%s1495_s5 + $0x50] sm:$0xf] %v243_v20  ;;  %v289_v43 = vld [vmem:[%s1491_s4 + $0x158] sm:$0xf]  ;;  %v291_v44 = vld [vmem:[%s1491_s4 + $0x160] sm:$0xf] }
  0x2b   : > { %246 = vst [vmem:[%s1495_s5 + $0x54] sm:$0xf] %v245_v21  ;;  %v293_v45 = vld [vmem:[%s1491_s4 + $0x168] sm:$0xf]  ;;  %v295_v46 = vld [vmem:[%s1491_s4 + $0x170] sm:$0xf] }
  0x2c   : > { %248 = vst [vmem:[%s1495_s5 + $0x58] sm:$0xf] %v247_v22  ;;  %v297_v47 = vld [vmem:[%s1491_s4 + $0x178] sm:$0xf]  ;;  %v299_v48 = vld [vmem:[%s1491_s4 + $0x180] sm:$0xf] }
  0x2d   : > { %250 = vst [vmem:[%s1495_s5 + $0x5c] sm:$0xf] %v249_v23  ;;  %v301_v49 = vld [vmem:[%s1491_s4 + $0x188] sm:$0xf]  ;;  %v303_v50 = vld [vmem:[%s1491_s4 + $0x190] sm:$0xf] }
  0x2e   : > { %252 = vst [vmem:[%s1495_s5 + $0x60] sm:$0xf] %v251_v24  ;;  %v305_v51 = vld [vmem:[%s1491_s4 + $0x198] sm:$0xf]  ;;  %v307_v52 = vld [vmem:[%s1491_s4 + $0x1a0] sm:$0xf] }
  0x2f   : > { %254 = vst [vmem:[%s1495_s5 + $0x64] sm:$0xf] %v253_v25  ;;  %v309_v53 = vld [vmem:[%s1491_s4 + $0x1a8] sm:$0xf]  ;;  %v311_v54 = vld [vmem:[%s1491_s4 + $0x1b0] sm:$0xf] }
  0x30   : > { %256 = vst [vmem:[%s1495_s5 + $0x68] sm:$0xf] %v255_v26  ;;  %v313_v55 = vld [vmem:[%s1491_s4 + $0x1b8] sm:$0xf]  ;;  %v315_v56 = vld [vmem:[%s1491_s4 + $0x1c0] sm:$0xf] }
  0x31   : > { %258 = vst [vmem:[%s1495_s5 + $0x6c] sm:$0xf] %v257_v27  ;;  %v317_v57 = vld [vmem:[%s1491_s4 + $0x1c8] sm:$0xf]  ;;  %v319_v58 = vld [vmem:[%s1491_s4 + $0x1d0] sm:$0xf] }
  0x32   : > { %260 = vst [vmem:[%s1495_s5 + $0x70] sm:$0xf] %v259_v28  ;;  %v321_v59 = vld [vmem:[%s1491_s4 + $0x1d8] sm:$0xf]  ;;  %v323_v60 = vld [vmem:[%s1491_s4 + $0x1e0] sm:$0xf] }
  0x33   : > { %262 = vst [vmem:[%s1495_s5 + $0x74] sm:$0xf] %v261_v29  ;;  %v325_v61 = vld [vmem:[%s1491_s4 + $0x1e8] sm:$0xf]  ;;  %v327_v62 = vld [vmem:[%s1491_s4 + $0x1f0] sm:$0xf] }
  0x34   : > { %264 = vst [vmem:[%s1495_s5 + $0x78] sm:$0xf] %v263_v30  ;;  %v329_v63 = vld [vmem:[%s1491_s4 + $0x1f8] sm:$0xf] }
  0x35   : > { %266 = vst [vmem:[%s1495_s5 + $0x7c] sm:$0xf] %v265_v31 }
  0x36   : > { %268 = vst [vmem:[%s1495_s5 + $0x80] sm:$0xf] %v267_v32 }
  0x37   : > { %270 = vst [vmem:[%s1495_s5 + $0x84] sm:$0xf] %v269_v33 }
  0x38   : > { %272 = vst [vmem:[%s1495_s5 + $0x88] sm:$0xf] %v271_v34 }
  0x39   : > { %274 = vst [vmem:[%s1495_s5 + $0x8c] sm:$0xf] %v273_v35 }
  0x3a   : > { %276 = vst [vmem:[%s1495_s5 + $0x90] sm:$0xf] %v275_v36 }
  0x3b   : > { %278 = vst [vmem:[%s1495_s5 + $0x94] sm:$0xf] %v277_v37 }
  0x3c   : > { %280 = vst [vmem:[%s1495_s5 + $0x98] sm:$0xf] %v279_v38 }
  0x3d   : > { %282 = vst [vmem:[%s1495_s5 + $0x9c] sm:$0xf] %v281_v39 }
  0x3e   : > { %284 = vst [vmem:[%s1495_s5 + $0xa0] sm:$0xf] %v283_v40 }
  0x3f   : > { %286 = vst [vmem:[%s1495_s5 + $0xa4] sm:$0xf] %v285_v41 }
  0x40   : > { %288 = vst [vmem:[%s1495_s5 + $0xa8] sm:$0xf] %v287_v42 }
  0x41   : > { %290 = vst [vmem:[%s1495_s5 + $0xac] sm:$0xf] %v289_v43 }
  0x42   : > { %292 = vst [vmem:[%s1495_s5 + $0xb0] sm:$0xf] %v291_v44 }
  0x43   : > { %294 = vst [vmem:[%s1495_s5 + $0xb4] sm:$0xf] %v293_v45 }
  0x44   : > { %296 = vst [vmem:[%s1495_s5 + $0xb8] sm:$0xf] %v295_v46 }
  0x45   : > { %298 = vst [vmem:[%s1495_s5 + $0xbc] sm:$0xf] %v297_v47 }
  0x46   : > { %300 = vst [vmem:[%s1495_s5 + $0xc0] sm:$0xf] %v299_v48 }
  0x47   : > { %302 = vst [vmem:[%s1495_s5 + $0xc4] sm:$0xf] %v301_v49 }
  0x48   : > { %304 = vst [vmem:[%s1495_s5 + $0xc8] sm:$0xf] %v303_v50 }
  0x49   : > { %306 = vst [vmem:[%s1495_s5 + $0xcc] sm:$0xf] %v305_v51 }
  0x4a   : > { %308 = vst [vmem:[%s1495_s5 + $0xd0] sm:$0xf] %v307_v52 }
  0x4b   : > { %310 = vst [vmem:[%s1495_s5 + $0xd4] sm:$0xf] %v309_v53 }
  0x4c   : > { %312 = vst [vmem:[%s1495_s5 + $0xd8] sm:$0xf] %v311_v54 }
  0x4d   : > { %314 = vst [vmem:[%s1495_s5 + $0xdc] sm:$0xf] %v313_v55 }
  0x4e   : > { %316 = vst [vmem:[%s1495_s5 + $0xe0] sm:$0xf] %v315_v56 }
  0x4f   : > { %318 = vst [vmem:[%s1495_s5 + $0xe4] sm:$0xf] %v317_v57 }
  0x50   : > { %320 = vst [vmem:[%s1495_s5 + $0xe8] sm:$0xf] %v319_v58 }
  0x51   : > { %322 = vst [vmem:[%s1495_s5 + $0xec] sm:$0xf] %v321_v59 }
  0x52   : > { %324 = vst [vmem:[%s1495_s5 + $0xf0] sm:$0xf] %v323_v60 }
  0x53   : > { %326 = vst [vmem:[%s1495_s5 + $0xf4] sm:$0xf] %v325_v61 }
  0x54   : > { %328 = vst [vmem:[%s1495_s5 + $0xf8] sm:$0xf] %v327_v62 }
  0x55   : > { %330 = vst [vmem:[%s1495_s5 + $0xfc] sm:$0xf] %v329_v63 }
  0x56 PF: > { %s483_s6 = sand.u32 1, %s1395_s14   ;;  %s489_s9 = scalar_lea.hbm %s1729_s2, %s1403_s16 }
  0x57   : > { %s491_s10 = sshll.u32 %s489_s9, 4  ;;  %s486_s11 = scalar_lea.vmem [#allocation4], %s483_s6  ;;  %s492_s10 = int_to_ptr.hbm [resolvable:$true] %s491_s10 }
  0x58   : > { %s493_s12 = sshll.u32 %s486_s11, 4  ;;  %s484_s18 = scalar_lea.sflag [#allocation5], %s483_s6  ;;  %s494_s12 = int_to_ptr.vmem [resolvable:$true] %s493_s12 }
  0x59   : > { %1278 = dma.hbm_to_vmem [thread:$0]  (%p1465_p3), %s492_s10, 16, %s494_s12, %s484_s18  }
  0x5a PF: > { %p1086_p11 = scmp.ge.s32.totalorder %s1407_s17, 1  ;;  %p498_p12 = scmp.lt.s32.totalorder %s1407_s17, 3 }
  0x5c   : > { %p499_p13 = pnand %p1086_p11, %p498_p12 }
  0x5d   : > { %s1633_s20 = sand.u32 (!%p499_p13), 1, %s1391_s13  }
  0x5e   : > { %502 = sbr.rel (%p499_p13) target bundleno = 292 (0x124), region = 69  ;;  %s1087_s22 = sshll.u32 (!%p499_p13), %s1633_s20, 8 }
  0x5f   : > { %s1636_s26 = scalar_lea.vmem (!%p499_p13), [#allocation3], %s1087_s22  ;;  %s512_s27 = scalar_lea.sflag (!%p499_p13), [#allocation5], %s1633_s20 }
  0x60   : > { %s514_s21 = scalar_lea.vmem (!%p499_p13), [#allocation4], %s1633_s20 }
  0x63   : > { %1382 = dma.done.wait (%p1472_p8), %s512_s27, 16  }
  0x64   : > { %1384 = vsyncadd (%p1472_p8), %s512_s27, 4294967280  ;;  %v1248_v0 = vld [vmem:[%s1636_s26 + $0x38] sm:$0xff]  ;;  %v1247_v4 = vld [vmem:[%s1636_s26 + $0x30] sm:$0xff]  ;;  %s1088_s27 = sshll.u32 %s1633_s20, 3  ;;  %s1234_s23 = sshll.u32 (%p1479_p9), %s1399_s15, 2 }
  0x65   : > { %v1256_v1 = vld [vmem:[%s1636_s26 + $0x78] sm:$0xff]  ;;  %848 = vmatpush.bf16.msra.mxu0 %v1248_v0  ;;  %v1255_v5 = vld [vmem:[%s1636_s26 + $0x70] sm:$0xff]  ;;  %v1246_v8 = vld [vmem:[%s1636_s26 + $0x28] sm:$0xff]  ;;  %s921_s30 = scalar_lea.vmem (%p1479_p9), %s1730_s3, %s1234_s23 }
  0x66   : > { %v1264_v2 = vld [vmem:[%s1636_s26 + $0xb8] sm:$0xff]  ;;  %862 = vmatpush.bf16.msra.mxu1 %v1256_v1  ;;  %v1263_v6 = vld [vmem:[%s1636_s26 + $0xb0] sm:$0xff]  ;;  %v1254_v9 = vld [vmem:[%s1636_s26 + $0x68] sm:$0xff] }
  0x67   : > { %v1272_v3 = vld [vmem:[%s1636_s26 + $0xf8] sm:$0xff]  ;;  %876 = vmatpush.bf16.msra.mxu2 %v1264_v2  ;;  %v1271_v7 = vld [vmem:[%s1636_s26 + $0xf0] sm:$0xff]  ;;  %v1262_v10 = vld [vmem:[%s1636_s26 + $0xa8] sm:$0xff] }
  0x68   : > { %890 = vmatpush.bf16.msra.mxu3 %v1272_v3  ;;  %v1270_v11 = vld [vmem:[%s1636_s26 + $0xe8] sm:$0xff]  ;;  %v1245_v12 = vld [vmem:[%s1636_s26 + $0x20] sm:$0xff]  ;;  %v1244_v16 = vld [vmem:[%s1636_s26 + $0x18] sm:$0xff] }
  0x69   : > { %849 = vmatpush.bf16.msra.mxu0 %v1247_v4  ;;  %v1253_v13 = vld [vmem:[%s1636_s26 + $0x60] sm:$0xff]  ;;  %v1252_v17 = vld [vmem:[%s1636_s26 + $0x58] sm:$0xff]  ;;  %v1243_v20 = vld [vmem:[%s1636_s26 + $0x10] sm:$0xff] }
  0x6a   : > { %863 = vmatpush.bf16.msra.mxu1 %v1255_v5  ;;  %v1261_v14 = vld [vmem:[%s1636_s26 + $0xa0] sm:$0xff]  ;;  %v1260_v18 = vld [vmem:[%s1636_s26 + $0x98] sm:$0xff]  ;;  %v1251_v21 = vld [vmem:[%s1636_s26 + $0x50] sm:$0xff] }
  0x6b   : > { %877 = vmatpush.bf16.msra.mxu2 %v1263_v6  ;;  %v1269_v15 = vld [vmem:[%s1636_s26 + $0xe0] sm:$0xff]  ;;  %v1268_v19 = vld [vmem:[%s1636_s26 + $0xd8] sm:$0xff]  ;;  %v1259_v22 = vld [vmem:[%s1636_s26 + $0x90] sm:$0xff] }
  0x6c   : > { %891 = vmatpush.bf16.msra.mxu3 %v1271_v7  ;;  %v1267_v23 = vld [vmem:[%s1636_s26 + $0xd0] sm:$0xff]  ;;  %v1242_v24 = vld [vmem:[%s1636_s26 + $0x8] sm:$0xff]  ;;  %v1241_v28 = vld [vmem:[%s1636_s26] sm:$0xff] }
  0x6d   : > { %850 = vmatpush.bf16.msra.mxu0 %v1246_v8  ;;  %v1250_v25 = vld [vmem:[%s1636_s26 + $0x48] sm:$0xff]  ;;  %v1249_v29 = vld [vmem:[%s1636_s26 + $0x40] sm:$0xff]  ;;  %v1239_v33 = vld [vmem:[%s1727_s0 + $0xc] sm:$0xf0] }
  0x6e   : > { %864 = vmatpush.bf16.msra.mxu1 %v1254_v9  ;;  %v1258_v26 = vld [vmem:[%s1636_s26 + $0x88] sm:$0xff]  ;;  %v1257_v30 = vld [vmem:[%s1636_s26 + $0x80] sm:$0xff]  ;;  %v1093_v35 = vld [vmem:[%s1727_s0 + $0x10] sm:$0xf0] }
  0x6f   : > { %878 = vmatpush.bf16.msra.mxu2 %v1262_v10  ;;  %v1266_v27 = vld [vmem:[%s1636_s26 + $0xc8] sm:$0xff]  ;;  %v1265_v31 = vld [vmem:[%s1636_s26 + $0xc0] sm:$0xff]  ;;  %v1240_v37 = vld [vmem:[%s1727_s0 + $0x14] sm:$0xf0] }
  0x70   : > { %892 = vmatpush.bf16.msra.mxu3 %v1270_v11  ;;  %v1091_v32 = vld [vmem:[%s1727_s0] sm:$0xf]  ;;  %v1237_v34 = vld [vmem:[%s1727_s0 + $0x4] sm:$0xf]  ;;  %v1099_v36 = vld [vmem:[%s1727_s0 + $0x8] sm:$0xf] }
  0x71   : > { %851 = vmatpush.bf16.msra.mxu0 %v1245_v12  ;;  %v1238_v38 = vld [vmem:[%s1727_s0 + $0xc] sm:$0xf]  ;;  %v1101_v39 = vld [vmem:[%s1727_s0 + $0x18] sm:$0xf0]  ;;  %v1092_v40 = vor.u32 %v1239_v33, %v1091_v32  ;;  %v1096_v41 = vor.u32 %v1237_v34, %v1093_v35  ;;  %v1100_v42 = vor.u32 %v1240_v37, %v1099_v36  ;;  %v1328_v44 = vld [vmem:[%s514_s21] ss:$0 sm:$0xff] }
  0x72   : > { %865 = vmatpush.bf16.msra.mxu1 %v1253_v13  ;;  %v1104_v43 = vor.u32 %v1238_v38, %v1101_v39  ;;  %s549_s21 = scalar_lea.vmem [#allocation6], %s1088_s27 }
  0x73   : > { %879 = vmatpush.bf16.msra.mxu2 %v1261_v14 }
  0x74   : > { %893 = vmatpush.bf16.msra.mxu3 %v1269_v15 }
  0x75   : > { %852 = vmatpush.bf16.msra.mxu0 %v1244_v16 }
  0x76   : > { %866 = vmatpush.bf16.msra.mxu1 %v1252_v17 }
  0x77   : > { %880 = vmatpush.bf16.msra.mxu2 %v1260_v18 }
  0x78   : > { %894 = vmatpush.bf16.msra.mxu3 %v1268_v19 }
  0x79   : > { %853 = vmatpush.bf16.msra.mxu0 %v1243_v20 }
  0x7a   : > { %867 = vmatpush.bf16.msra.mxu1 %v1251_v21 }
  0x7b   : > { %881 = vmatpush.bf16.msra.mxu2 %v1259_v22 }
  0x7c   : > { %895 = vmatpush.bf16.msra.mxu3 %v1267_v23 }
  0x7d   : > { %854 = vmatpush.bf16.msra.mxu0 %v1242_v24 }
  0x7e   : > { %868 = vmatpush.bf16.msra.mxu1 %v1250_v25 }
  0x7f   : > { %882 = vmatpush.bf16.msra.mxu2 %v1258_v26 }
  0x80   : > { %896 = vmatpush.bf16.msra.mxu3 %v1266_v27 }
  0x81   : > { %855 = vmatpush.bf16.msra.mxu0 %v1241_v28 }
  0x82   : > { %869 = vmatpush.bf16.msra.mxu1 %v1249_v29 }
  0x83   : > { %883 = vmatpush.bf16.msra.mxu2 %v1257_v30 }
  0x84   : > { %897 = vmatpush.bf16.msra.mxu3 %v1265_v31  ;;  %856 = vmatmul.bf16.vlgmr.msra.gmra.mxu0 %v1092_v40 }
  0x85   : > { %870 = vmatmul.bf16.vlgmr.msra.gmra.mxu1 %v1096_v41 }
  0x86   : > { %884 = vmatmul.bf16.vlgmr.msra.gmra.mxu2 %v1100_v42 }
  0x87   : > { %898 = vmatmul.bf16.vlgmr.msra.gmra.mxu3 %v1104_v43 }
 0x101   : > { %v857_v45 = vpop.f32.mrf.mxu0 }
 0x102   : > { %v871_v46 = vpop.f32.mrf.mxu1  ;;  %v858_v47 = vadd.f32 %v1328_v44, %v857_v45 }
 0x104   : > { %v872_v50 = vadd.f32 %v871_v46, %v858_v47 }
 0x109   : > { %v885_v48 = vpop.f32.mrf.mxu2  ;;  %v859_v51 = vpop.f32.mrf.mxu0 }
 0x10a   : > { %v899_v49 = vpop.f32.mrf.mxu3  ;;  %v860_v52 = vadd.f32 %v1328_v44, %v859_v51  ;;  %v886_v53 = vadd.f32 %v885_v48, %v872_v50  ;;  %v873_v54 = vpop.f32.mrf.mxu1 }
 0x10c   : > { %v874_v55 = vadd.f32 %v873_v54, %v860_v52  ;;  %v900_v57 = vadd.f32 %v899_v49, %v886_v53 }
 0x10e   : > { %v904_v61 = vmax.f32 %v900_v57, 0.0 }
 0x111   : > { %v887_v56 = vpop.f32.mrf.mxu2 }
 0x112   : > { %v888_v58 = vadd.f32 %v887_v56, %v874_v55  ;;  %v901_v59 = vpop.f32.mrf.mxu3 }
 0x114   : > { %v902_v60 = vadd.f32 %v901_v59, %v888_v58 }
 0x116   : > { %v905_v62 = vmax.f32 %v902_v60, 0.0  ;;  %916 = sbr.rel (!%p1479_p9) target bundleno = 292 (0x124), region = 81 }
 0x118   : > { %v1276_v63 = vpack.c.bf16 %v905_v62, %v904_v61 }
 0x11a   : > { %1277 = vst [vmem:[%s549_s21] sm:$0xff] %v1276_v63  }
 0x121   : > { %v938_v0 = vld [vmem:[%s549_s21] sm:$0xf]  ;;  %v940_v1 = vld [vmem:[%s549_s21 + $0x4] sm:$0xf] }
 0x122   : > { %939 = vst [vmem:[%s921_s30] sm:$0xf] %v938_v0 }
 0x123   : > { %941 = vst [vmem:[%s921_s30 + $0x8] sm:$0xf] %v940_v1 }
 0x124 PF: > { %s16_s17 = sadd.s32 1, %s1407_s17   ;;  %s1734_s12 = smov %s1391_s13 }
 0x125   : > { %p13_p0 = scmp.ge.s32.totalorder %s16_s17, 4   ;;  %s1735_s13 = smov %s1395_s14 }
 0x126   : > { %s1736_s14 = smov %s1477_s24  ;;  %s1737_s15 = smov %s1403_s16 }
 0x127   : > { %s1738_s16 = smov %s1740_s19  ;;  %15 = sbr.rel (!%p13_p0) target bundleno = 4 (0x4), region = 165 }
 0x12c   :  { %979 = vsyncpa [#allocation5], 1 }
 0x12d   :  { %981 = vsyncpa [#allocation5 + $0x1], 1 }

</bundles_post_ra>
